<compile_context>
chip_gen: v7x
topology: tpu7x:2x2x1
jax: 0.10.0
libtpu: 0.0.40
codegen_flags: <defaults>
</compile_context>

<pallas_src>
import functools
import math

import jax
import jax.numpy as jnp
from jax import lax
from jax.experimental import pallas as pl
from jax.experimental.pallas import tpu as pltpu


def _round_up(x, m):
    return ((x + m - 1) // m) * m


def _lora_conv_kernel(xp_ref, w_ref, b_ref, out_ref, *, TH, W, KH, KW, ph):
    """Direct 'same' conv with LoRA pre-merged into the weight.

    xp_ref : (Hp, Wpp, C_in)      padded NHWC image (whole, resident per batch)
    w_ref  : (KH, KW, C_in, Cp)   merged (org + multiplier*scale*LoRA) weight
    b_ref  : (1, Cp)              org bias, padded to Cp, f32
    out_ref: (TH*W, Cp)           flattened row-tile output (lane-dense)
    """
    C_in = xp_ref.shape[-1]
    Cp = out_ref.shape[-1]
    THW = TH * W

    h = pl.program_id(1)
    row0 = pl.multiple_of(h * TH, TH)        # output row tile -> padded row start

    acc = jnp.zeros((THW, Cp), jnp.float32)
    for kx in range(KW):
        # Hoisted kx (sublane) shift: one shifted window load per kx (KW copies
        # total instead of KH*KW).  The row slice is along the leading/major
        # (non-tiled) dim -> just an address offset.
        xs = xp_ref[pl.ds(row0, TH + 2 * ph), pl.ds(kx, W), :]   # (TH+2ph, W, C_in)
        for ky in range(KH):
            # Leading-dim slice is free; the reshape is a pure view because
            # W % 8 == 0 (layout-preserving in (8,128) tiling).
            x2 = xs[ky:ky + TH].reshape(THW, C_in)
            acc = acc + jnp.dot(x2, w_ref[ky, kx],
                                preferred_element_type=jnp.float32)

    out_ref[...] = (acc + b_ref[...]).astype(out_ref.dtype)


def lora_conv_forward(x, w_org, b_org, w_down, w_up, multiplier, scale,
                      *, compute_dtype=jnp.bfloat16, out_dtype=None,
                      row_tile=None, x_is_nhwc=False):
    """Fused  org_conv(x) + lora_up(lora_down(x)) * multiplier * scale.

    x      : [B, C_in, H, W]  (NCHW, default) or [B, H, W, C_in] if x_is_nhwc
    w_org  : [C_out, C_in, KH, KW]   (stride 1, 'same' padding)
    b_org  : [C_out]
    w_down : [r, C_in, KH, KW]
    w_up   : [C_out, r, 1, 1]
    Returns the same layout as the input (NCHW by default).
    """
    if x_is_nhwc:
        B, H, W, C_in = x.shape
    else:
        B, C_in, H, W = x.shape
    C_out, C_in_w, KH, KW = w_org.shape
    r = w_down.shape[0]
    assert C_in_w == C_in
    assert KH % 2 == 1 and KW % 2 == 1, "only odd 'same' kernels supported"

    ph, pw = KH // 2, KW // 2
    Hp = H + 2 * ph
    Wp = W + 2 * pw
    Wpp = _round_up(Wp, 8)                 # sublane-dense resident image layout
    out_dtype = x.dtype if out_dtype is None else out_dtype
    lora_scale = float(multiplier) * float(scale)

    # --- row tiling (v7x VMEM budget; whole image per step on v5e/v6e) ---
    if row_tile is None or row_tile >= H or H % row_tile != 0:
        TH = H
    else:
        TH = int(row_tile)
    n_h = H // TH

    # --- activations: cast to the MXU compute dtype BEFORE the layout passes,
    # NCHW -> NHWC + spatial pad only (no im2col materialization) ---
    xa = x.astype(compute_dtype)
    if not x_is_nhwc:
        xa = jnp.transpose(xa, (0, 2, 3, 1))                       # [B,H,W,C_in]
    xp = jnp.pad(xa, ((0, 0), (ph, ph), (pw, Wpp - W - pw), (0, 0)))

    # --- merge LoRA exactly into the org weight (f32; lora_up is 1x1 / s1) ---
    w_org_hwio = jnp.transpose(w_org, (2, 3, 1, 0)).astype(jnp.float32)
    w_down_hwir = jnp.transpose(w_down, (2, 3, 1, 0)).astype(jnp.float32)
    w_up_ro = w_up.reshape(C_out, r).astype(jnp.float32).T          # [r, C_out]
    w_eff = w_org_hwio + lora_scale * jnp.einsum('hwir,ro->hwio',
                                                 w_down_hwir, w_up_ro)

    # --- lane-dense output channels (unmasked full-lane stores) ---
    Cp = _round_up(C_out, 128)
    if Cp != C_out:
        w_eff = jnp.pad(w_eff, ((0, 0), (0, 0), (0, 0), (0, Cp - C_out)))
        b_pad = jnp.pad(b_org, (0, Cp - C_out))
    else:
        b_pad = b_org
    w_eff = w_eff.astype(compute_dtype)    # merge stays f32; operand cast only
    b_m = b_pad.reshape(1, Cp).astype(jnp.float32)

    kernel = functools.partial(_lora_conv_kernel,
                               TH=TH, W=W, KH=KH, KW=KW, ph=ph)

    # --- VMEM budget from actual block sizes, capped at physical capacity ---
    cdt = jnp.dtype(compute_dtype).itemsize
    odt = jnp.dtype(out_dtype).itemsize
    in_block = Hp * Wpp * C_in * cdt
    w_block = KH * KW * C_in * Cp * cdt
    out_block = TH * W * Cp * odt
    acc_bytes = TH * W * Cp * 4
    shift_tmp = KW * (TH + 2 * ph) * W * C_in * cdt
    need = (2 * in_block + w_block + 2 * out_block + acc_bytes + shift_tmp
            + (4 << 20))
    try:
        cap = int(pltpu.get_tpu_info().vmem_capacity_bytes)
    except Exception:
        cap = 128 << 20
    vmem_limit = int(min(max(need, 32 << 20), int(cap * 0.9)))

    def _call(buffered_weight):
        if buffered_weight:
            # Constant index map -> truly resident; don't waste a 2nd buffer.
            w_spec = pl.BlockSpec((KH, KW, C_in, Cp),
                                  lambda b, h: (0, 0, 0, 0),
                                  pipeline_mode=pl.Buffered(1))
        else:
            w_spec = pl.BlockSpec((KH, KW, C_in, Cp),
                                  lambda b, h: (0, 0, 0, 0))
        return pl.pallas_call(
            kernel,
            out_shape=jax.ShapeDtypeStruct((B, H * W, Cp), out_dtype),
            grid_spec=pltpu.PrefetchScalarGridSpec(
                num_scalar_prefetch=0,
                grid=(B, n_h),
                in_specs=[
                    # whole padded image, resident across the row-tile axis
                    pl.BlockSpec((None, Hp, Wpp, C_in),
                                 lambda b, h: (b, 0, 0, 0)),
                    w_spec,
                    pl.BlockSpec((1, Cp), lambda b, h: (0, 0)),
                ],
                out_specs=pl.BlockSpec((None, TH * W, Cp),
                                       lambda b, h: (b, h, 0)),
            ),
            compiler_params=pltpu.CompilerParams(
                dimension_semantics=("parallel", "parallel"),
                vmem_limit_bytes=vmem_limit),
        )(xp, w_eff, b_m)

    try:
        out_flat = _call(True)
    except Exception:
        # Fallback for jax versions without BlockSpec(pipeline_mode=Buffered(1)).
        out_flat = _call(False)

    out = out_flat.reshape(B, H, W, Cp)[..., :C_out]                # drop pad
    if x_is_nhwc:
        return out
    return jnp.transpose(out, (0, 3, 1, 2))                         # NCHW


def _reference(x, w_org, b_org, w_down, w_up, multiplier, scale):
    dn = ('NCHW', 'OIHW', 'NCHW')
    org = lax.conv_general_dilated(x, w_org, (1, 1), ((1, 1), (1, 1)),
                                   dimension_numbers=dn)
    org = org + b_org[None, :, None, None]
    down = lax.conv_general_dilated(x, w_down, (1, 1), ((1, 1), (1, 1)),
                                    dimension_numbers=dn)
    up = lax.conv_general_dilated(down, w_up, (1, 1), ((0, 0), (0, 0)),
                                  dimension_numbers=dn)
    return org + up * multiplier * scale


if __name__ == "__main__":
    # small shapes consistent with the conv LoRA module
    B, C_in, H, W = 2, 4, 16, 16
    C_out, KH, KW = 8, 3, 3
    lora_dim = 4
    alpha = 1
    multiplier = 1.0
    scale = alpha / lora_dim            # self.scale in LoRAModule

    key = jax.random.PRNGKey(0)
    k0, k1, k2, k3, k4 = jax.random.split(key, 5)

    x = jax.random.normal(k0, (B, C_in, H, W), dtype=jnp.float32)

    # deterministic "kaiming-uniform-like" init for org + lora_down,
    # non-zero up_weight passed in explicitly (allowed by __init__ signature)
    fan_org = C_in * KH * KW
    bound_org = 1.0 / math.sqrt(fan_org)
    w_org = jax.random.uniform(k1, (C_out, C_in, KH, KW),
                               minval=-bound_org, maxval=bound_org,
                               dtype=jnp.float32)
    b_org = jax.random.uniform(k2, (C_out,), minval=-bound_org,
                               maxval=bound_org, dtype=jnp.float32)
    w_down = jax.random.uniform(k3, (lora_dim, C_in, KH, KW),
                                minval=-bound_org, maxval=bound_org,
                                dtype=jnp.float32)
    w_up = jax.random.uniform(k4, (C_out, lora_dim, 1, 1),
                              minval=-0.5, maxval=0.5, dtype=jnp.float32)

    ref = _reference(x, w_org, b_org, w_down, w_up, multiplier, scale)

    # Exact-math path: f32 operands, whole-image blocks (v5e/v6e style).
    out_f32 = lora_conv_forward(x, w_org, b_org, w_down, w_up, multiplier,
                                scale, compute_dtype=jnp.float32)
    out_f32 = jax.block_until_ready(out_f32)
    assert out_f32.shape == (B, C_out, H, W)
    assert jnp.allclose(out_f32, ref, atol=1e-4, rtol=1e-4), \
        float(jnp.max(jnp.abs(out_f32 - ref)))

    # Production path: bf16 MXU operands (f32 accumulate) + H-row tiling
    # (v7x style).  bf16 operand rounding only -> loose tolerance.
    out_bf16 = lora_conv_forward(x, w_org, b_org, w_down, w_up, multiplier,
                                 scale, compute_dtype=jnp.bfloat16, row_tile=8)
    out_bf16 = jax.block_until_ready(out_bf16)
    assert out_bf16.shape == (B, C_out, H, W)
    assert jnp.allclose(out_bf16, ref, atol=5e-2, rtol=5e-2), \
        float(jnp.max(jnp.abs(out_bf16 - ref)))

    print("KERNEL_OK")
</pallas_src>

<mosaic_0001>
module attributes {stable_mosaic.version = 11 : i64} {
  func.func @_lora_conv_kernel(%arg0: i32, %arg1: i32, %arg2: memref<1x18x24x4xf32, #tpu.memory_space<vmem>>, %arg3: memref<3x3x4x128xf32, #tpu.memory_space<vmem>>, %arg4: memref<1x128xf32, #tpu.memory_space<vmem>>, %arg5: memref<1x256x128xf32, #tpu.memory_space<vmem>>) attributes {dimension_semantics = [#tpu.dimension_semantics<parallel>, #tpu.dimension_semantics<parallel>], iteration_bounds = array<i64: 2, 1>, scalar_prefetch = 0 : i64, scratch_operands = 0 : i64, tpu.core_type = #tpu.core_type<tc>, window_params = [{transform_indices = @transform_0, window_bounds = array<i64: 1, 18, 24, 4>}, {pipeline_mode = #tpu.pipeline_mode<synchronous>, transform_indices = @transform_1, window_bounds = array<i64: 3, 3, 4, 128>}, {pipeline_mode = #tpu.pipeline_mode<synchronous>, transform_indices = @transform_2, window_bounds = array<i64: 1, 128>}, {transform_indices = @transform_3, window_bounds = array<i64: 1, 256, 128>}]} {
    %c16_i32 = arith.constant 16 : i32
    %0 = arith.muli %arg1, %c16_i32 : i32
    %1 = tpu.assume_multiple %0, 16 : i32
    %cst = arith.constant 0.000000e+00 : f32
    %2 = vector.broadcast %cst : f32 to vector<256x128xf32>
    %c0 = arith.constant 0 : index
    %3 = arith.index_cast %1 : i32 to index
    %c0_0 = arith.constant 0 : index
    %c0_1 = arith.constant 0 : index
    %4 = vector.load %arg2[%c0, %3, %c0_0, %c0_1] : memref<1x18x24x4xf32, #tpu.memory_space<vmem>>, vector<1x18x16x4xf32>
    %5 = vector.shape_cast %4 : vector<1x18x16x4xf32> to vector<18x16x4xf32>
    %6 = vector.extract_strided_slice %5 {offsets = [0, 0, 0], sizes = [16, 16, 4], strides = [1, 1, 1]} : vector<18x16x4xf32> to vector<16x16x4xf32>
    %7 = vector.shape_cast %6 : vector<16x16x4xf32> to vector<256x4xf32>
    %c0_2 = arith.constant 0 : index
    %c0_3 = arith.constant 0 : index
    %c0_4 = arith.constant 0 : index
    %c0_5 = arith.constant 0 : index
    %8 = vector.load %arg3[%c0_2, %c0_3, %c0_4, %c0_5] : memref<3x3x4x128xf32, #tpu.memory_space<vmem>>, vector<1x1x4x128xf32>
    %9 = vector.shape_cast %8 : vector<1x1x4x128xf32> to vector<4x128xf32>
    %cst_6 = arith.constant dense<0.000000e+00> : vector<256x128xf32>
    %10 = tpu.matmul %7, %9, %cst_6 {dimension_numbers = #tpu.dot_dimension_numbers<[1], [0], [0], [1], [0, 0, 1, 1], [], []>} : vector<256x4xf32>, vector<4x128xf32>, vector<256x128xf32> -> vector<256x128xf32>
    %11 = arith.addf %2, %10 : vector<256x128xf32>
    %12 = vector.extract_strided_slice %5 {offsets = [1, 0, 0], sizes = [16, 16, 4], strides = [1, 1, 1]} : vector<18x16x4xf32> to vector<16x16x4xf32>
    %13 = vector.shape_cast %12 : vector<16x16x4xf32> to vector<256x4xf32>
    %c1 = arith.constant 1 : index
    %c0_7 = arith.constant 0 : index
    %c0_8 = arith.constant 0 : index
    %c0_9 = arith.constant 0 : index
    %14 = vector.load %arg3[%c1, %c0_7, %c0_8, %c0_9] : memref<3x3x4x128xf32, #tpu.memory_space<vmem>>, vector<1x1x4x128xf32>
    %15 = vector.shape_cast %14 : vector<1x1x4x128xf32> to vector<4x128xf32>
    %cst_10 = arith.constant dense<0.000000e+00> : vector<256x128xf32>
    %16 = tpu.matmul %13, %15, %cst_10 {dimension_numbers = #tpu.dot_dimension_numbers<[1], [0], [0], [1], [0, 0, 1, 1], [], []>} : vector<256x4xf32>, vector<4x128xf32>, vector<256x128xf32> -> vector<256x128xf32>
    %17 = arith.addf %11, %16 : vector<256x128xf32>
    %18 = vector.extract_strided_slice %5 {offsets = [2, 0, 0], sizes = [16, 16, 4], strides = [1, 1, 1]} : vector<18x16x4xf32> to vector<16x16x4xf32>
    %19 = vector.shape_cast %18 : vector<16x16x4xf32> to vector<256x4xf32>
    %c2 = arith.constant 2 : index
    %c0_11 = arith.constant 0 : index
    %c0_12 = arith.constant 0 : index
    %c0_13 = arith.constant 0 : index
    %20 = vector.load %arg3[%c2, %c0_11, %c0_12, %c0_13] : memref<3x3x4x128xf32, #tpu.memory_space<vmem>>, vector<1x1x4x128xf32>
    %21 = vector.shape_cast %20 : vector<1x1x4x128xf32> to vector<4x128xf32>
    %cst_14 = arith.constant dense<0.000000e+00> : vector<256x128xf32>
    %22 = tpu.matmul %19, %21, %cst_14 {dimension_numbers = #tpu.dot_dimension_numbers<[1], [0], [0], [1], [0, 0, 1, 1], [], []>} : vector<256x4xf32>, vector<4x128xf32>, vector<256x128xf32> -> vector<256x128xf32>
    %23 = arith.addf %17, %22 : vector<256x128xf32>
    %c0_15 = arith.constant 0 : index
    %24 = arith.index_cast %1 : i32 to index
    %c1_16 = arith.constant 1 : index
    %c0_17 = arith.constant 0 : index
    %25 = vector.load %arg2[%c0_15, %24, %c1_16, %c0_17] : memref<1x18x24x4xf32, #tpu.memory_space<vmem>>, vector<1x18x16x4xf32>
    %26 = vector.shape_cast %25 : vector<1x18x16x4xf32> to vector<18x16x4xf32>
    %27 = vector.extract_strided_slice %26 {offsets = [0, 0, 0], sizes = [16, 16, 4], strides = [1, 1, 1]} : vector<18x16x4xf32> to vector<16x16x4xf32>
    %28 = vector.shape_cast %27 : vector<16x16x4xf32> to vector<256x4xf32>
    %c0_18 = arith.constant 0 : index
    %c1_19 = arith.constant 1 : index
    %c0_20 = arith.constant 0 : index
    %c0_21 = arith.constant 0 : index
    %29 = vector.load %arg3[%c0_18, %c1_19, %c0_20, %c0_21] : memref<3x3x4x128xf32, #tpu.memory_space<vmem>>, vector<1x1x4x128xf32>
    %30 = vector.shape_cast %29 : vector<1x1x4x128xf32> to vector<4x128xf32>
    %cst_22 = arith.constant dense<0.000000e+00> : vector<256x128xf32>
    %31 = tpu.matmul %28, %30, %cst_22 {dimension_numbers = #tpu.dot_dimension_numbers<[1], [0], [0], [1], [0, 0, 1, 1], [], []>} : vector<256x4xf32>, vector<4x128xf32>, vector<256x128xf32> -> vector<256x128xf32>
    %32 = arith.addf %23, %31 : vector<256x128xf32>
    %33 = vector.extract_strided_slice %26 {offsets = [1, 0, 0], sizes = [16, 16, 4], strides = [1, 1, 1]} : vector<18x16x4xf32> to vector<16x16x4xf32>
    %34 = vector.shape_cast %33 : vector<16x16x4xf32> to vector<256x4xf32>
    %c1_23 = arith.constant 1 : index
    %c1_24 = arith.constant 1 : index
    %c0_25 = arith.constant 0 : index
    %c0_26 = arith.constant 0 : index
    %35 = vector.load %arg3[%c1_23, %c1_24, %c0_25, %c0_26] : memref<3x3x4x128xf32, #tpu.memory_space<vmem>>, vector<1x1x4x128xf32>
    %36 = vector.shape_cast %35 : vector<1x1x4x128xf32> to vector<4x128xf32>
    %cst_27 = arith.constant dense<0.000000e+00> : vector<256x128xf32>
    %37 = tpu.matmul %34, %36, %cst_27 {dimension_numbers = #tpu.dot_dimension_numbers<[1], [0], [0], [1], [0, 0, 1, 1], [], []>} : vector<256x4xf32>, vector<4x128xf32>, vector<256x128xf32> -> vector<256x128xf32>
    %38 = arith.addf %32, %37 : vector<256x128xf32>
    %39 = vector.extract_strided_slice %26 {offsets = [2, 0, 0], sizes = [16, 16, 4], strides = [1, 1, 1]} : vector<18x16x4xf32> to vector<16x16x4xf32>
    %40 = vector.shape_cast %39 : vector<16x16x4xf32> to vector<256x4xf32>
    %c2_28 = arith.constant 2 : index
    %c1_29 = arith.constant 1 : index
    %c0_30 = arith.constant 0 : index
    %c0_31 = arith.constant 0 : index
    %41 = vector.load %arg3[%c2_28, %c1_29, %c0_30, %c0_31] : memref<3x3x4x128xf32, #tpu.memory_space<vmem>>, vector<1x1x4x128xf32>
    %42 = vector.shape_cast %41 : vector<1x1x4x128xf32> to vector<4x128xf32>
    %cst_32 = arith.constant dense<0.000000e+00> : vector<256x128xf32>
    %43 = tpu.matmul %40, %42, %cst_32 {dimension_numbers = #tpu.dot_dimension_numbers<[1], [0], [0], [1], [0, 0, 1, 1], [], []>} : vector<256x4xf32>, vector<4x128xf32>, vector<256x128xf32> -> vector<256x128xf32>
    %44 = arith.addf %38, %43 : vector<256x128xf32>
    %c0_33 = arith.constant 0 : index
    %45 = arith.index_cast %1 : i32 to index
    %c2_34 = arith.constant 2 : index
    %c0_35 = arith.constant 0 : index
    %46 = vector.load %arg2[%c0_33, %45, %c2_34, %c0_35] : memref<1x18x24x4xf32, #tpu.memory_space<vmem>>, vector<1x18x16x4xf32>
    %47 = vector.shape_cast %46 : vector<1x18x16x4xf32> to vector<18x16x4xf32>
    %48 = vector.extract_strided_slice %47 {offsets = [0, 0, 0], sizes = [16, 16, 4], strides = [1, 1, 1]} : vector<18x16x4xf32> to vector<16x16x4xf32>
    %49 = vector.shape_cast %48 : vector<16x16x4xf32> to vector<256x4xf32>
    %c0_36 = arith.constant 0 : index
    %c2_37 = arith.constant 2 : index
    %c0_38 = arith.constant 0 : index
    %c0_39 = arith.constant 0 : index
    %50 = vector.load %arg3[%c0_36, %c2_37, %c0_38, %c0_39] : memref<3x3x4x128xf32, #tpu.memory_space<vmem>>, vector<1x1x4x128xf32>
    %51 = vector.shape_cast %50 : vector<1x1x4x128xf32> to vector<4x128xf32>
    %cst_40 = arith.constant dense<0.000000e+00> : vector<256x128xf32>
    %52 = tpu.matmul %49, %51, %cst_40 {dimension_numbers = #tpu.dot_dimension_numbers<[1], [0], [0], [1], [0, 0, 1, 1], [], []>} : vector<256x4xf32>, vector<4x128xf32>, vector<256x128xf32> -> vector<256x128xf32>
    %53 = arith.addf %44, %52 : vector<256x128xf32>
    %54 = vector.extract_strided_slice %47 {offsets = [1, 0, 0], sizes = [16, 16, 4], strides = [1, 1, 1]} : vector<18x16x4xf32> to vector<16x16x4xf32>
    %55 = vector.shape_cast %54 : vector<16x16x4xf32> to vector<256x4xf32>
    %c1_41 = arith.constant 1 : index
    %c2_42 = arith.constant 2 : index
    %c0_43 = arith.constant 0 : index
    %c0_44 = arith.constant 0 : index
    %56 = vector.load %arg3[%c1_41, %c2_42, %c0_43, %c0_44] : memref<3x3x4x128xf32, #tpu.memory_space<vmem>>, vector<1x1x4x128xf32>
    %57 = vector.shape_cast %56 : vector<1x1x4x128xf32> to vector<4x128xf32>
    %cst_45 = arith.constant dense<0.000000e+00> : vector<256x128xf32>
    %58 = tpu.matmul %55, %57, %cst_45 {dimension_numbers = #tpu.dot_dimension_numbers<[1], [0], [0], [1], [0, 0, 1, 1], [], []>} : vector<256x4xf32>, vector<4x128xf32>, vector<256x128xf32> -> vector<256x128xf32>
    %59 = arith.addf %53, %58 : vector<256x128xf32>
    %60 = vector.extract_strided_slice %47 {offsets = [2, 0, 0], sizes = [16, 16, 4], strides = [1, 1, 1]} : vector<18x16x4xf32> to vector<16x16x4xf32>
    %61 = vector.shape_cast %60 : vector<16x16x4xf32> to vector<256x4xf32>
    %c2_46 = arith.constant 2 : index
    %c2_47 = arith.constant 2 : index
    %c0_48 = arith.constant 0 : index
    %c0_49 = arith.constant 0 : index
    %62 = vector.load %arg3[%c2_46, %c2_47, %c0_48, %c0_49] : memref<3x3x4x128xf32, #tpu.memory_space<vmem>>, vector<1x1x4x128xf32>
    %63 = vector.shape_cast %62 : vector<1x1x4x128xf32> to vector<4x128xf32>
    %cst_50 = arith.constant dense<0.000000e+00> : vector<256x128xf32>
    %64 = tpu.matmul %61, %63, %cst_50 {dimension_numbers = #tpu.dot_dimension_numbers<[1], [0], [0], [1], [0, 0, 1, 1], [], []>} : vector<256x4xf32>, vector<4x128xf32>, vector<256x128xf32> -> vector<256x128xf32>
    %65 = arith.addf %59, %64 : vector<256x128xf32>
    %c0_51 = arith.constant 0 : index
    %c0_52 = arith.constant 0 : index
    %66 = vector.load %arg4[%c0_51, %c0_52] : memref<1x128xf32, #tpu.memory_space<vmem>>, vector<1x128xf32>
    %67 = vector.broadcast %66 : vector<1x128xf32> to vector<256x128xf32>
    %68 = arith.addf %65, %67 : vector<256x128xf32>
    %c0_53 = arith.constant 0 : index
    %c0_54 = arith.constant 0 : index
    %c0_55 = arith.constant 0 : index
    %69 = vector.load %arg5[%c0_53, %c0_54, %c0_55] : memref<1x256x128xf32, #tpu.memory_space<vmem>>, vector<1x256x128xf32>
    %70 = vector.shape_cast %69 : vector<1x256x128xf32> to vector<256x128xf32>
    %71 = vector.shape_cast %68 : vector<256x128xf32> to vector<1x256x128xf32>
    tpu.vector_store %arg5[%c0_53, %c0_54, %c0_55], %71 {strides = array<i32>} : memref<1x256x128xf32, #tpu.memory_space<vmem>>, vector<1x256x128xf32>,
    return
  }
  func.func @transform_0(%arg0: i32, %arg1: i32) -> (i32, i32, i32, i32) {
    %c0_i32 = arith.constant 0 : i32
    %c0_i32_0 = arith.constant 0 : i32
    %c0_i32_1 = arith.constant 0 : i32
    %c0_i32_2 = arith.constant 0 : i32
    return %arg0, %c0_i32, %c0_i32_0, %c0_i32_1 : i32, i32, i32, i32
  }
  func.func @transform_1(%arg0: i32, %arg1: i32) -> (i32, i32, i32, i32) {
    %c0_i32 = arith.constant 0 : i32
    %c0_i32_0 = arith.constant 0 : i32
    %c0_i32_1 = arith.constant 0 : i32
    %c0_i32_2 = arith.constant 0 : i32
    %c0_i32_3 = arith.constant 0 : i32
    return %c0_i32, %c0_i32_0, %c0_i32_1, %c0_i32_2 : i32, i32, i32, i32
  }
  func.func @transform_2(%arg0: i32, %arg1: i32) -> (i32, i32) {
    %c0_i32 = arith.constant 0 : i32
    %c0_i32_0 = arith.constant 0 : i32
    %c0_i32_1 = arith.constant 0 : i32
    return %c0_i32, %c0_i32_0 : i32, i32
  }
  func.func @transform_3(%arg0: i32, %arg1: i32) -> (i32, i32, i32) {
    %c0_i32 = arith.constant 0 : i32
    %c0_i32_0 = arith.constant 0 : i32
    return %arg0, %arg1, %c0_i32 : i32, i32, i32
  }
}

module attributes {stable_mosaic.version = 11 : i64} {
  func.func @_lora_conv_kernel(%arg0: i32, %arg1: i32, %arg2: memref<1x18x24x4xf32, #tpu.memory_space<vmem>>, %arg3: memref<3x3x4x128xf32, #tpu.memory_space<vmem>>, %arg4: memref<1x128xf32, #tpu.memory_space<vmem>>, %arg5: memref<1x256x128xf32, #tpu.memory_space<vmem>>) attributes {dimension_semantics = [#tpu.dimension_semantics<parallel>, #tpu.dimension_semantics<parallel>], iteration_bounds = array<i64: 2, 1>, scalar_prefetch = 0 : i64, scratch_operands = 0 : i64, tpu.core_type = #tpu.core_type<tc>, window_params = [{transform_indices = @transform_0, window_bounds = array<i64: 1, 18, 24, 4>}, {pipeline_mode = #tpu.pipeline_mode<synchronous>, transform_indices = @transform_1, window_bounds = array<i64: 3, 3, 4, 128>}, {pipeline_mode = #tpu.pipeline_mode<synchronous>, transform_indices = @transform_2, window_bounds = array<i64: 1, 128>}, {transform_indices = @transform_3, window_bounds = array<i64: 1, 256, 128>}]} {
    %c16_i32 = arith.constant 16 : i32
    %0 = arith.muli %arg1, %c16_i32 : i32
    %1 = tpu.assume_multiple %0, 16 : i32
    %cst = arith.constant 0.000000e+00 : f32
    %2 = vector.broadcast %cst : f32 to vector<256x128xf32>
    %c0 = arith.constant 0 : index
    %3 = arith.index_cast %1 : i32 to index
    %c0_0 = arith.constant 0 : index
    %c0_1 = arith.constant 0 : index
    %4 = vector.load %arg2[%c0, %3, %c0_0, %c0_1] : memref<1x18x24x4xf32, #tpu.memory_space<vmem>>, vector<1x18x16x4xf32>
    %5 = vector.shape_cast %4 : vector<1x18x16x4xf32> to vector<18x16x4xf32>
    %6 = vector.extract_strided_slice %5 {offsets = [0, 0, 0], sizes = [16, 16, 4], strides = [1, 1, 1]} : vector<18x16x4xf32> to vector<16x16x4xf32>
    %7 = vector.shape_cast %6 : vector<16x16x4xf32> to vector<256x4xf32>
    %c0_2 = arith.constant 0 : index
    %c0_3 = arith.constant 0 : index
    %c0_4 = arith.constant 0 : index
    %c0_5 = arith.constant 0 : index
    %8 = vector.load %arg3[%c0_2, %c0_3, %c0_4, %c0_5] : memref<3x3x4x128xf32, #tpu.memory_space<vmem>>, vector<1x1x4x128xf32>
    %9 = vector.shape_cast %8 : vector<1x1x4x128xf32> to vector<4x128xf32>
    %cst_6 = arith.constant dense<0.000000e+00> : vector<256x128xf32>
    %10 = tpu.matmul %7, %9, %cst_6 {dimension_numbers = #tpu.dot_dimension_numbers<[1], [0], [0], [1], [0, 0, 1, 1], [], []>} : vector<256x4xf32>, vector<4x128xf32>, vector<256x128xf32> -> vector<256x128xf32>
    %11 = arith.addf %2, %10 : vector<256x128xf32>
    %12 = vector.extract_strided_slice %5 {offsets = [1, 0, 0], sizes = [16, 16, 4], strides = [1, 1, 1]} : vector<18x16x4xf32> to vector<16x16x4xf32>
    %13 = vector.shape_cast %12 : vector<16x16x4xf32> to vector<256x4xf32>
    %c1 = arith.constant 1 : index
    %c0_7 = arith.constant 0 : index
    %c0_8 = arith.constant 0 : index
    %c0_9 = arith.constant 0 : index
    %14 = vector.load %arg3[%c1, %c0_7, %c0_8, %c0_9] : memref<3x3x4x128xf32, #tpu.memory_space<vmem>>, vector<1x1x4x128xf32>
    %15 = vector.shape_cast %14 : vector<1x1x4x128xf32> to vector<4x128xf32>
    %cst_10 = arith.constant dense<0.000000e+00> : vector<256x128xf32>
    %16 = tpu.matmul %13, %15, %cst_10 {dimension_numbers = #tpu.dot_dimension_numbers<[1], [0], [0], [1], [0, 0, 1, 1], [], []>} : vector<256x4xf32>, vector<4x128xf32>, vector<256x128xf32> -> vector<256x128xf32>
    %17 = arith.addf %11, %16 : vector<256x128xf32>
    %18 = vector.extract_strided_slice %5 {offsets = [2, 0, 0], sizes = [16, 16, 4], strides = [1, 1, 1]} : vector<18x16x4xf32> to vector<16x16x4xf32>
    %19 = vector.shape_cast %18 : vector<16x16x4xf32> to vector<256x4xf32>
    %c2 = arith.constant 2 : index
    %c0_11 = arith.constant 0 : index
    %c0_12 = arith.constant 0 : index
    %c0_13 = arith.constant 0 : index
    %20 = vector.load %arg3[%c2, %c0_11, %c0_12, %c0_13] : memref<3x3x4x128xf32, #tpu.memory_space<vmem>>, vector<1x1x4x128xf32>
    %21 = vector.shape_cast %20 : vector<1x1x4x128xf32> to vector<4x128xf32>
    %cst_14 = arith.constant dense<0.000000e+00> : vector<256x128xf32>
    %22 = tpu.matmul %19, %21, %cst_14 {dimension_numbers = #tpu.dot_dimension_numbers<[1], [0], [0], [1], [0, 0, 1, 1], [], []>} : vector<256x4xf32>, vector<4x128xf32>, vector<256x128xf32> -> vector<256x128xf32>
    %23 = arith.addf %17, %22 : vector<256x128xf32>
    %c0_15 = arith.constant 0 : index
    %24 = arith.index_cast %1 : i32 to index
    %c1_16 = arith.constant 1 : index
    %c0_17 = arith.constant 0 : index
    %25 = vector.load %arg2[%c0_15, %24, %c1_16, %c0_17] : memref<1x18x24x4xf32, #tpu.memory_space<vmem>>, vector<1x18x16x4xf32>
    %26 = vector.shape_cast %25 : vector<1x18x16x4xf32> to vector<18x16x4xf32>
    %27 = vector.extract_strided_slice %26 {offsets = [0, 0, 0], sizes = [16, 16, 4], strides = [1, 1, 1]} : vector<18x16x4xf32> to vector<16x16x4xf32>
    %28 = vector.shape_cast %27 : vector<16x16x4xf32> to vector<256x4xf32>
    %c0_18 = arith.constant 0 : index
    %c1_19 = arith.constant 1 : index
    %c0_20 = arith.constant 0 : index
    %c0_21 = arith.constant 0 : index
    %29 = vector.load %arg3[%c0_18, %c1_19, %c0_20, %c0_21] : memref<3x3x4x128xf32, #tpu.memory_space<vmem>>, vector<1x1x4x128xf32>
    %30 = vector.shape_cast %29 : vector<1x1x4x128xf32> to vector<4x128xf32>
    %cst_22 = arith.constant dense<0.000000e+00> : vector<256x128xf32>
    %31 = tpu.matmul %28, %30, %cst_22 {dimension_numbers = #tpu.dot_dimension_numbers<[1], [0], [0], [1], [0, 0, 1, 1], [], []>} : vector<256x4xf32>, vector<4x128xf32>, vector<256x128xf32> -> vector<256x128xf32>
    %32 = arith.addf %23, %31 : vector<256x128xf32>
    %33 = vector.extract_strided_slice %26 {offsets = [1, 0, 0], sizes = [16, 16, 4], strides = [1, 1, 1]} : vector<18x16x4xf32> to vector<16x16x4xf32>
    %34 = vector.shape_cast %33 : vector<16x16x4xf32> to vector<256x4xf32>
    %c1_23 = arith.constant 1 : index
    %c1_24 = arith.constant 1 : index
    %c0_25 = arith.constant 0 : index
    %c0_26 = arith.constant 0 : index
    %35 = vector.load %arg3[%c1_23, %c1_24, %c0_25, %c0_26] : memref<3x3x4x128xf32, #tpu.memory_space<vmem>>, vector<1x1x4x128xf32>
    %36 = vector.shape_cast %35 : vector<1x1x4x128xf32> to vector<4x128xf32>
    %cst_27 = arith.constant dense<0.000000e+00> : vector<256x128xf32>
    %37 = tpu.matmul %34, %36, %cst_27 {dimension_numbers = #tpu.dot_dimension_numbers<[1], [0], [0], [1], [0, 0, 1, 1], [], []>} : vector<256x4xf32>, vector<4x128xf32>, vector<256x128xf32> -> vector<256x128xf32>
    %38 = arith.addf %32, %37 : vector<256x128xf32>
    %39 = vector.extract_strided_slice %26 {offsets = [2, 0, 0], sizes = [16, 16, 4], strides = [1, 1, 1]} : vector<18x16x4xf32> to vector<16x16x4xf32>
    %40 = vector.shape_cast %39 : vector<16x16x4xf32> to vector<256x4xf32>
    %c2_28 = arith.constant 2 : index
    %c1_29 = arith.constant 1 : index
    %c0_30 = arith.constant 0 : index
    %c0_31 = arith.constant 0 : index
    %41 = vector.load %arg3[%c2_28, %c1_29, %c0_30, %c0_31] : memref<3x3x4x128xf32, #tpu.memory_space<vmem>>, vector<1x1x4x128xf32>
    %42 = vector.shape_cast %41 : vector<1x1x4x128xf32> to vector<4x128xf32>
    %cst_32 = arith.constant dense<0.000000e+00> : vector<256x128xf32>
    %43 = tpu.matmul %40, %42, %cst_32 {dimension_numbers = #tpu.dot_dimension_numbers<[1], [0], [0], [1], [0, 0, 1, 1], [], []>} : vector<256x4xf32>, vector<4x128xf32>, vector<256x128xf32> -> vector<256x128xf32>
    %44 = arith.addf %38, %43 : vector<256x128xf32>
    %c0_33 = arith.constant 0 : index
    %45 = arith.index_cast %1 : i32 to index
    %c2_34 = arith.constant 2 : index
    %c0_35 = arith.constant 0 : index
    %46 = vector.load %arg2[%c0_33, %45, %c2_34, %c0_35] : memref<1x18x24x4xf32, #tpu.memory_space<vmem>>, vector<1x18x16x4xf32>
    %47 = vector.shape_cast %46 : vector<1x18x16x4xf32> to vector<18x16x4xf32>
    %48 = vector.extract_strided_slice %47 {offsets = [0, 0, 0], sizes = [16, 16, 4], strides = [1, 1, 1]} : vector<18x16x4xf32> to vector<16x16x4xf32>
    %49 = vector.shape_cast %48 : vector<16x16x4xf32> to vector<256x4xf32>
    %c0_36 = arith.constant 0 : index
    %c2_37 = arith.constant 2 : index
    %c0_38 = arith.constant 0 : index
    %c0_39 = arith.constant 0 : index
    %50 = vector.load %arg3[%c0_36, %c2_37, %c0_38, %c0_39] : memref<3x3x4x128xf32, #tpu.memory_space<vmem>>, vector<1x1x4x128xf32>
    %51 = vector.shape_cast %50 : vector<1x1x4x128xf32> to vector<4x128xf32>
    %cst_40 = arith.constant dense<0.000000e+00> : vector<256x128xf32>
    %52 = tpu.matmul %49, %51, %cst_40 {dimension_numbers = #tpu.dot_dimension_numbers<[1], [0], [0], [1], [0, 0, 1, 1], [], []>} : vector<256x4xf32>, vector<4x128xf32>, vector<256x128xf32> -> vector<256x128xf32>
    %53 = arith.addf %44, %52 : vector<256x128xf32>
    %54 = vector.extract_strided_slice %47 {offsets = [1, 0, 0], sizes = [16, 16, 4], strides = [1, 1, 1]} : vector<18x16x4xf32> to vector<16x16x4xf32>
    %55 = vector.shape_cast %54 : vector<16x16x4xf32> to vector<256x4xf32>
    %c1_41 = arith.constant 1 : index
    %c2_42 = arith.constant 2 : index
    %c0_43 = arith.constant 0 : index
    %c0_44 = arith.constant 0 : index
    %56 = vector.load %arg3[%c1_41, %c2_42, %c0_43, %c0_44] : memref<3x3x4x128xf32, #tpu.memory_space<vmem>>, vector<1x1x4x128xf32>
    %57 = vector.shape_cast %56 : vector<1x1x4x128xf32> to vector<4x128xf32>
    %cst_45 = arith.constant dense<0.000000e+00> : vector<256x128xf32>
    %58 = tpu.matmul %55, %57, %cst_45 {dimension_numbers = #tpu.dot_dimension_numbers<[1], [0], [0], [1], [0, 0, 1, 1], [], []>} : vector<256x4xf32>, vector<4x128xf32>, vector<256x128xf32> -> vector<256x128xf32>
    %59 = arith.addf %53, %58 : vector<256x128xf32>
    %60 = vector.extract_strided_slice %47 {offsets = [2, 0, 0], sizes = [16, 16, 4], strides = [1, 1, 1]} : vector<18x16x4xf32> to vector<16x16x4xf32>
    %61 = vector.shape_cast %60 : vector<16x16x4xf32> to vector<256x4xf32>
    %c2_46 = arith.constant 2 : index
    %c2_47 = arith.constant 2 : index
    %c0_48 = arith.constant 0 : index
    %c0_49 = arith.constant 0 : index
    %62 = vector.load %arg3[%c2_46, %c2_47, %c0_48, %c0_49] : memref<3x3x4x128xf32, #tpu.memory_space<vmem>>, vector<1x1x4x128xf32>
    %63 = vector.shape_cast %62 : vector<1x1x4x128xf32> to vector<4x128xf32>
    %cst_50 = arith.constant dense<0.000000e+00> : vector<256x128xf32>
    %64 = tpu.matmul %61, %63, %cst_50 {dimension_numbers = #tpu.dot_dimension_numbers<[1], [0], [0], [1], [0, 0, 1, 1], [], []>} : vector<256x4xf32>, vector<4x128xf32>, vector<256x128xf32> -> vector<256x128xf32>
    %65 = arith.addf %59, %64 : vector<256x128xf32>
    %c0_51 = arith.constant 0 : index
    %c0_52 = arith.constant 0 : index
    %66 = vector.load %arg4[%c0_51, %c0_52] : memref<1x128xf32, #tpu.memory_space<vmem>>, vector<1x128xf32>
    %67 = vector.broadcast %66 : vector<1x128xf32> to vector<256x128xf32>
    %68 = arith.addf %65, %67 : vector<256x128xf32>
    %c0_53 = arith.constant 0 : index
    %c0_54 = arith.constant 0 : index
    %c0_55 = arith.constant 0 : index
    %69 = vector.load %arg5[%c0_53, %c0_54, %c0_55] : memref<1x256x128xf32, #tpu.memory_space<vmem>>, vector<1x256x128xf32>
    %70 = vector.shape_cast %69 : vector<1x256x128xf32> to vector<256x128xf32>
    %71 = vector.shape_cast %68 : vector<256x128xf32> to vector<1x256x128xf32>
    tpu.vector_store %arg5[%c0_53, %c0_54, %c0_55], %71 {strides = array<i32>} : memref<1x256x128xf32, #tpu.memory_space<vmem>>, vector<1x256x128xf32>,
    return
  }
  func.func @transform_0(%arg0: i32, %arg1: i32) -> (i32, i32, i32, i32) {
    %c0_i32 = arith.constant 0 : i32
    %c0_i32_0 = arith.constant 0 : i32
    %c0_i32_1 = arith.constant 0 : i32
    %c0_i32_2 = arith.constant 0 : i32
    return %arg0, %c0_i32, %c0_i32_0, %c0_i32_1 : i32, i32, i32, i32
  }
  func.func @transform_1(%arg0: i32, %arg1: i32) -> (i32, i32, i32, i32) {
    %c0_i32 = arith.constant 0 : i32
    %c0_i32_0 = arith.constant 0 : i32
    %c0_i32_1 = arith.constant 0 : i32
    %c0_i32_2 = arith.constant 0 : i32
    %c0_i32_3 = arith.constant 0 : i32
    return %c0_i32, %c0_i32_0, %c0_i32_1, %c0_i32_2 : i32, i32, i32, i32
  }
  func.func @transform_2(%arg0: i32, %arg1: i32) -> (i32, i32) {
    %c0_i32 = arith.constant 0 : i32
    %c0_i32_0 = arith.constant 0 : i32
    %c0_i32_1 = arith.constant 0 : i32
    return %c0_i32, %c0_i32_0 : i32, i32
  }
  func.func @transform_3(%arg0: i32, %arg1: i32) -> (i32, i32, i32) {
    %c0_i32 = arith.constant 0 : i32
    %c0_i32_0 = arith.constant 0 : i32
    return %arg0, %arg1, %c0_i32 : i32, i32, i32
  }
}

</mosaic_0001>

<bundles_post_ra>
// kernel: tpu_custom_call.1
= control target key start
LH: loop header
LB: loop body
LE: loop exit
PB: predicated region body
PF: predicated region fallthrough
CT: control target
= control target key end

     0   :  { %8 = vsyncpa [#allocation3], 0  ;;  %s5694_s0 = inlined_call_operand.vmem [shape: f32[2,18,24,4], index: 0, kind: input, shape index: {}]   ;;  %s5695_s1 = inlined_call_operand.vmem [shape: f32[3,3,4,128], index: 1, kind: input, shape index: {}]   ;;  %s5696_s2 = inlined_call_operand.vmem [shape: f32[1,128], index: 2, kind: input, shape index: {}]   ;;  %s5697_s3 = inlined_call_operand.hbm [shape: f32[2,256,128], index: 3, kind: output, shape index: {}]  }
   0x1   :  { %10 = vsyncpa [#allocation3 + $0x1], 0  ;;  %s4561_s12 = smov 0   ;;  %s4563_s13 = smov 0  }
   0x2   :  { %s4565_s14 = smov 0   ;;  %s4567_s15 = smov 0  }
   0x3   :  { %s4569_s16 = smov 0   ;;  %s4571_s17 = smov 0  }
   0x4 LB: > { %s3076_s18 = sadd.s32 4294967295, %s4536_s17   ;;  %s3077_s19 = sadd.s32 4294967294, %s4536_s17   ;;  %s4536_s17 = sphi %s4571_s17, %s16_s17   ;;  %s4532_s16 = sphi %s4569_s16, %s5775_s16   ;;  %s4528_s15 = sphi %s4567_s15, %s5774_s15   ;;  %s4524_s14 = sphi %s4565_s14, %s5773_s14   ;;  %s4520_s13 = sphi %s4563_s13, %s5772_s13   ;;  %s4516_s12 = sphi %s4561_s12, %s5771_s12  }
   0x5   : > { %s28_s20 = sadd.s32 1, %s4532_s16  ;;  %s105_s21 = sadd.s32 1, %s4524_s14 }
   0x6   : > { %p30_p0 = scmp.ge.s32.totalorder %s28_s20, 2  ;;  %p115_p1 = scmp.ne.s32.totalorder %s4524_s14, %s4520_s13 }
   0x7   : > { %p116_p2 = scmp.eq.s32.totalorder %s3076_s18, 1  ;;  %p121_p3 = scmp.ne.s32.totalorder %s4520_s13, %s4516_s12 }
   0x8   : > { %s5777_s20 = smov (%p30_p0, %s28_s20), 0  ;;  %p122_p5 = scmp.eq.s32.totalorder %s3077_s19, 1 }
   0x9   : > { %p4601_p4 = por %p116_p2, %p115_p1  ;;  %s100_s23 = ssub.s32 %s4532_s16, %s5777_s20 }
   0xa   : > { %p3080_p6 = scmp.ge.s32.totalorder %s4536_s17, 1  ;;  %p103_p7 = scmp.eq.s32.totalorder %s100_s23, 0 }
   0xb   : > { %p4608_p8 = por %p122_p5, %p121_p3  ;;  %p154_p9 = scmp.lt.s32.totalorder %s4536_s17, 3 }
   0xc   : > { %s4614_s25 = scalar_select %p103_p7, %s4524_s14, %s105_s21  }
   0xd   : > { %p155_p10 = pnand %p3080_p6, %p154_p9 }
   0xf   : > { %158 = sbr.rel (%p155_p10) target bundleno = 548 (0x224), region = 32 }
  0x16   : > { %v3083_v0 = vld [vmem:[%s5695_s1 + $0xc] sm:$0xf]  ;;  %vm323_vm0 = vcmask 1043456   ;;  %v4622_v1 = vld [vmem:[%s5695_s1 + $0x10] sm:$0xf]  ;;  %p178_p11 = scmp.lt.s32.totalorder %s4528_s15, 1 }
  0x17   : > { %3692 = vmatprep.subr.msk.mxu1 %vm323_vm0, %v3083_v0  ;;  %3892 = vmatprep.subr.msk.mxu0 %vm323_vm0, %v4622_v1  ;;  %v223_v2 = vld [vmem:[%s5695_s1] sm:$0xf]  ;;  %v3252_v3 = vld [vmem:[%s5695_s1 + $0x1c] sm:$0xf]  ;;  %vm226_vm1 = vcmask 31744   ;;  %s175_s5 = sand.u32 1, %s4520_s13  }
  0x18   : > { %3693 = vmatpush3.msk.msra.mxu1 %vm323_vm0, %v3083_v0  ;;  %3893 = vmatpush3.msk.msra.mxu0 %vm323_vm0, %v4622_v1  ;;  %s179_s7 = scalar_select %p178_p11, %s4528_s15, 1  ;;  %v4674_v10 = vld [vmem:[%s5695_s1 + $0x8] sm:$0xf]  ;;  %v4679_v11 = vld [vmem:[%s5695_s1 + $0x18] sm:$0xf] }
  0x19   : > { %3742 = vmatprep.subr.msk.mxu1 %vm323_vm0, %v223_v2  ;;  %3942 = vmatprep.subr.msk.mxu0 %vm323_vm0, %v3252_v3  ;;  %v4837_v41 = vld [vmem:[%s5695_s1 + $0x14] sm:$0xf]  ;;  %v4965_v62 = vld [vmem:[%s5695_s1 + $0x4] sm:$0xf]  ;;  %s3081_s6 = sshll.u32 %s175_s5, 8  ;;  %s3394_s10 = sshll.u32 %s4528_s15, 12 }
  0x1a   : > { %s4400_s8 = smul.u32 432, %s179_s7  ;;  %s5572_s9 = scalar_lea.vmem [#allocation2], %s3081_s6 }
  0x1b   : > { %s5639_s21 = scalar_lea.hbm %s5697_s3, %s3394_s10  ;;  %s5648_s15 = scalar_lea.sflag [#allocation3], %s175_s5 }
  0x1c   : > { %s4643_s11 = scalar_lea.vmem %s5694_s0, %s4400_s8  ;;  %s4538_s26 = smov [#allocation2]  }
  0x1d   : > { %v4646_v4 = vld [vmem:[%s4643_s11 + $0x18] sm:$0xff]  ;;  %v4652_v6 = vld [vmem:[%s4643_s11 + $0x20] sm:$0xff]  ;;  %v4662_v8 = vld [vmem:[%s4643_s11 + $0x30] sm:$0xff]  ;;  %s4462_s27 = sshll.u32 %s4538_s26, 4  ;;  %s4463_s27 = int_to_ptr.vmem [resolvable:$false] %s4462_s27 }
  0x1e   : > { %v4649_v5 = vld [vmem:[%s4643_s11 + $0x19] sm:$0xff]  ;;  %3694 = vmatprep.mubr.msk.f32.mxu1 %vm226_vm1, %v4646_v4  ;;  %v4659_v7 = vld [vmem:[%s4643_s11 + $0x21] sm:$0xff]  ;;  %v4665_v9 = vld [vmem:[%s4643_s11 + $0x31] sm:$0xff]  ;;  %s4464_s28 = scalar_lea.vmem %s4463_s27, 8192 }
  0x1f   : > { %3894 = vmatprep.mubr.msk.f32.mxu0 %vm226_vm1, %v4649_v5  ;;  %3695 = vmatmul.mubr.msk.f32.vlgmr.msra.gmra.mrb[0].mxu1 %vm226_vm1, %v4652_v6  ;;  %v4684_v12 = vld [vmem:[%s4643_s11 + $0x38] sm:$0xff]  ;;  %v4694_v14 = vld [vmem:[%s4643_s11 + $0x48] sm:$0xff]  ;;  %v4712_v16 = vld [vmem:[%s4643_s11 + $0x50] sm:$0xff] }
  0x20   : > { %3895 = vmatmul.mubr.msk.f32.vlgmr.msra.gmra.mrb[0].mxu0 %vm226_vm1, %v4659_v7  ;;  %3743 = vmatpush3.msk.msra.mxu1 %vm323_vm0, %v223_v2  ;;  %v4687_v13 = vld [vmem:[%s4643_s11 + $0x39] sm:$0xff]  ;;  %v4697_v15 = vld [vmem:[%s4643_s11 + $0x49] sm:$0xff]  ;;  %v4715_v17 = vld [vmem:[%s4643_s11 + $0x51] sm:$0xff] }
  0x21   : > { %3943 = vmatpush3.msk.msra.mxu0 %vm323_vm0, %v3252_v3  ;;  %3697 = vmatprep.mubr.msk.f32.mxu1 %vm226_vm1, %v4662_v8  ;;  %v4718_v18 = vld [vmem:[%s4643_s11 + $0x60] sm:$0xff]  ;;  %v4732_v20 = vld [vmem:[%s4643_s11 + $0x68] sm:$0xff]  ;;  %v4738_v22 = vld [vmem:[%s4643_s11 + $0x78] sm:$0xff] }
  0x22   : > { %3897 = vmatprep.mubr.msk.f32.mxu0 %vm226_vm1, %v4665_v9  ;;  %3992 = vmatprep.subr.msk.mxu0 %vm323_vm0, %v4674_v10  ;;  %v4721_v19 = vld [vmem:[%s4643_s11 + $0x61] sm:$0xff]  ;;  %v4735_v21 = vld [vmem:[%s4643_s11 + $0x69] sm:$0xff]  ;;  %v4741_v23 = vld [vmem:[%s4643_s11 + $0x79] sm:$0xff] }
  0x23   : > { %3792 = vmatprep.subr.msk.mxu1 %vm323_vm0, %v4679_v11  ;;  %3698 = vmatmul.mubr.msk.f32.gmra.mrb[2].mxu1 %vm226_vm1, %v4684_v12  ;;  %v4752_v24 = vld [vmem:[%s4643_s11 + $0x80] sm:$0xff]  ;;  %v4758_v26 = vld [vmem:[%s4643_s11 + $0x90] sm:$0xff]  ;;  %v4772_v28 = vld [vmem:[%s4643_s11 + $0x98] sm:$0xff] }
  0x24   : > { %3898 = vmatmul.mubr.msk.f32.gmra.mrb[2].mxu0 %vm226_vm1, %v4687_v13  ;;  %3700 = vmatprep.mubr.msk.f32.mxu1 %vm226_vm1, %v4694_v14  ;;  %v4755_v25 = vld [vmem:[%s4643_s11 + $0x81] sm:$0xff]  ;;  %v4761_v27 = vld [vmem:[%s4643_s11 + $0x91] sm:$0xff]  ;;  %v4775_v29 = vld [vmem:[%s4643_s11 + $0x99] sm:$0xff] }
  0x25   : > { %3900 = vmatprep.mubr.msk.f32.mxu0 %vm226_vm1, %v4697_v15  ;;  %v4778_v30 = vld [vmem:[%s4643_s11 + $0xa8] sm:$0xff]  ;;  %v4792_v32 = vld [vmem:[%s4643_s11 + $0xb0] sm:$0xff]  ;;  %v4798_v34 = vld [vmem:[%s4643_s11 + $0xc0] sm:$0xff] }
  0x26   : > { %v4781_v31 = vld [vmem:[%s4643_s11 + $0xa9] sm:$0xff]  ;;  %v4795_v33 = vld [vmem:[%s4643_s11 + $0xb1] sm:$0xff]  ;;  %v4801_v35 = vld [vmem:[%s4643_s11 + $0xc1] sm:$0xff] }
  0x27   : > { %3701 = vmatmul.mubr.msk.f32.gmra.mrb[4].mxu1 %vm226_vm1, %v4712_v16  ;;  %5733 = vst [vmem:[#allocation5_spill] sm:$0xff] %v4795_v33  ;;  %5734 = vst [vmem:[#allocation6_spill] sm:$0xff] %v4801_v35  ;;  %v4812_v36 = vld [vmem:[%s4643_s11 + $0xc8] sm:$0xff]  ;;  %v4818_v38 = vld [vmem:[%s4643_s11 + $0xd8] sm:$0xff] }
  0x28   : > { %3901 = vmatmul.mubr.msk.f32.gmra.mrb[4].mxu0 %vm226_vm1, %v4715_v17  ;;  %3703 = vmatprep.mubr.msk.f32.mxu1 %vm226_vm1, %v4718_v18  ;;  %v4815_v37 = vld [vmem:[%s4643_s11 + $0xc9] sm:$0xff]  ;;  %v4829_v39 = vld [vmem:[%s4643_s11 + $0xe0] sm:$0xff]  ;;  %v4848_v42 = vld [vmem:[%s4643_s11 + $0xf8] sm:$0xff] }
  0x29   : > { %3903 = vmatprep.mubr.msk.f32.mxu0 %vm226_vm1, %v4721_v19  ;;  %5735 = vst [vmem:[#allocation7_spill] sm:$0xff] %v4815_v37  ;;  %v4832_v40 = vld [vmem:[%s4643_s11 + $0xf0] sm:$0xff]  ;;  %v4853_v43 = vld [vmem:[%s4643_s11 + $0x108] sm:$0xff]  ;;  %v4869_v45 = vld [vmem:[%s4643_s11 + $0x120] sm:$0xff] }
  0x2a   : > { %v4866_v44 = vld [vmem:[%s4643_s11 + $0x110] sm:$0xff]  ;;  %v4880_v46 = vld [vmem:[%s4643_s11 + $0x128] sm:$0xff]  ;;  %v4883_v47 = vld [vmem:[%s4643_s11 + $0x138] sm:$0xff] }
  0x2b   : > { %3704 = vmatmul.mubr.msk.f32.gmra.mrb[6].mxu1 %vm226_vm1, %v4732_v20  ;;  %v4894_v48 = vld [vmem:[%s4643_s11 + $0x140] sm:$0xff]  ;;  %v4897_v49 = vld [vmem:[%s4643_s11 + $0x150] sm:$0xff]  ;;  %v4908_v50 = vld [vmem:[%s4643_s11 + $0x158] sm:$0xff] }
  0x2c   : > { %3904 = vmatmul.mubr.msk.f32.gmra.mrb[6].mxu0 %vm226_vm1, %v4735_v21  ;;  %3706 = vmatprep.mubr.msk.f32.mxu1 %vm226_vm1, %v4738_v22  ;;  %v4911_v51 = vld [vmem:[%s4643_s11 + $0x168] sm:$0xff]  ;;  %v4922_v52 = vld [vmem:[%s4643_s11 + $0x170] sm:$0xff]  ;;  %v4925_v53 = vld [vmem:[%s4643_s11 + $0x180] sm:$0xff] }
  0x2d   : > { %3906 = vmatprep.mubr.msk.f32.mxu0 %vm226_vm1, %v4741_v23  ;;  %v4928_v54 = vld [vmem:[%s4643_s11 + $0xd9] sm:$0xff]  ;;  %v4939_v55 = vld [vmem:[%s4643_s11 + $0x188] sm:$0xff]  ;;  %v4946_v58 = vld [vmem:[%s4643_s11 + $0xf1] sm:$0xff] }
  0x2e   : > { %5736 = vst [vmem:[#allocation8_spill] sm:$0xff] %v4928_v54  ;;  %v4942_v56 = vld [vmem:[%s4643_s11 + $0xe1] sm:$0xff]  ;;  %5738 = vst [vmem:[#allocation10_spill] sm:$0xff] %v4946_v58  ;;  %v4957_v60 = vld [vmem:[%s4643_s11 + $0xf9] sm:$0xff] }
  0x2f   : > { %3707 = vmatmul.mubr.msk.f32.gmra.mrb[8].mxu1 %vm226_vm1, %v4752_v24  ;;  %5737 = vst [vmem:[#allocation9_spill] sm:$0xff] %v4942_v56  ;;  %v187_v57 = vld [vmem:[%s4643_s11] sm:$0xff]  ;;  %v188_v59 = vld [vmem:[%s4643_s11 + $0x8] sm:$0xff]  ;;  %5739 = vst [vmem:[#allocation11_spill] sm:$0xff] %v4957_v60 }
  0x30   : > { %3907 = vmatmul.mubr.msk.f32.gmra.mrb[8].mxu0 %vm226_vm1, %v4755_v25  ;;  %3709 = vmatprep.mubr.msk.f32.mxu1 %vm226_vm1, %v4758_v26  ;;  %v4960_v61 = vld [vmem:[%s4643_s11 + $0x109] sm:$0xff]  ;;  %v4975_v63 = vld [vmem:[%s4643_s11 + $0x111] sm:$0xff]  ;;  %v4980_v0 = vld [vmem:[%s4643_s11 + $0x121] sm:$0xff] }
  0x31   : > { %3909 = vmatprep.mubr.msk.f32.mxu0 %vm226_vm1, %v4761_v27  ;;  %5740 = vst [vmem:[#allocation12_spill] sm:$0xff] %v4960_v61  ;;  %5741 = vst [vmem:[#allocation13_spill] sm:$0xff] %v4975_v63  ;;  %v4993_v2 = vld [vmem:[%s4643_s11 + $0x129] sm:$0xff]  ;;  %v4996_v3 = vld [vmem:[%s4643_s11 + $0x139] sm:$0xff] }
  0x32   : > { %5742 = vst [vmem:[#allocation14_spill] sm:$0xff] %v4980_v0  ;;  %5743 = vst [vmem:[#allocation15_spill] sm:$0xff] %v4993_v2 }
  0x33   : > { %3710 = vmatmul.mubr.msk.f32.gmra.mrb[10].mxu1 %vm226_vm1, %v4772_v28  ;;  %5744 = vst [vmem:[#allocation16_spill] sm:$0xff] %v4996_v3 }
  0x34   : > { %3910 = vmatmul.mubr.msk.f32.gmra.mrb[10].mxu0 %vm226_vm1, %v4775_v29  ;;  %3712 = vmatprep.mubr.msk.f32.mxu1 %vm226_vm1, %v4778_v30 }
  0x35   : > { %3912 = vmatprep.mubr.msk.f32.mxu0 %vm226_vm1, %v4781_v31 }
  0x37   : > { %3713 = vmatmul.mubr.msk.f32.gmra.mrb[12].mxu1 %vm226_vm1, %v4792_v32 }
  0x38   : > { %3913 = vmatmul.mubr.msk.f32.gmra.mrb[12].mxu0 %vm226_vm1, %v4795_v33  ;;  %3715 = vmatprep.mubr.msk.f32.mxu1 %vm226_vm1, %v4798_v34 }
  0x39   : > { %3915 = vmatprep.mubr.msk.f32.mxu0 %vm226_vm1, %v4801_v35 }
  0x3b   : > { %3716 = vmatmul.mubr.msk.f32.gmra.mrb[14].mxu1 %vm226_vm1, %v4812_v36 }
  0x3c   : > { %3916 = vmatmul.mubr.msk.f32.gmra.mrb[14].mxu0 %vm226_vm1, %v4815_v37  ;;  %3718 = vmatprep.mubr.msk.f32.mxu1 %vm226_vm1, %v4818_v38 }
  0x3d   : > { %3944 = vmatprep.mubr.msk.f32.mxu0 %vm226_vm1, %v4665_v9 }
  0x3f   : > { %3719 = vmatmul.mubr.msk.f32.gmra.mrb[16].mxu1 %vm226_vm1, %v4829_v39 }
  0x40   : > { %3945 = vmatmul.mubr.msk.f32.vlgmr.msra.gmra.mrb[0].mxu0 %vm226_vm1, %v4687_v13  ;;  %3721 = vmatprep.mubr.msk.f32.mxu1 %vm226_vm1, %v4832_v40 }
  0x41   : > { %3993 = vmatpush3.msk.msra.mxu0 %vm323_vm0, %v4674_v10  ;;  %3947 = vmatprep.mubr.msk.f32.mxu0 %vm226_vm1, %v4697_v15  ;;  %v5021_v10 = vld [vmem:[%s4643_s11 + $0x159] sm:$0xff] }
  0x42   : > { %4042 = vmatprep.subr.msk.mxu0 %vm323_vm0, %v4837_v41  ;;  %5747 = vst [vmem:[#allocation19_spill] sm:$0xff] %v5021_v10 }
  0x43   : > { %3722 = vmatmul.mubr.msk.f32.gmra.mrb[18].mxu1 %vm226_vm1, %v4848_v42 }
  0x44   : > { %3948 = vmatmul.mubr.msk.f32.gmra.mrb[2].mxu0 %vm226_vm1, %v4715_v17  ;;  %3724 = vmatprep.mubr.msk.f32.mxu1 %vm226_vm1, %v4853_v43 }
  0x45   : > { %3950 = vmatprep.mubr.msk.f32.mxu0 %vm226_vm1, %v4721_v19 }
  0x47   : > { %3725 = vmatmul.mubr.msk.f32.gmra.mrb[20].mxu1 %vm226_vm1, %v4866_v44 }
  0x48   : > { %3951 = vmatmul.mubr.msk.f32.gmra.mrb[4].mxu0 %vm226_vm1, %v4735_v21  ;;  %3727 = vmatprep.mubr.msk.f32.mxu1 %vm226_vm1, %v4869_v45 }
  0x49   : > { %3953 = vmatprep.mubr.msk.f32.mxu0 %vm226_vm1, %v4741_v23 }
  0x4b   : > { %3728 = vmatmul.mubr.msk.f32.gmra.mrb[22].mxu1 %vm226_vm1, %v4880_v46 }
  0x4c   : > { %3954 = vmatmul.mubr.msk.f32.gmra.mrb[6].mxu0 %vm226_vm1, %v4755_v25  ;;  %3730 = vmatprep.mubr.msk.f32.mxu1 %vm226_vm1, %v4883_v47 }
  0x4d   : > { %3956 = vmatprep.mubr.msk.f32.mxu0 %vm226_vm1, %v4761_v27 }
  0x4f   : > { %3731 = vmatmul.mubr.msk.f32.gmra.mrb[24].mxu1 %vm226_vm1, %v4894_v48 }
  0x50   : > { %3957 = vmatmul.mubr.msk.f32.gmra.mrb[8].mxu0 %vm226_vm1, %v4775_v29  ;;  %3733 = vmatprep.mubr.msk.f32.mxu1 %vm226_vm1, %v4897_v49 }
  0x51   : > { %3959 = vmatprep.mubr.msk.f32.mxu0 %vm226_vm1, %v4781_v31 }
  0x53   : > { %3734 = vmatmul.mubr.msk.f32.gmra.mrb[26].mxu1 %vm226_vm1, %v4908_v50 }
  0x54   : > { %3960 = vmatmul.mubr.msk.f32.gmra.mrb[10].mxu0 %vm226_vm1, %v4795_v33  ;;  %3736 = vmatprep.mubr.msk.f32.mxu1 %vm226_vm1, %v4911_v51  ;;  %v5205_v33 = vld [vmem:[%s4643_s11 + $0xf2] sm:$0xff] }
  0x55   : > { %3962 = vmatprep.mubr.msk.f32.mxu0 %vm226_vm1, %v4801_v35  ;;  %v5189_v35 = vld [vmem:[%s4643_s11 + $0xda] sm:$0xff] }
  0x57   : > { %3737 = vmatmul.mubr.msk.f32.gmra.mrb[28].mxu1 %vm226_vm1, %v4922_v52 }
  0x58   : > { %3963 = vmatmul.mubr.msk.f32.gmra.mrb[12].mxu0 %vm226_vm1, %v4815_v37  ;;  %3739 = vmatprep.mubr.msk.f32.mxu1 %vm226_vm1, %v4925_v53  ;;  %v5186_v37 = vld [vmem:[%s4643_s11 + $0xca] sm:$0xff] }
  0x59   : > { %3965 = vmatprep.mubr.msk.f32.mxu0 %vm226_vm1, %v4928_v54  ;;  %v5175_v54 = vld [vmem:[%s4643_s11 + $0xc2] sm:$0xff] }
  0x5b   : > { %3740 = vmatmul.mubr.msk.f32.gmra.mrb[30].mxu1 %vm226_vm1, %v4939_v55 }
  0x5c   : > { %3966 = vmatmul.mubr.msk.f32.gmra.mrb[14].mxu0 %vm226_vm1, %v4942_v56  ;;  %3744 = vmatprep.mubr.msk.f32.mxu1 %vm226_vm1, %v187_v57  ;;  %v5035_v57 = vld [vmem:[%s4643_s11 + $0x171] sm:$0xff] }
  0x5d   : > { %3968 = vmatprep.mubr.msk.f32.mxu0 %vm226_vm1, %v4946_v58  ;;  %5749 = vst [vmem:[#allocation21_spill] sm:$0xff] %v5035_v57  ;;  %v5161_v58 = vld [vmem:[%s4643_s11 + $0xaa] sm:$0xff]  ;;  %v5172_v56 = vld [vmem:[%s4643_s11 + $0xb2] sm:$0xff] }
  0x5f   : > { %3745 = vmatmul.mubr.msk.f32.vlgmr.msra.gmra.mrb[0].mxu1 %vm226_vm1, %v188_v59  ;;  %v5038_v59 = vld [vmem:[%s4643_s11 + $0x181] sm:$0xff] }
  0x60   : > { %3969 = vmatmul.mubr.msk.f32.gmra.mrb[16].mxu0 %vm226_vm1, %v4957_v60  ;;  %3793 = vmatpush3.msk.msra.mxu1 %vm323_vm0, %v4679_v11  ;;  %v5024_v11 = vld [vmem:[%s4643_s11 + $0x169] sm:$0xff]  ;;  %5750 = vst [vmem:[#allocation22_spill] sm:$0xff] %v5038_v59  ;;  %v5158_v60 = vld [vmem:[%s4643_s11 + $0x9a] sm:$0xff] }
  0x61   : > { %3747 = vmatprep.mubr.msk.f32.mxu1 %vm226_vm1, %v4646_v4  ;;  %3971 = vmatprep.mubr.msk.f32.mxu0 %vm226_vm1, %v4960_v61  ;;  %v5007_v4 = vld [vmem:[%s4643_s11 + $0x141] sm:$0xff]  ;;  %5748 = vst [vmem:[#allocation20_spill] sm:$0xff] %v5024_v11  ;;  %v5147_v61 = vld [vmem:[%s4643_s11 + $0x92] sm:$0xff] }
  0x62   : > { %3842 = vmatprep.subr.msk.mxu1 %vm323_vm0, %v4965_v62  ;;  %5745 = vst [vmem:[#allocation17_spill] sm:$0xff] %v5007_v4 }
  0x63   : > { %3748 = vmatmul.mubr.msk.f32.gmra.mrb[2].mxu1 %vm226_vm1, %v4652_v6  ;;  %v5010_v6 = vld [vmem:[%s4643_s11 + $0x151] sm:$0xff] }
  0x64   : > { %3972 = vmatmul.mubr.msk.f32.gmra.mrb[18].mxu0 %vm226_vm1, %v4975_v63  ;;  %3750 = vmatprep.mubr.msk.f32.mxu1 %vm226_vm1, %v4662_v8  ;;  %5746 = vst [vmem:[#allocation18_spill] sm:$0xff] %v5010_v6  ;;  %v5144_v63 = vld [vmem:[%s4643_s11 + $0x82] sm:$0xff] }
  0x65   : > { %3974 = vmatprep.mubr.msk.f32.mxu0 %vm226_vm1, %v4980_v0  ;;  %v5133_v0 = vld [vmem:[%s4643_s11 + $0x7a] sm:$0xff] }
  0x67   : > { %3751 = vmatmul.mubr.msk.f32.gmra.mrb[4].mxu1 %vm226_vm1, %v4684_v12 }
  0x68   : > { %3975 = vmatmul.mubr.msk.f32.gmra.mrb[20].mxu0 %vm226_vm1, %v4993_v2  ;;  %3753 = vmatprep.mubr.msk.f32.mxu1 %vm226_vm1, %v4694_v14  ;;  %v5130_v2 = vld [vmem:[%s4643_s11 + $0x6a] sm:$0xff] }
  0x69   : > { %3977 = vmatprep.mubr.msk.f32.mxu0 %vm226_vm1, %v4996_v3  ;;  %v5119_v3 = vld [vmem:[%s4643_s11 + $0x62] sm:$0xff] }
  0x6b   : > { %3754 = vmatmul.mubr.msk.f32.gmra.mrb[6].mxu1 %vm226_vm1, %v4712_v16 }
  0x6c   : > { %3978 = vmatmul.mubr.msk.f32.gmra.mrb[22].mxu0 %vm226_vm1, %v5007_v4  ;;  %3756 = vmatprep.mubr.msk.f32.mxu1 %vm226_vm1, %v4718_v18  ;;  %v5116_v4 = vld [vmem:[%s4643_s11 + $0x52] sm:$0xff] }
  0x6d   : > { %3980 = vmatprep.mubr.msk.f32.mxu0 %vm226_vm1, %v5010_v6  ;;  %v1984_v6 = vld [vmem:[%s4643_s11 + $0x2] sm:$0xff] }
  0x6f   : > { %3757 = vmatmul.mubr.msk.f32.gmra.mrb[8].mxu1 %vm226_vm1, %v4732_v20 }
  0x70   : > { %3981 = vmatmul.mubr.msk.f32.gmra.mrb[24].mxu0 %vm226_vm1, %v5021_v10  ;;  %3759 = vmatprep.mubr.msk.f32.mxu1 %vm226_vm1, %v4738_v22  ;;  %v5049_v10 = vld [vmem:[%s4643_s11 + $0x189] sm:$0xff] }
  0x71   : > { %3983 = vmatprep.mubr.msk.f32.mxu0 %vm226_vm1, %v5024_v11  ;;  %5751 = vst [vmem:[#allocation23_spill] sm:$0xff] %v5049_v10  ;;  %v1088_v11 = vld [vmem:[%s4643_s11 + $0x199] sm:$0xff] }
  0x73   : > { %3760 = vmatmul.mubr.msk.f32.gmra.mrb[10].mxu1 %vm226_vm1, %v4752_v24 }
  0x74   : > { %3984 = vmatmul.mubr.msk.f32.gmra.mrb[26].mxu0 %vm226_vm1, %v5035_v57  ;;  %3762 = vmatprep.mubr.msk.f32.mxu1 %vm226_vm1, %v4758_v26  ;;  %v1089_v57 = vld [vmem:[%s4643_s11 + $0x1a1] sm:$0xff] }
  0x75   : > { %3986 = vmatprep.mubr.msk.f32.mxu0 %vm226_vm1, %v5038_v59  ;;  %v5069_v59 = vld [vmem:[%s4643_s11 + $0x1a] sm:$0xff] }
  0x77   : > { %3763 = vmatmul.mubr.msk.f32.gmra.mrb[12].mxu1 %vm226_vm1, %v4772_v28 }
  0x78   : > { %3987 = vmatmul.mubr.msk.f32.gmra.mrb[28].mxu0 %vm226_vm1, %v5049_v10  ;;  %3765 = vmatprep.mubr.msk.f32.mxu1 %vm226_vm1, %v4778_v30  ;;  %v1985_v10 = vld [vmem:[%s4643_s11 + $0xa] sm:$0xff] }
  0x79   : > { %3989 = vmatprep.mubr.msk.f32.mxu0 %vm226_vm1, %v1088_v11  ;;  %v5074_v11 = vld [vmem:[%s5695_s1 + $0x20] sm:$0xf] }
  0x7b   : > { %3766 = vmatmul.mubr.msk.f32.gmra.mrb[14].mxu1 %vm226_vm1, %v4792_v32 }
  0x7c   : > { %3990 = vmatmul.mubr.msk.f32.gmra.mrb[30].mxu0 %vm226_vm1, %v1089_v57  ;;  %3768 = vmatprep.mubr.msk.f32.mxu1 %vm226_vm1, %v4798_v34  ;;  %v5089_v57 = vld [vmem:[%s4643_s11 + $0x32] sm:$0xff] }
  0x7d   : > { %3994 = vmatprep.mubr.msk.f32.mxu0 %vm226_vm1, %v1984_v6  ;;  %v5084_v6 = vld [vmem:[%s4643_s11 + $0x22] sm:$0xff] }
  0x7f   : > { %3769 = vmatmul.mubr.msk.f32.gmra.mrb[16].mxu1 %vm226_vm1, %v4812_v36 }
  0x80   : > { %3995 = vmatmul.mubr.msk.f32.vlgmr.msra.gmra.mrb[0].mxu0 %vm226_vm1, %v1985_v10  ;;  %3771 = vmatprep.mubr.msk.f32.mxu1 %vm226_vm1, %v4818_v38  ;;  %v5105_v10 = vld [vmem:[%s4643_s11 + $0x4a] sm:$0xff] }
  0x81   : > { %4043 = vmatpush3.msk.msra.mxu0 %vm323_vm0, %v4837_v41  ;;  %3997 = vmatprep.mubr.msk.f32.mxu0 %vm226_vm1, %v5069_v59  ;;  %v5102_v41 = vld [vmem:[%s4643_s11 + $0x3a] sm:$0xff] }
  0x82   : > { %4092 = vmatprep.subr.msk.mxu0 %vm323_vm0, %v5074_v11 }
  0x83   : > { %3772 = vmatmul.mubr.msk.f32.gmra.mrb[18].mxu1 %vm226_vm1, %v4829_v39 }
  0x84   : > { %3998 = vmatmul.mubr.msk.f32.gmra.mrb[2].mxu0 %vm226_vm1, %v5084_v6  ;;  %3774 = vmatprep.mubr.msk.f32.mxu1 %vm226_vm1, %v4832_v40 }
  0x85   : > { %4000 = vmatprep.mubr.msk.f32.mxu0 %vm226_vm1, %v5089_v57 }
  0x87   : > { %3775 = vmatmul.mubr.msk.f32.gmra.mrb[20].mxu1 %vm226_vm1, %v4848_v42 }
  0x88   : > { %4001 = vmatmul.mubr.msk.f32.gmra.mrb[4].mxu0 %vm226_vm1, %v5102_v41  ;;  %3777 = vmatprep.mubr.msk.f32.mxu1 %vm226_vm1, %v4853_v43 }
  0x89   : > { %4003 = vmatprep.mubr.msk.f32.mxu0 %vm226_vm1, %v5105_v10 }
  0x8b   : > { %3778 = vmatmul.mubr.msk.f32.gmra.mrb[22].mxu1 %vm226_vm1, %v4866_v44 }
  0x8c   : > { %4004 = vmatmul.mubr.msk.f32.gmra.mrb[6].mxu0 %vm226_vm1, %v5116_v4  ;;  %3780 = vmatprep.mubr.msk.f32.mxu1 %vm226_vm1, %v4869_v45 }
  0x8d   : > { %4006 = vmatprep.mubr.msk.f32.mxu0 %vm226_vm1, %v5119_v3 }
  0x8f   : > { %3781 = vmatmul.mubr.msk.f32.gmra.mrb[24].mxu1 %vm226_vm1, %v4880_v46 }
  0x90   : > { %4007 = vmatmul.mubr.msk.f32.gmra.mrb[8].mxu0 %vm226_vm1, %v5130_v2  ;;  %3783 = vmatprep.mubr.msk.f32.mxu1 %vm226_vm1, %v4883_v47 }
  0x91   : > { %4009 = vmatprep.mubr.msk.f32.mxu0 %vm226_vm1, %v5133_v0 }
  0x93   : > { %3784 = vmatmul.mubr.msk.f32.gmra.mrb[26].mxu1 %vm226_vm1, %v4894_v48 }
  0x94   : > { %4010 = vmatmul.mubr.msk.f32.gmra.mrb[10].mxu0 %vm226_vm1, %v5144_v63  ;;  %3786 = vmatprep.mubr.msk.f32.mxu1 %vm226_vm1, %v4897_v49 }
  0x95   : > { %4012 = vmatprep.mubr.msk.f32.mxu0 %vm226_vm1, %v5147_v61 }
  0x97   : > { %3787 = vmatmul.mubr.msk.f32.gmra.mrb[28].mxu1 %vm226_vm1, %v4908_v50 }
  0x98   : > { %4013 = vmatmul.mubr.msk.f32.gmra.mrb[12].mxu0 %vm226_vm1, %v5158_v60  ;;  %3789 = vmatprep.mubr.msk.f32.mxu1 %vm226_vm1, %v4911_v51 }
  0x99   : > { %4015 = vmatprep.mubr.msk.f32.mxu0 %vm226_vm1, %v5161_v58 }
  0x9b   : > { %3790 = vmatmul.mubr.msk.f32.gmra.mrb[30].mxu1 %vm226_vm1, %v4922_v52 }
  0x9c   : > { %4016 = vmatmul.mubr.msk.f32.gmra.mrb[14].mxu0 %vm226_vm1, %v5172_v56  ;;  %3794 = vmatprep.mubr.msk.f32.mxu1 %vm226_vm1, %v4662_v8  ;;  %v5200_v8 = vld [vmem:[%s4643_s11 + $0xe2] sm:$0xff] }
  0x9d   : > { %4018 = vmatprep.mubr.msk.f32.mxu0 %vm226_vm1, %v5175_v54 }
  0x9f   : > { %3795 = vmatmul.mubr.msk.f32.vlgmr.msra.gmra.mrb[0].mxu1 %vm226_vm1, %v4684_v12  ;;  %v5218_v12 = vld [vmem:[%s4643_s11 + $0xfa] sm:$0xff] }
  0xa0   : > { %4019 = vmatmul.mubr.msk.f32.gmra.mrb[16].mxu0 %vm226_vm1, %v5186_v37  ;;  %3843 = vmatpush3.msk.msra.mxu1 %vm323_vm0, %v4965_v62 }
  0xa1   : > { %3797 = vmatprep.mubr.msk.f32.mxu1 %vm226_vm1, %v4694_v14  ;;  %4021 = vmatprep.mubr.msk.f32.mxu0 %vm226_vm1, %v5189_v35  ;;  %v5221_v14 = vld [vmem:[%s4643_s11 + $0x10a] sm:$0xff] }
  0xa2   : > { %4142 = vmatprep.subr.msk.mxu1 %vm323_vm0, %v4622_v1 }
  0xa3   : > { %3798 = vmatmul.mubr.msk.f32.gmra.mrb[2].mxu1 %vm226_vm1, %v4712_v16  ;;  %v5232_v16 = vld [vmem:[%s4643_s11 + $0x112] sm:$0xff] }
  0xa4   : > { %4022 = vmatmul.mubr.msk.f32.gmra.mrb[18].mxu0 %vm226_vm1, %v5200_v8  ;;  %3800 = vmatprep.mubr.msk.f32.mxu1 %vm226_vm1, %v4718_v18  ;;  %v5235_v18 = vld [vmem:[%s4643_s11 + $0x122] sm:$0xff] }
  0xa5   : > { %4024 = vmatprep.mubr.msk.f32.mxu0 %vm226_vm1, %v5205_v33 }
  0xa7   : > { %3801 = vmatmul.mubr.msk.f32.gmra.mrb[4].mxu1 %vm226_vm1, %v4732_v20  ;;  %v5246_v20 = vld [vmem:[%s4643_s11 + $0x12a] sm:$0xff] }
  0xa8   : > { %4025 = vmatmul.mubr.msk.f32.gmra.mrb[20].mxu0 %vm226_vm1, %v5218_v12  ;;  %3803 = vmatprep.mubr.msk.f32.mxu1 %vm226_vm1, %v4738_v22  ;;  %v5249_v22 = vld [vmem:[%s4643_s11 + $0x13a] sm:$0xff] }
  0xa9   : > { %4027 = vmatprep.mubr.msk.f32.mxu0 %vm226_vm1, %v5221_v14 }
  0xab   : > { %3804 = vmatmul.mubr.msk.f32.gmra.mrb[6].mxu1 %vm226_vm1, %v4752_v24  ;;  %v5260_v24 = vld [vmem:[%s4643_s11 + $0x142] sm:$0xff] }
  0xac   : > { %4028 = vmatmul.mubr.msk.f32.gmra.mrb[22].mxu0 %vm226_vm1, %v5232_v16  ;;  %3806 = vmatprep.mubr.msk.f32.mxu1 %vm226_vm1, %v4758_v26  ;;  %v5263_v26 = vld [vmem:[%s4643_s11 + $0x152] sm:$0xff] }
  0xad   : > { %4030 = vmatprep.mubr.msk.f32.mxu0 %vm226_vm1, %v5235_v18 }
  0xaf   : > { %3807 = vmatmul.mubr.msk.f32.gmra.mrb[8].mxu1 %vm226_vm1, %v4772_v28  ;;  %v5274_v28 = vld [vmem:[%s4643_s11 + $0x15a] sm:$0xff] }
  0xb0   : > { %4031 = vmatmul.mubr.msk.f32.gmra.mrb[24].mxu0 %vm226_vm1, %v5246_v20  ;;  %3809 = vmatprep.mubr.msk.f32.mxu1 %vm226_vm1, %v4778_v30  ;;  %v5277_v30 = vld [vmem:[%s4643_s11 + $0x16a] sm:$0xff] }
  0xb1   : > { %4033 = vmatprep.mubr.msk.f32.mxu0 %vm226_vm1, %v5249_v22 }
  0xb3   : > { %3810 = vmatmul.mubr.msk.f32.gmra.mrb[10].mxu1 %vm226_vm1, %v4792_v32  ;;  %v5288_v32 = vld [vmem:[%s4643_s11 + $0x172] sm:$0xff] }
  0xb4   : > { %4034 = vmatmul.mubr.msk.f32.gmra.mrb[26].mxu0 %vm226_vm1, %v5260_v24  ;;  %3812 = vmatprep.mubr.msk.f32.mxu1 %vm226_vm1, %v4798_v34  ;;  %v221_v34 = vld [vmem:[%s4643_s11 + $0x198] sm:$0xff] }
  0xb5   : > { %4036 = vmatprep.mubr.msk.f32.mxu0 %vm226_vm1, %v5263_v26 }
  0xb7   : > { %3813 = vmatmul.mubr.msk.f32.gmra.mrb[12].mxu1 %vm226_vm1, %v4812_v36  ;;  %v222_v36 = vld [vmem:[%s4643_s11 + $0x1a0] sm:$0xff] }
  0xb8   : > { %4037 = vmatmul.mubr.msk.f32.gmra.mrb[28].mxu0 %vm226_vm1, %v5274_v28  ;;  %3815 = vmatprep.mubr.msk.f32.mxu1 %vm226_vm1, %v4818_v38  ;;  %v1054_v38 = vld [vmem:[%s4643_s11 + $0x1] sm:$0xff] }
  0xb9   : > { %4039 = vmatprep.mubr.msk.f32.mxu0 %vm226_vm1, %v5277_v30 }
  0xbb   : > { %3816 = vmatmul.mubr.msk.f32.gmra.mrb[14].mxu1 %vm226_vm1, %v4829_v39  ;;  %v1055_v39 = vld [vmem:[%s4643_s11 + $0x9] sm:$0xff] }
  0xbc   : > { %4040 = vmatmul.mubr.msk.f32.gmra.mrb[30].mxu0 %vm226_vm1, %v5288_v32  ;;  %3818 = vmatprep.mubr.msk.f32.mxu1 %vm226_vm1, %v4832_v40  ;;  %v5764_v40 = vld [vmem:[#allocation17_spill] sm:$0xff] }
  0xbd   : > { %4044 = vmatprep.mubr.msk.f32.mxu0 %vm226_vm1, %v5069_v59 }
  0xbf   : > { %3819 = vmatmul.mubr.msk.f32.gmra.mrb[16].mxu1 %vm226_vm1, %v4848_v42  ;;  %v5765_v42 = vld [vmem:[#allocation18_spill] sm:$0xff] }
  0xc0   : > { %4045 = vmatmul.mubr.msk.f32.vlgmr.msra.gmra.mrb[0].mxu0 %vm226_vm1, %v5084_v6  ;;  %3821 = vmatprep.mubr.msk.f32.mxu1 %vm226_vm1, %v4853_v43  ;;  %v5766_v43 = vld [vmem:[#allocation19_spill] sm:$0xff] }
  0xc1   : > { %4093 = vmatpush3.msk.msra.mxu0 %vm323_vm0, %v5074_v11  ;;  %4047 = vmatprep.mubr.msk.f32.mxu0 %vm226_vm1, %v5089_v57 }
  0xc3   : > { %3822 = vmatmul.mubr.msk.f32.gmra.mrb[18].mxu1 %vm226_vm1, %v4866_v44  ;;  %v5767_v44 = vld [vmem:[#allocation20_spill] sm:$0xff] }
  0xc4   : > { %4048 = vmatmul.mubr.msk.f32.gmra.mrb[2].mxu0 %vm226_vm1, %v5102_v41  ;;  %3824 = vmatprep.mubr.msk.f32.mxu1 %vm226_vm1, %v4869_v45  ;;  %v5768_v45 = vld [vmem:[#allocation21_spill] sm:$0xff] }
  0xc5   : > { %4050 = vmatprep.mubr.msk.f32.mxu0 %vm226_vm1, %v5105_v10 }
  0xc7   : > { %3825 = vmatmul.mubr.msk.f32.gmra.mrb[20].mxu1 %vm226_vm1, %v4880_v46  ;;  %v5770_v46 = vld [vmem:[#allocation23_spill] sm:$0xff] }
  0xc8   : > { %4051 = vmatmul.mubr.msk.f32.gmra.mrb[4].mxu0 %vm226_vm1, %v5116_v4  ;;  %3827 = vmatprep.mubr.msk.f32.mxu1 %vm226_vm1, %v4883_v47 }
  0xc9   : > { %4053 = vmatprep.mubr.msk.f32.mxu0 %vm226_vm1, %v5119_v3 }
  0xcb   : > { %3828 = vmatmul.mubr.msk.f32.gmra.mrb[22].mxu1 %vm226_vm1, %v4894_v48 }
  0xcc   : > { %4054 = vmatmul.mubr.msk.f32.gmra.mrb[6].mxu0 %vm226_vm1, %v5130_v2  ;;  %3830 = vmatprep.mubr.msk.f32.mxu1 %vm226_vm1, %v4897_v49 }
  0xcd   : > { %4056 = vmatprep.mubr.msk.f32.mxu0 %vm226_vm1, %v5133_v0 }
  0xcf   : > { %3831 = vmatmul.mubr.msk.f32.gmra.mrb[24].mxu1 %vm226_vm1, %v4908_v50 }
  0xd0   : > { %4057 = vmatmul.mubr.msk.f32.gmra.mrb[8].mxu0 %vm226_vm1, %v5144_v63  ;;  %3833 = vmatprep.mubr.msk.f32.mxu1 %vm226_vm1, %v4911_v51 }
  0xd1   : > { %4059 = vmatprep.mubr.msk.f32.mxu0 %vm226_vm1, %v5147_v61 }
  0xd3   : > { %3834 = vmatmul.mubr.msk.f32.gmra.mrb[26].mxu1 %vm226_vm1, %v4922_v52 }
  0xd4   : > { %4060 = vmatmul.mubr.msk.f32.gmra.mrb[10].mxu0 %vm226_vm1, %v5158_v60  ;;  %3836 = vmatprep.mubr.msk.f32.mxu1 %vm226_vm1, %v4925_v53 }
  0xd5   : > { %4062 = vmatprep.mubr.msk.f32.mxu0 %vm226_vm1, %v5161_v58 }
  0xd7   : > { %3837 = vmatmul.mubr.msk.f32.gmra.mrb[28].mxu1 %vm226_vm1, %v4939_v55 }
  0xd8   : > { %4063 = vmatmul.mubr.msk.f32.gmra.mrb[12].mxu0 %vm226_vm1, %v5172_v56  ;;  %3839 = vmatprep.mubr.msk.f32.mxu1 %vm226_vm1, %v221_v34 }
  0xd9   : > { %4065 = vmatprep.mubr.msk.f32.mxu0 %vm226_vm1, %v5175_v54 }
  0xdb   : > { %3840 = vmatmul.mubr.msk.f32.gmra.mrb[30].mxu1 %vm226_vm1, %v222_v36 }
  0xdc   : > { %4066 = vmatmul.mubr.msk.f32.gmra.mrb[14].mxu0 %vm226_vm1, %v5186_v37  ;;  %3844 = vmatprep.mubr.msk.f32.mxu1 %vm226_vm1, %v1054_v38 }
  0xdd   : > { %4068 = vmatprep.mubr.msk.f32.mxu0 %vm226_vm1, %v5189_v35 }
  0xdf   : > { %3845 = vmatmul.mubr.msk.f32.vlgmr.msra.gmra.mrb[0].mxu1 %vm226_vm1, %v1055_v39 }
  0xe0   : > { %4069 = vmatmul.mubr.msk.f32.gmra.mrb[16].mxu0 %vm226_vm1, %v5200_v8  ;;  %4143 = vmatpush3.msk.msra.mxu1 %vm323_vm0, %v4622_v1  ;;  %v5415_v1 = vld [vmem:[%s4643_s11 + $0x182] sm:$0xff] }
  0xe1   : > { %3847 = vmatprep.mubr.msk.f32.mxu1 %vm226_vm1, %v4649_v5  ;;  %4071 = vmatprep.mubr.msk.f32.mxu0 %vm226_vm1, %v5205_v33  ;;  %v5426_v5 = vld [vmem:[%s4643_s11 + $0x18a] sm:$0xff] }
  0xe3   : > { %3848 = vmatmul.mubr.msk.f32.gmra.mrb[2].mxu1 %vm226_vm1, %v4659_v7  ;;  %v5752_v7 = vld [vmem:[#allocation5_spill] sm:$0xff] }
  0xe4   : > { %4072 = vmatmul.mubr.msk.f32.gmra.mrb[18].mxu0 %vm226_vm1, %v5218_v12  ;;  %3850 = vmatprep.mubr.msk.f32.mxu1 %vm226_vm1, %v4665_v9  ;;  %v5753_v9 = vld [vmem:[#allocation6_spill] sm:$0xff] }
  0xe5   : > { %4074 = vmatprep.mubr.msk.f32.mxu0 %vm226_vm1, %v5221_v14 }
  0xe7   : > { %3851 = vmatmul.mubr.msk.f32.gmra.mrb[4].mxu1 %vm226_vm1, %v4687_v13  ;;  %v5754_v13 = vld [vmem:[#allocation7_spill] sm:$0xff] }
  0xe8   : > { %4075 = vmatmul.mubr.msk.f32.gmra.mrb[20].mxu0 %vm226_vm1, %v5232_v16  ;;  %3853 = vmatprep.mubr.msk.f32.mxu1 %vm226_vm1, %v4697_v15  ;;  %v5755_v15 = vld [vmem:[#allocation8_spill] sm:$0xff] }
  0xe9   : > { %4077 = vmatprep.mubr.msk.f32.mxu0 %vm226_vm1, %v5235_v18 }
  0xeb   : > { %3854 = vmatmul.mubr.msk.f32.gmra.mrb[6].mxu1 %vm226_vm1, %v4715_v17  ;;  %v5756_v17 = vld [vmem:[#allocation9_spill] sm:$0xff] }
  0xec   : > { %4078 = vmatmul.mubr.msk.f32.gmra.mrb[22].mxu0 %vm226_vm1, %v5246_v20  ;;  %3856 = vmatprep.mubr.msk.f32.mxu1 %vm226_vm1, %v4721_v19  ;;  %v5757_v19 = vld [vmem:[#allocation10_spill] sm:$0xff] }
  0xed   : > { %4080 = vmatprep.mubr.msk.f32.mxu0 %vm226_vm1, %v5249_v22 }
  0xef   : > { %3857 = vmatmul.mubr.msk.f32.gmra.mrb[8].mxu1 %vm226_vm1, %v4735_v21  ;;  %v5758_v21 = vld [vmem:[#allocation11_spill] sm:$0xff] }
  0xf0   : > { %4081 = vmatmul.mubr.msk.f32.gmra.mrb[24].mxu0 %vm226_vm1, %v5260_v24  ;;  %3859 = vmatprep.mubr.msk.f32.mxu1 %vm226_vm1, %v4741_v23  ;;  %v5759_v23 = vld [vmem:[#allocation12_spill] sm:$0xff] }
  0xf1   : > { %4083 = vmatprep.mubr.msk.f32.mxu0 %vm226_vm1, %v5263_v26 }
  0xf3   : > { %3860 = vmatmul.mubr.msk.f32.gmra.mrb[10].mxu1 %vm226_vm1, %v4755_v25  ;;  %v5760_v25 = vld [vmem:[#allocation13_spill] sm:$0xff] }
  0xf4   : > { %4084 = vmatmul.mubr.msk.f32.gmra.mrb[26].mxu0 %vm226_vm1, %v5274_v28  ;;  %3862 = vmatprep.mubr.msk.f32.mxu1 %vm226_vm1, %v4761_v27  ;;  %v5761_v27 = vld [vmem:[#allocation14_spill] sm:$0xff] }
  0xf5   : > { %4086 = vmatprep.mubr.msk.f32.mxu0 %vm226_vm1, %v5277_v30 }
  0xf7   : > { %3863 = vmatmul.mubr.msk.f32.gmra.mrb[12].mxu1 %vm226_vm1, %v4775_v29  ;;  %v5762_v29 = vld [vmem:[#allocation15_spill] sm:$0xff] }
  0xf8   : > { %4087 = vmatmul.mubr.msk.f32.gmra.mrb[28].mxu0 %vm226_vm1, %v5288_v32  ;;  %3865 = vmatprep.mubr.msk.f32.mxu1 %vm226_vm1, %v4781_v31  ;;  %v5763_v31 = vld [vmem:[#allocation16_spill] sm:$0xff] }
  0xf9   : > { %4089 = vmatprep.mubr.msk.f32.mxu0 %vm226_vm1, %v5415_v1 }
  0xfb   : > { %3866 = vmatmul.mubr.msk.f32.gmra.mrb[14].mxu1 %vm226_vm1, %v5752_v7 }
  0xfc   : > { %4090 = vmatmul.mubr.msk.f32.gmra.mrb[30].mxu0 %vm226_vm1, %v5426_v5  ;;  %3868 = vmatprep.mubr.msk.f32.mxu1 %vm226_vm1, %v5753_v9 }
  0xfd   : > { %4094 = vmatprep.mubr.msk.f32.mxu0 %vm226_vm1, %v5089_v57 }
  0xff   : > { %3869 = vmatmul.mubr.msk.f32.gmra.mrb[16].mxu1 %vm226_vm1, %v5754_v13 }
 0x100   : > { %4095 = vmatmul.mubr.msk.f32.vlgmr.msra.gmra.mrb[0].mxu0 %vm226_vm1, %v5102_v41  ;;  %3871 = vmatprep.mubr.msk.f32.mxu1 %vm226_vm1, %v5755_v15 }
 0x101   : > { %4097 = vmatprep.mubr.msk.f32.mxu0 %vm226_vm1, %v5105_v10 }
 0x103   : > { %3872 = vmatmul.mubr.msk.f32.gmra.mrb[18].mxu1 %vm226_vm1, %v5756_v17 }
 0x104   : > { %4098 = vmatmul.mubr.msk.f32.gmra.mrb[2].mxu0 %vm226_vm1, %v5116_v4  ;;  %3874 = vmatprep.mubr.msk.f32.mxu1 %vm226_vm1, %v5757_v19 }
 0x105   : > { %4100 = vmatprep.mubr.msk.f32.mxu0 %vm226_vm1, %v5119_v3  ;;  %v5568_v3 = vld [vmem:[%s5696_s2] ss:$0 sm:$0xff] }
 0x107   : > { %3875 = vmatmul.mubr.msk.f32.gmra.mrb[20].mxu1 %vm226_vm1, %v5758_v21 }
 0x108   : > { %4101 = vmatmul.mubr.msk.f32.gmra.mrb[4].mxu0 %vm226_vm1, %v5130_v2  ;;  %3877 = vmatprep.mubr.msk.f32.mxu1 %vm226_vm1, %v5759_v23 }
 0x109   : > { %4103 = vmatprep.mubr.msk.f32.mxu0 %vm226_vm1, %v5133_v0 }
 0x10b   : > { %3878 = vmatmul.mubr.msk.f32.gmra.mrb[22].mxu1 %vm226_vm1, %v5760_v25 }
 0x10c   : > { %4104 = vmatmul.mubr.msk.f32.gmra.mrb[6].mxu0 %vm226_vm1, %v5144_v63  ;;  %3880 = vmatprep.mubr.msk.f32.mxu1 %vm226_vm1, %v5761_v27 }
 0x10d   : > { %4106 = vmatprep.mubr.msk.f32.mxu0 %vm226_vm1, %v5147_v61 }
 0x10f   : > { %3881 = vmatmul.mubr.msk.f32.gmra.mrb[24].mxu1 %vm226_vm1, %v5762_v29 }
 0x110   : > { %4107 = vmatmul.mubr.msk.f32.gmra.mrb[8].mxu0 %vm226_vm1, %v5158_v60  ;;  %3883 = vmatprep.mubr.msk.f32.mxu1 %vm226_vm1, %v5763_v31 }
 0x111   : > { %4109 = vmatprep.mubr.msk.f32.mxu0 %vm226_vm1, %v5161_v58 }
 0x113   : > { %3884 = vmatmul.mubr.msk.f32.gmra.mrb[26].mxu1 %vm226_vm1, %v5764_v40 }
 0x114   : > { %4110 = vmatmul.mubr.msk.f32.gmra.mrb[10].mxu0 %vm226_vm1, %v5172_v56  ;;  %3886 = vmatprep.mubr.msk.f32.mxu1 %vm226_vm1, %v5765_v42 }
 0x115   : > { %4112 = vmatprep.mubr.msk.f32.mxu0 %vm226_vm1, %v5175_v54 }
 0x117   : > { %3887 = vmatmul.mubr.msk.f32.gmra.mrb[28].mxu1 %vm226_vm1, %v5766_v43 }
 0x118   : > { %4113 = vmatmul.mubr.msk.f32.gmra.mrb[12].mxu0 %vm226_vm1, %v5186_v37  ;;  %3889 = vmatprep.mubr.msk.f32.mxu1 %vm226_vm1, %v5767_v44  ;;  %v2019_v37 = vld [vmem:[%s4643_s11 + $0x1a2] sm:$0xff] }
 0x119   : > { %4115 = vmatprep.mubr.msk.f32.mxu0 %vm226_vm1, %v5189_v35  ;;  %v5769_v35 = vld [vmem:[#allocation22_spill] sm:$0xff] }
 0x11b   : > { %3890 = vmatmul.mubr.msk.f32.gmra.mrb[30].mxu1 %vm226_vm1, %v5768_v45 }
 0x11c   : > { %4116 = vmatmul.mubr.msk.f32.gmra.mrb[14].mxu0 %vm226_vm1, %v5200_v8  ;;  %3918 = vmatprep.mubr.msk.f32.mxu1 %vm226_vm1, %v5755_v15 }
 0x11d   : > { %4118 = vmatprep.mubr.msk.f32.mxu0 %vm226_vm1, %v5205_v33  ;;  %v2018_v33 = vld [vmem:[%s4643_s11 + $0x19a] sm:$0xff]  ;;  %s3001_s11 = sshll.u32 %s5572_s9, 4  ;;  %s5641_s11 = int_to_ptr.vmem [resolvable:$true] %s3001_s11 }
 0x11e   : > { %s4458_s23 = scalar_lea.vmem %s5641_s11, 4096  ;;  %p4465_p1 = scmp.lt.s32.totalorder %s5641_s11, %s4463_s27 }
 0x11f   : > { %3919 = vmatmul.mubr.msk.f32.vlgmr.msra.gmra.mrb[16].mxu1 %vm226_vm1, %v5756_v17  ;;  %p4459_p12 = scmp.ne.s32.totalorder %s5641_s11, %s4458_s23  ;;  %p4466_p2 = scmp.lt.s32.totalorder %s4464_s28, %s4458_s23 }
 0x120   : > { %4119 = vmatmul.mubr.msk.f32.gmra.mrb[16].mxu0 %vm226_vm1, %v5218_v12  ;;  %3921 = vmatprep.mubr.msk.f32.mxu1 %vm226_vm1, %v5757_v19 }
 0x121   : > { %4121 = vmatprep.mubr.msk.f32.mxu0 %vm226_vm1, %v5221_v14  ;;  %p4460_p13 = pnand %p4459_p12, %p4601_p4  ;;  %p4467_p3 = por %p4466_p2, %p4465_p1 }
 0x123   : > { %3922 = vmatmul.mubr.msk.f32.gmra.mrb[18].mxu1 %vm226_vm1, %v5758_v21  ;;  %p4461_p0 = pneg %p4460_p13 }
 0x124   : > { %4122 = vmatmul.mubr.msk.f32.gmra.mrb[18].mxu0 %vm226_vm1, %v5232_v16  ;;  %3924 = vmatprep.mubr.msk.f32.mxu1 %vm226_vm1, %v5759_v23 }
 0x125   : > { %4124 = vmatprep.mubr.msk.f32.mxu0 %vm226_vm1, %v5235_v18  ;;  %p4468_p5 = pnand %p4467_p3, %p4461_p0 }
 0x127   : > { %3925 = vmatmul.mubr.msk.f32.gmra.mrb[20].mxu1 %vm226_vm1, %v5760_v25 }
 0x128   : > { %4125 = vmatmul.mubr.msk.f32.gmra.mrb[20].mxu0 %vm226_vm1, %v5246_v20  ;;  %3927 = vmatprep.mubr.msk.f32.mxu1 %vm226_vm1, %v5761_v27 }
 0x129   : > { %4127 = vmatprep.mubr.msk.f32.mxu0 %vm226_vm1, %v5249_v22 }
 0x12b   : > { %3928 = vmatmul.mubr.msk.f32.gmra.mrb[22].mxu1 %vm226_vm1, %v5762_v29 }
 0x12c   : > { %4128 = vmatmul.mubr.msk.f32.gmra.mrb[22].mxu0 %vm226_vm1, %v5260_v24  ;;  %3930 = vmatprep.mubr.msk.f32.mxu1 %vm226_vm1, %v5763_v31 }
 0x12d   : > { %4130 = vmatprep.mubr.msk.f32.mxu0 %vm226_vm1, %v5263_v26 }
 0x12f   : > { %3931 = vmatmul.mubr.msk.f32.gmra.mrb[24].mxu1 %vm226_vm1, %v5764_v40 }
 0x130   : > { %4131 = vmatmul.mubr.msk.f32.gmra.mrb[24].mxu0 %vm226_vm1, %v5274_v28  ;;  %3933 = vmatprep.mubr.msk.f32.mxu1 %vm226_vm1, %v5765_v42 }
 0x131   : > { %4133 = vmatprep.mubr.msk.f32.mxu0 %vm226_vm1, %v5277_v30 }
 0x133   : > { %3934 = vmatmul.mubr.msk.f32.gmra.mrb[26].mxu1 %vm226_vm1, %v5766_v43 }
 0x134   : > { %4134 = vmatmul.mubr.msk.f32.gmra.mrb[26].mxu0 %vm226_vm1, %v5288_v32  ;;  %3936 = vmatprep.mubr.msk.f32.mxu1 %vm226_vm1, %v5767_v44 }
 0x135   : > { %4136 = vmatprep.mubr.msk.f32.mxu0 %vm226_vm1, %v5415_v1 }
 0x137   : > { %3937 = vmatmul.mubr.msk.f32.gmra.mrb[28].mxu1 %vm226_vm1, %v5768_v45 }
 0x138   : > { %4137 = vmatmul.mubr.msk.f32.gmra.mrb[28].mxu0 %vm226_vm1, %v5426_v5  ;;  %3939 = vmatprep.mubr.msk.f32.mxu1 %vm226_vm1, %v5769_v35 }
 0x139   : > { %4139 = vmatprep.mubr.msk.f32.mxu0 %vm226_vm1, %v2018_v33 }
 0x13b   : > { %3940 = vmatmul.mubr.msk.f32.gmra.mrb[30].mxu1 %vm226_vm1, %v5770_v46 }
 0x13c   : > { %4140 = vmatmul.mubr.msk.f32.gmra.mrb[30].mxu0 %vm226_vm1, %v2019_v37 }
 0x1b2   : > { %v3846_v47 = vpop.f32.mrb[0].mxu1 }
 0x1b3   : > { %v1257_v48 = vpop.f32.mrb[1].mxu1 }
 0x1b6   : > { %v3849_v49 = vpop.f32.mrb[2].mxu1 }
 0x1b7   : > { %v1267_v50 = vpop.f32.mrb[3].mxu1 }
 0x1ba   : > { %v3852_v51 = vpop.f32.mrb[4].mxu1 }
 0x1bb   : > { %v1277_v52 = vpop.f32.mrb[5].mxu1 }
 0x1be   : > { %v3855_v53 = vpop.f32.mrb[6].mxu1 }
 0x1bf   : > { %v1287_v54 = vpop.f32.mrb[7].mxu1 }
 0x1c2   : > { %v3858_v55 = vpop.f32.mrb[8].mxu1 }
 0x1c3   : > { %v1297_v56 = vpop.f32.mrb[9].mxu1 }
 0x1c6   : > { %v3861_v58 = vpop.f32.mrb[10].mxu1 }
 0x1c7   : > { %v1307_v60 = vpop.f32.mrb[11].mxu1 }
 0x1ca   : > { %v3864_v61 = vpop.f32.mrb[12].mxu1 }
 0x1cb   : > { %v1317_v62 = vpop.f32.mrb[13].mxu1 }
 0x1ce   : > { %v3867_v63 = vpop.f32.mrb[14].mxu1 }
 0x1cf   : > { %v5561_v0 = vpop.f32.mrb[15].mxu1 }
 0x1d3   : > { %v4096_v2 = vpop.f32.mrb[0].mxu0 }
 0x1d4   : > { %v4144_v4 = vadd.f32 %v4096_v2, %v3846_v47  ;;  %v2723_v59 = vpop.f32.mrb[1].mxu0 }
 0x1d5   : > { %v4145_v11 = vadd.f32 %v2723_v59, %v1257_v48 }
 0x1d6   : > { %v2922_v6 = vadd.f32 %v4144_v4, %v5568_v3 }
 0x1d7   : > { %v2921_v57 = vadd.f32 %v4145_v11, %v5568_v3  ;;  %v4099_v41 = vpop.f32.mrb[2].mxu0 }
 0x1d8   : > { %2954 = vst [vmem:[%s5572_s9 + $0x8] sm:$0xff] %v2922_v6  ;;  %v4146_v10 = vadd.f32 %v4099_v41, %v3849_v49  ;;  %v2733_v8 = vpop.f32.mrb[3].mxu0 }
 0x1d9   : > { %2953 = vst [vmem:[%s5572_s9] sm:$0xff] %v2921_v57  ;;  %v4147_v12 = vadd.f32 %v2733_v8, %v1267_v50 }
 0x1da   : > { %v2924_v14 = vadd.f32 %v4146_v10, %v5568_v3 }
 0x1db   : > { %v2923_v16 = vadd.f32 %v4147_v12, %v5568_v3  ;;  %v4102_v18 = vpop.f32.mrb[4].mxu0 }
 0x1dc   : > { %2956 = vst [vmem:[%s5572_s9 + $0x18] sm:$0xff] %v2924_v14  ;;  %v4148_v20 = vadd.f32 %v4102_v18, %v3852_v51  ;;  %v2743_v22 = vpop.f32.mrb[5].mxu0 }
 0x1dd   : > { %2955 = vst [vmem:[%s5572_s9 + $0x10] sm:$0xff] %v2923_v16  ;;  %v4149_v24 = vadd.f32 %v2743_v22, %v1277_v52 }
 0x1de   : > { %v2926_v26 = vadd.f32 %v4148_v20, %v5568_v3 }
 0x1df   : > { %v2925_v28 = vadd.f32 %v4149_v24, %v5568_v3  ;;  %v4105_v30 = vpop.f32.mrb[6].mxu0 }
 0x1e0   : > { %2958 = vst [vmem:[%s5572_s9 + $0x28] sm:$0xff] %v2926_v26  ;;  %v4150_v32 = vadd.f32 %v4105_v30, %v3855_v53  ;;  %v2753_v34 = vpop.f32.mrb[7].mxu0 }
 0x1e1   : > { %2957 = vst [vmem:[%s5572_s9 + $0x20] sm:$0xff] %v2925_v28  ;;  %v4151_v36 = vadd.f32 %v2753_v34, %v1287_v54 }
 0x1e2   : > { %v2928_v38 = vadd.f32 %v4150_v32, %v5568_v3 }
 0x1e3   : > { %v2927_v39 = vadd.f32 %v4151_v36, %v5568_v3  ;;  %v4108_v1 = vpop.f32.mrb[8].mxu0 }
 0x1e4   : > { %2960 = vst [vmem:[%s5572_s9 + $0x38] sm:$0xff] %v2928_v38  ;;  %v4152_v5 = vadd.f32 %v4108_v1, %v3858_v55  ;;  %v2763_v7 = vpop.f32.mrb[9].mxu0 }
 0x1e5   : > { %2959 = vst [vmem:[%s5572_s9 + $0x30] sm:$0xff] %v2927_v39  ;;  %v4153_v9 = vadd.f32 %v2763_v7, %v1297_v56 }
 0x1e6   : > { %v2930_v13 = vadd.f32 %v4152_v5, %v5568_v3 }
 0x1e7   : > { %v2929_v15 = vadd.f32 %v4153_v9, %v5568_v3  ;;  %v4111_v17 = vpop.f32.mrb[10].mxu0 }
 0x1e8   : > { %2962 = vst [vmem:[%s5572_s9 + $0x48] sm:$0xff] %v2930_v13  ;;  %v4154_v19 = vadd.f32 %v4111_v17, %v3861_v58  ;;  %v2773_v21 = vpop.f32.mrb[11].mxu0 }
 0x1e9   : > { %2961 = vst [vmem:[%s5572_s9 + $0x40] sm:$0xff] %v2929_v15  ;;  %v4155_v23 = vadd.f32 %v2773_v21, %v1307_v60 }
 0x1ea   : > { %v2932_v25 = vadd.f32 %v4154_v19, %v5568_v3 }
 0x1eb   : > { %v2931_v27 = vadd.f32 %v4155_v23, %v5568_v3  ;;  %v4114_v29 = vpop.f32.mrb[12].mxu0 }
 0x1ec   : > { %2964 = vst [vmem:[%s5572_s9 + $0x58] sm:$0xff] %v2932_v25  ;;  %v4156_v31 = vadd.f32 %v4114_v29, %v3864_v61  ;;  %v2783_v40 = vpop.f32.mrb[13].mxu0 }
 0x1ed   : > { %2963 = vst [vmem:[%s5572_s9 + $0x50] sm:$0xff] %v2931_v27  ;;  %v4157_v42 = vadd.f32 %v2783_v40, %v1317_v62 }
 0x1ee   : > { %v2934_v43 = vadd.f32 %v4156_v31, %v5568_v3 }
 0x1ef   : > { %v2933_v44 = vadd.f32 %v4157_v42, %v5568_v3  ;;  %v4117_v45 = vpop.f32.mrb[14].mxu0 }
 0x1f0   : > { %2966 = vst [vmem:[%s5572_s9 + $0x68] sm:$0xff] %v2934_v43  ;;  %v4158_v33 = vadd.f32 %v4117_v45, %v3867_v63  ;;  %v2793_v35 = vpop.f32.mrb[15].mxu0 }
 0x1f1   : > { %2965 = vst [vmem:[%s5572_s9 + $0x60] sm:$0xff] %v2933_v44  ;;  %v4159_v37 = vadd.f32 %v2793_v35, %v5561_v0 }
 0x1f2   : > { %v2936_v46 = vadd.f32 %v4158_v33, %v5568_v3  ;;  %v3920_v48 = vpop.f32.mrb[16].mxu1 }
 0x1f3   : > { %v2935_v47 = vadd.f32 %v4159_v37, %v5568_v3  ;;  %v4120_v49 = vpop.f32.mrb[16].mxu0  ;;  %v1605_v51 = vpop.f32.mrb[17].mxu1 }
 0x1f4   : > { %2968 = vst [vmem:[%s5572_s9 + $0x78] sm:$0xff] %v2936_v46  ;;  %v4160_v50 = vadd.f32 %v4120_v49, %v3920_v48  ;;  %v2803_v52 = vpop.f32.mrb[17].mxu0 }
 0x1f5   : > { %2967 = vst [vmem:[%s5572_s9 + $0x70] sm:$0xff] %v2935_v47  ;;  %v4161_v53 = vadd.f32 %v2803_v52, %v1605_v51 }
 0x1f6   : > { %v2938_v54 = vadd.f32 %v4160_v50, %v5568_v3  ;;  %v3923_v56 = vpop.f32.mrb[18].mxu1 }
 0x1f7   : > { %v2937_v55 = vadd.f32 %v4161_v53, %v5568_v3  ;;  %v4123_v58 = vpop.f32.mrb[18].mxu0  ;;  %v1615_v61 = vpop.f32.mrb[19].mxu1 }
 0x1f8   : > { %2970 = vst [vmem:[%s5572_s9 + $0x88] sm:$0xff] %v2938_v54  ;;  %v4162_v60 = vadd.f32 %v4123_v58, %v3923_v56  ;;  %v2813_v62 = vpop.f32.mrb[19].mxu0 }
 0x1f9   : > { %2969 = vst [vmem:[%s5572_s9 + $0x80] sm:$0xff] %v2937_v55  ;;  %v4163_v63 = vadd.f32 %v2813_v62, %v1615_v61 }
 0x1fa   : > { %v2940_v0 = vadd.f32 %v4162_v60, %v5568_v3  ;;  %v3926_v4 = vpop.f32.mrb[20].mxu1 }
 0x1fb   : > { %v2939_v2 = vadd.f32 %v4163_v63, %v5568_v3  ;;  %v4126_v59 = vpop.f32.mrb[20].mxu0  ;;  %v1625_v6 = vpop.f32.mrb[21].mxu1 }
 0x1fc   : > { %2972 = vst [vmem:[%s5572_s9 + $0x98] sm:$0xff] %v2940_v0  ;;  %v4164_v11 = vadd.f32 %v4126_v59, %v3926_v4  ;;  %v2823_v57 = vpop.f32.mrb[21].mxu0 }
 0x1fd   : > { %2971 = vst [vmem:[%s5572_s9 + $0x90] sm:$0xff] %v2939_v2  ;;  %v4165_v41 = vadd.f32 %v2823_v57, %v1625_v6 }
 0x1fe   : > { %v2942_v10 = vadd.f32 %v4164_v11, %v5568_v3  ;;  %v3929_v12 = vpop.f32.mrb[22].mxu1 }
 0x1ff   : > { %v2941_v8 = vadd.f32 %v4165_v41, %v5568_v3  ;;  %v4129_v14 = vpop.f32.mrb[22].mxu0  ;;  %v1635_v18 = vpop.f32.mrb[23].mxu1 }
 0x200   : > { %2974 = vst [vmem:[%s5572_s9 + $0xa8] sm:$0xff] %v2942_v10  ;;  %v4166_v16 = vadd.f32 %v4129_v14, %v3929_v12  ;;  %v2833_v20 = vpop.f32.mrb[23].mxu0 }
 0x201   : > { %2973 = vst [vmem:[%s5572_s9 + $0xa0] sm:$0xff] %v2941_v8  ;;  %v4167_v22 = vadd.f32 %v2833_v20, %v1635_v18 }
 0x202   : > { %v2944_v24 = vadd.f32 %v4166_v16, %v5568_v3  ;;  %v3932_v28 = vpop.f32.mrb[24].mxu1 }
 0x203   : > { %v2943_v26 = vadd.f32 %v4167_v22, %v5568_v3  ;;  %v4132_v30 = vpop.f32.mrb[24].mxu0  ;;  %v1645_v34 = vpop.f32.mrb[25].mxu1 }
 0x204   : > { %2976 = vst [vmem:[%s5572_s9 + $0xb8] sm:$0xff] %v2944_v24  ;;  %v4168_v32 = vadd.f32 %v4132_v30, %v3932_v28  ;;  %v2843_v36 = vpop.f32.mrb[25].mxu0 }
 0x205   : > { %2975 = vst [vmem:[%s5572_s9 + $0xb0] sm:$0xff] %v2943_v26  ;;  %v4169_v38 = vadd.f32 %v2843_v36, %v1645_v34 }
 0x206   : > { %v2946_v39 = vadd.f32 %v4168_v32, %v5568_v3  ;;  %v3935_v5 = vpop.f32.mrb[26].mxu1 }
 0x207   : > { %v2945_v1 = vadd.f32 %v4169_v38, %v5568_v3  ;;  %v4135_v7 = vpop.f32.mrb[26].mxu0  ;;  %v1655_v13 = vpop.f32.mrb[27].mxu1 }
 0x208   : > { %2978 = vst [vmem:[%s5572_s9 + $0xc8] sm:$0xff] %v2946_v39  ;;  %v4170_v9 = vadd.f32 %v4135_v7, %v3935_v5  ;;  %v2853_v15 = vpop.f32.mrb[27].mxu0 }
 0x209   : > { %2977 = vst [vmem:[%s5572_s9 + $0xc0] sm:$0xff] %v2945_v1  ;;  %v4171_v17 = vadd.f32 %v2853_v15, %v1655_v13 }
 0x20a   : > { %v2948_v19 = vadd.f32 %v4170_v9, %v5568_v3  ;;  %v3938_v23 = vpop.f32.mrb[28].mxu1 }
 0x20b   : > { %v2947_v21 = vadd.f32 %v4171_v17, %v5568_v3  ;;  %v4138_v25 = vpop.f32.mrb[28].mxu0  ;;  %v1665_v29 = vpop.f32.mrb[29].mxu1 }
 0x20c   : > { %2980 = vst [vmem:[%s5572_s9 + $0xd8] sm:$0xff] %v2948_v19  ;;  %v4172_v27 = vadd.f32 %v4138_v25, %v3938_v23  ;;  %v2863_v31 = vpop.f32.mrb[29].mxu0 }
 0x20d   : > { %2979 = vst [vmem:[%s5572_s9 + $0xd0] sm:$0xff] %v2947_v21  ;;  %v4173_v40 = vadd.f32 %v2863_v31, %v1665_v29 }
 0x20e   : > { %v2950_v42 = vadd.f32 %v4172_v27, %v5568_v3  ;;  %v3941_v44 = vpop.f32.mrb[30].mxu1 }
 0x20f   : > { %v2949_v43 = vadd.f32 %v4173_v40, %v5568_v3  ;;  %v4141_v45 = vpop.f32.mrb[30].mxu0  ;;  %v1675_v35 = vpop.f32.mrb[31].mxu1 }
 0x210   : > { %2982 = vst [vmem:[%s5572_s9 + $0xe8] sm:$0xff] %v2950_v42  ;;  %v4174_v33 = vadd.f32 %v4141_v45, %v3941_v44  ;;  %v2873_v37 = vpop.f32.mrb[31].mxu0 }
 0x211   : > { %2981 = vst [vmem:[%s5572_s9 + $0xe0] sm:$0xff] %v2949_v43  ;;  %v4175_v46 = vadd.f32 %v2873_v37, %v1675_v35 }
 0x212   : > { %v2952_v47 = vadd.f32 %v4174_v33, %v5568_v3 }
 0x213   : > { %v2951_v48 = vadd.f32 %v4175_v46, %v5568_v3 }
 0x214   : > { %2984 = vst [vmem:[%s5572_s9 + $0xf8] sm:$0xff] %v2952_v47 }
 0x215   : > { %2983 = vst [vmem:[%s5572_s9 + $0xf0] sm:$0xff] %v2951_v48 }
 0x216   : > { %4471 = shalt.err (!%p4468_p5)
}
 0x217   : > { %s4472_s29 = scalar_lea.hbm %s5639_s21, 4096  ;;  %s4476_s5 = scalar_lea.hbm %s5697_s3, 8192 }
 0x218   : > { %p4473_p6 = scmp.ne.s32.totalorder %s5639_s21, %s4472_s29  ;;  %p4477_p10 = scmp.lt.u32.totalorder %s5639_s21, %s5697_s3 }
 0x219   : > { %p4478_p11 = scmp.lt.u32.totalorder %s4476_s5, %s4472_s29  ;;  %p4480_p13 = scmp.lt.u32.totalorder %s4472_s29, %s5639_s21 }
 0x21a   : > { %p4474_p7 = pnand %p4473_p6, %p4601_p4 }
 0x21b   : > { %p4479_p12 = por %p4478_p11, %p4477_p10 }
 0x21c   : > { %p4475_p9 = pneg %p4474_p7 }
 0x21d   : > { %p4481_p0 = por %p4480_p13, %p4479_p12 }
 0x21f   : > { %p4482_p1 = pnand %p4481_p0, %p4475_p9 }
 0x221   : > { %4485 = shalt.err (!%p4482_p1)
}
 0x222   : > { %s4539_s8 = smov 128   ;;  %s4540_s9 = smov 8  }
 0x223   : > { %4401 = dma.vmem_to_hbm [thread:$0]  (%p4601_p4), %s5641_s11, 4096, %s5639_s21, %s5648_s15, %s4539_s8, %s4539_s8, %s4540_s9  }
 0x224 PF: > { %p4407_p2 = scmp.ge.s32.totalorder %s4536_s17, 2  ;;  %s3016_s10 = sand.u32 1, %s4516_s12  }
 0x225   : > { %s3017_s18 = scalar_lea.sflag [#allocation3], %s3016_s10 }
 0x226   : > { %p4404_p3 = pnand %p4407_p2, %p4608_p8 }
 0x228   : > { %4511 = dma.done.wait (!%p4404_p3), %s3017_s18, 4096  }
 0x229   : > { %4513 = vsyncadd (!%p4404_p3), %s3017_s18, 4294963200  ;;  %s16_s17 = sadd.s32 1, %s4536_s17   ;;  %s5771_s12 = smov %s4520_s13 }
 0x22a   : > { %p13_p5 = scmp.ge.s32.totalorder %s16_s17, 4   ;;  %s5772_s13 = smov %s4524_s14 }
 0x22b   : > { %s5773_s14 = smov %s4614_s25  ;;  %s5774_s15 = smov %s4532_s16 }
 0x22c   : > { %s5775_s16 = smov %s5777_s20  ;;  %15 = sbr.rel (!%p13_p5) target bundleno = 4 (0x4), region = 76 }
 0x233   :  { %3022 = vsyncpa [#allocation3], 1 }
 0x234   :  { %3024 = vsyncpa [#allocation3 + $0x1], 1 }

// kernel: tpu_custom_call.1
= control target key start
LH: loop header
LB: loop body
LE: loop exit
PB: predicated region body
PF: predicated region fallthrough
CT: control target
= control target key end

     0   :  { %8 = vsyncpa [#allocation3], 0  ;;  %s5694_s0 = inlined_call_operand.vmem [shape: f32[2,18,24,4], index: 0, kind: input, shape index: {}]   ;;  %s5695_s1 = inlined_call_operand.vmem [shape: f32[3,3,4,128], index: 1, kind: input, shape index: {}]   ;;  %s5696_s2 = inlined_call_operand.vmem [shape: f32[1,128], index: 2, kind: input, shape index: {}]   ;;  %s5697_s3 = inlined_call_operand.hbm [shape: f32[2,256,128], index: 3, kind: output, shape index: {}]  }
   0x1   :  { %10 = vsyncpa [#allocation3 + $0x1], 0  ;;  %s4561_s12 = smov 0   ;;  %s4563_s13 = smov 0  }
   0x2   :  { %s4565_s14 = smov 0   ;;  %s4567_s15 = smov 0  }
   0x3   :  { %s4569_s16 = smov 0   ;;  %s4571_s17 = smov 0  }
   0x4 LB: > { %s3076_s18 = sadd.s32 4294967295, %s4536_s17   ;;  %s3077_s19 = sadd.s32 4294967294, %s4536_s17   ;;  %s4536_s17 = sphi %s4571_s17, %s16_s17   ;;  %s4532_s16 = sphi %s4569_s16, %s5775_s16   ;;  %s4528_s15 = sphi %s4567_s15, %s5774_s15   ;;  %s4524_s14 = sphi %s4565_s14, %s5773_s14   ;;  %s4520_s13 = sphi %s4563_s13, %s5772_s13   ;;  %s4516_s12 = sphi %s4561_s12, %s5771_s12  }
   0x5   : > { %s28_s20 = sadd.s32 1, %s4532_s16  ;;  %s105_s21 = sadd.s32 1, %s4524_s14 }
   0x6   : > { %p30_p0 = scmp.ge.s32.totalorder %s28_s20, 2  ;;  %p115_p1 = scmp.ne.s32.totalorder %s4524_s14, %s4520_s13 }
   0x7   : > { %p116_p2 = scmp.eq.s32.totalorder %s3076_s18, 1  ;;  %p121_p3 = scmp.ne.s32.totalorder %s4520_s13, %s4516_s12 }
   0x8   : > { %s5777_s20 = smov (%p30_p0, %s28_s20), 0  ;;  %p122_p5 = scmp.eq.s32.totalorder %s3077_s19, 1 }
   0x9   : > { %p4601_p4 = por %p116_p2, %p115_p1  ;;  %s100_s23 = ssub.s32 %s4532_s16, %s5777_s20 }
   0xa   : > { %p3080_p6 = scmp.ge.s32.totalorder %s4536_s17, 1  ;;  %p103_p7 = scmp.eq.s32.totalorder %s100_s23, 0 }
   0xb   : > { %p4608_p8 = por %p122_p5, %p121_p3  ;;  %p154_p9 = scmp.lt.s32.totalorder %s4536_s17, 3 }
   0xc   : > { %s4614_s25 = scalar_select %p103_p7, %s4524_s14, %s105_s21  }
   0xd   : > { %p155_p10 = pnand %p3080_p6, %p154_p9 }
   0xf   : > { %158 = sbr.rel (%p155_p10) target bundleno = 548 (0x224), region = 32 }
  0x16   : > { %v3083_v0 = vld [vmem:[%s5695_s1 + $0xc] sm:$0xf]  ;;  %vm323_vm0 = vcmask 1043456   ;;  %v4622_v1 = vld [vmem:[%s5695_s1 + $0x10] sm:$0xf]  ;;  %p178_p11 = scmp.lt.s32.totalorder %s4528_s15, 1 }
  0x17   : > { %3692 = vmatprep.subr.msk.mxu1 %vm323_vm0, %v3083_v0  ;;  %3892 = vmatprep.subr.msk.mxu0 %vm323_vm0, %v4622_v1  ;;  %v223_v2 = vld [vmem:[%s5695_s1] sm:$0xf]  ;;  %v3252_v3 = vld [vmem:[%s5695_s1 + $0x1c] sm:$0xf]  ;;  %vm226_vm1 = vcmask 31744   ;;  %s175_s5 = sand.u32 1, %s4520_s13  }
  0x18   : > { %3693 = vmatpush3.msk.msra.mxu1 %vm323_vm0, %v3083_v0  ;;  %3893 = vmatpush3.msk.msra.mxu0 %vm323_vm0, %v4622_v1  ;;  %s179_s7 = scalar_select %p178_p11, %s4528_s15, 1  ;;  %v4674_v10 = vld [vmem:[%s5695_s1 + $0x8] sm:$0xf]  ;;  %v4679_v11 = vld [vmem:[%s5695_s1 + $0x18] sm:$0xf] }
  0x19   : > { %3742 = vmatprep.subr.msk.mxu1 %vm323_vm0, %v223_v2  ;;  %3942 = vmatprep.subr.msk.mxu0 %vm323_vm0, %v3252_v3  ;;  %v4837_v41 = vld [vmem:[%s5695_s1 + $0x14] sm:$0xf]  ;;  %v4965_v62 = vld [vmem:[%s5695_s1 + $0x4] sm:$0xf]  ;;  %s3081_s6 = sshll.u32 %s175_s5, 8  ;;  %s3394_s10 = sshll.u32 %s4528_s15, 12 }
  0x1a   : > { %s4400_s8 = smul.u32 432, %s179_s7  ;;  %s5572_s9 = scalar_lea.vmem [#allocation2], %s3081_s6 }
  0x1b   : > { %s5639_s21 = scalar_lea.hbm %s5697_s3, %s3394_s10  ;;  %s5648_s15 = scalar_lea.sflag [#allocation3], %s175_s5 }
  0x1c   : > { %s4643_s11 = scalar_lea.vmem %s5694_s0, %s4400_s8  ;;  %s4538_s26 = smov [#allocation2]  }
  0x1d   : > { %v4646_v4 = vld [vmem:[%s4643_s11 + $0x18] sm:$0xff]  ;;  %v4652_v6 = vld [vmem:[%s4643_s11 + $0x20] sm:$0xff]  ;;  %v4662_v8 = vld [vmem:[%s4643_s11 + $0x30] sm:$0xff]  ;;  %s4462_s27 = sshll.u32 %s4538_s26, 4  ;;  %s4463_s27 = int_to_ptr.vmem [resolvable:$false] %s4462_s27 }
  0x1e   : > { %v4649_v5 = vld [vmem:[%s4643_s11 + $0x19] sm:$0xff]  ;;  %3694 = vmatprep.mubr.msk.f32.mxu1 %vm226_vm1, %v4646_v4  ;;  %v4659_v7 = vld [vmem:[%s4643_s11 + $0x21] sm:$0xff]  ;;  %v4665_v9 = vld [vmem:[%s4643_s11 + $0x31] sm:$0xff]  ;;  %s4464_s28 = scalar_lea.vmem %s4463_s27, 8192 }
  0x1f   : > { %3894 = vmatprep.mubr.msk.f32.mxu0 %vm226_vm1, %v4649_v5  ;;  %3695 = vmatmul.mubr.msk.f32.vlgmr.msra.gmra.mrb[0].mxu1 %vm226_vm1, %v4652_v6  ;;  %v4684_v12 = vld [vmem:[%s4643_s11 + $0x38] sm:$0xff]  ;;  %v4694_v14 = vld [vmem:[%s4643_s11 + $0x48] sm:$0xff]  ;;  %v4712_v16 = vld [vmem:[%s4643_s11 + $0x50] sm:$0xff] }
  0x20   : > { %3895 = vmatmul.mubr.msk.f32.vlgmr.msra.gmra.mrb[0].mxu0 %vm226_vm1, %v4659_v7  ;;  %3743 = vmatpush3.msk.msra.mxu1 %vm323_vm0, %v223_v2  ;;  %v4687_v13 = vld [vmem:[%s4643_s11 + $0x39] sm:$0xff]  ;;  %v4697_v15 = vld [vmem:[%s4643_s11 + $0x49] sm:$0xff]  ;;  %v4715_v17 = vld [vmem:[%s4643_s11 + $0x51] sm:$0xff] }
  0x21   : > { %3943 = vmatpush3.msk.msra.mxu0 %vm323_vm0, %v3252_v3  ;;  %3697 = vmatprep.mubr.msk.f32.mxu1 %vm226_vm1, %v4662_v8  ;;  %v4718_v18 = vld [vmem:[%s4643_s11 + $0x60] sm:$0xff]  ;;  %v4732_v20 = vld [vmem:[%s4643_s11 + $0x68] sm:$0xff]  ;;  %v4738_v22 = vld [vmem:[%s4643_s11 + $0x78] sm:$0xff] }
  0x22   : > { %3897 = vmatprep.mubr.msk.f32.mxu0 %vm226_vm1, %v4665_v9  ;;  %3992 = vmatprep.subr.msk.mxu0 %vm323_vm0, %v4674_v10  ;;  %v4721_v19 = vld [vmem:[%s4643_s11 + $0x61] sm:$0xff]  ;;  %v4735_v21 = vld [vmem:[%s4643_s11 + $0x69] sm:$0xff]  ;;  %v4741_v23 = vld [vmem:[%s4643_s11 + $0x79] sm:$0xff] }
  0x23   : > { %3792 = vmatprep.subr.msk.mxu1 %vm323_vm0, %v4679_v11  ;;  %3698 = vmatmul.mubr.msk.f32.gmra.mrb[2].mxu1 %vm226_vm1, %v4684_v12  ;;  %v4752_v24 = vld [vmem:[%s4643_s11 + $0x80] sm:$0xff]  ;;  %v4758_v26 = vld [vmem:[%s4643_s11 + $0x90] sm:$0xff]  ;;  %v4772_v28 = vld [vmem:[%s4643_s11 + $0x98] sm:$0xff] }
  0x24   : > { %3898 = vmatmul.mubr.msk.f32.gmra.mrb[2].mxu0 %vm226_vm1, %v4687_v13  ;;  %3700 = vmatprep.mubr.msk.f32.mxu1 %vm226_vm1, %v4694_v14  ;;  %v4755_v25 = vld [vmem:[%s4643_s11 + $0x81] sm:$0xff]  ;;  %v4761_v27 = vld [vmem:[%s4643_s11 + $0x91] sm:$0xff]  ;;  %v4775_v29 = vld [vmem:[%s4643_s11 + $0x99] sm:$0xff] }
  0x25   : > { %3900 = vmatprep.mubr.msk.f32.mxu0 %vm226_vm1, %v4697_v15  ;;  %v4778_v30 = vld [vmem:[%s4643_s11 + $0xa8] sm:$0xff]  ;;  %v4792_v32 = vld [vmem:[%s4643_s11 + $0xb0] sm:$0xff]  ;;  %v4798_v34 = vld [vmem:[%s4643_s11 + $0xc0] sm:$0xff] }
  0x26   : > { %v4781_v31 = vld [vmem:[%s4643_s11 + $0xa9] sm:$0xff]  ;;  %v4795_v33 = vld [vmem:[%s4643_s11 + $0xb1] sm:$0xff]  ;;  %v4801_v35 = vld [vmem:[%s4643_s11 + $0xc1] sm:$0xff] }
  0x27   : > { %3701 = vmatmul.mubr.msk.f32.gmra.mrb[4].mxu1 %vm226_vm1, %v4712_v16  ;;  %5733 = vst [vmem:[#allocation5_spill] sm:$0xff] %v4795_v33  ;;  %5734 = vst [vmem:[#allocation6_spill] sm:$0xff] %v4801_v35  ;;  %v4812_v36 = vld [vmem:[%s4643_s11 + $0xc8] sm:$0xff]  ;;  %v4818_v38 = vld [vmem:[%s4643_s11 + $0xd8] sm:$0xff] }
  0x28   : > { %3901 = vmatmul.mubr.msk.f32.gmra.mrb[4].mxu0 %vm226_vm1, %v4715_v17  ;;  %3703 = vmatprep.mubr.msk.f32.mxu1 %vm226_vm1, %v4718_v18  ;;  %v4815_v37 = vld [vmem:[%s4643_s11 + $0xc9] sm:$0xff]  ;;  %v4829_v39 = vld [vmem:[%s4643_s11 + $0xe0] sm:$0xff]  ;;  %v4848_v42 = vld [vmem:[%s4643_s11 + $0xf8] sm:$0xff] }
  0x29   : > { %3903 = vmatprep.mubr.msk.f32.mxu0 %vm226_vm1, %v4721_v19  ;;  %5735 = vst [vmem:[#allocation7_spill] sm:$0xff] %v4815_v37  ;;  %v4832_v40 = vld [vmem:[%s4643_s11 + $0xf0] sm:$0xff]  ;;  %v4853_v43 = vld [vmem:[%s4643_s11 + $0x108] sm:$0xff]  ;;  %v4869_v45 = vld [vmem:[%s4643_s11 + $0x120] sm:$0xff] }
  0x2a   : > { %v4866_v44 = vld [vmem:[%s4643_s11 + $0x110] sm:$0xff]  ;;  %v4880_v46 = vld [vmem:[%s4643_s11 + $0x128] sm:$0xff]  ;;  %v4883_v47 = vld [vmem:[%s4643_s11 + $0x138] sm:$0xff] }
  0x2b   : > { %3704 = vmatmul.mubr.msk.f32.gmra.mrb[6].mxu1 %vm226_vm1, %v4732_v20  ;;  %v4894_v48 = vld [vmem:[%s4643_s11 + $0x140] sm:$0xff]  ;;  %v4897_v49 = vld [vmem:[%s4643_s11 + $0x150] sm:$0xff]  ;;  %v4908_v50 = vld [vmem:[%s4643_s11 + $0x158] sm:$0xff] }
  0x2c   : > { %3904 = vmatmul.mubr.msk.f32.gmra.mrb[6].mxu0 %vm226_vm1, %v4735_v21  ;;  %3706 = vmatprep.mubr.msk.f32.mxu1 %vm226_vm1, %v4738_v22  ;;  %v4911_v51 = vld [vmem:[%s4643_s11 + $0x168] sm:$0xff]  ;;  %v4922_v52 = vld [vmem:[%s4643_s11 + $0x170] sm:$0xff]  ;;  %v4925_v53 = vld [vmem:[%s4643_s11 + $0x180] sm:$0xff] }
  0x2d   : > { %3906 = vmatprep.mubr.msk.f32.mxu0 %vm226_vm1, %v4741_v23  ;;  %v4928_v54 = vld [vmem:[%s4643_s11 + $0xd9] sm:$0xff]  ;;  %v4939_v55 = vld [vmem:[%s4643_s11 + $0x188] sm:$0xff]  ;;  %v4946_v58 = vld [vmem:[%s4643_s11 + $0xf1] sm:$0xff] }
  0x2e   : > { %5736 = vst [vmem:[#allocation8_spill] sm:$0xff] %v4928_v54  ;;  %v4942_v56 = vld [vmem:[%s4643_s11 + $0xe1] sm:$0xff]  ;;  %5738 = vst [vmem:[#allocation10_spill] sm:$0xff] %v4946_v58  ;;  %v4957_v60 = vld [vmem:[%s4643_s11 + $0xf9] sm:$0xff] }
  0x2f   : > { %3707 = vmatmul.mubr.msk.f32.gmra.mrb[8].mxu1 %vm226_vm1, %v4752_v24  ;;  %5737 = vst [vmem:[#allocation9_spill] sm:$0xff] %v4942_v56  ;;  %v187_v57 = vld [vmem:[%s4643_s11] sm:$0xff]  ;;  %v188_v59 = vld [vmem:[%s4643_s11 + $0x8] sm:$0xff]  ;;  %5739 = vst [vmem:[#allocation11_spill] sm:$0xff] %v4957_v60 }
  0x30   : > { %3907 = vmatmul.mubr.msk.f32.gmra.mrb[8].mxu0 %vm226_vm1, %v4755_v25  ;;  %3709 = vmatprep.mubr.msk.f32.mxu1 %vm226_vm1, %v4758_v26  ;;  %v4960_v61 = vld [vmem:[%s4643_s11 + $0x109] sm:$0xff]  ;;  %v4975_v63 = vld [vmem:[%s4643_s11 + $0x111] sm:$0xff]  ;;  %v4980_v0 = vld [vmem:[%s4643_s11 + $0x121] sm:$0xff] }
  0x31   : > { %3909 = vmatprep.mubr.msk.f32.mxu0 %vm226_vm1, %v4761_v27  ;;  %5740 = vst [vmem:[#allocation12_spill] sm:$0xff] %v4960_v61  ;;  %5741 = vst [vmem:[#allocation13_spill] sm:$0xff] %v4975_v63  ;;  %v4993_v2 = vld [vmem:[%s4643_s11 + $0x129] sm:$0xff]  ;;  %v4996_v3 = vld [vmem:[%s4643_s11 + $0x139] sm:$0xff] }
  0x32   : > { %5742 = vst [vmem:[#allocation14_spill] sm:$0xff] %v4980_v0  ;;  %5743 = vst [vmem:[#allocation15_spill] sm:$0xff] %v4993_v2 }
  0x33   : > { %3710 = vmatmul.mubr.msk.f32.gmra.mrb[10].mxu1 %vm226_vm1, %v4772_v28  ;;  %5744 = vst [vmem:[#allocation16_spill] sm:$0xff] %v4996_v3 }
  0x34   : > { %3910 = vmatmul.mubr.msk.f32.gmra.mrb[10].mxu0 %vm226_vm1, %v4775_v29  ;;  %3712 = vmatprep.mubr.msk.f32.mxu1 %vm226_vm1, %v4778_v30 }
  0x35   : > { %3912 = vmatprep.mubr.msk.f32.mxu0 %vm226_vm1, %v4781_v31 }
  0x37   : > { %3713 = vmatmul.mubr.msk.f32.gmra.mrb[12].mxu1 %vm226_vm1, %v4792_v32 }
  0x38   : > { %3913 = vmatmul.mubr.msk.f32.gmra.mrb[12].mxu0 %vm226_vm1, %v4795_v33  ;;  %3715 = vmatprep.mubr.msk.f32.mxu1 %vm226_vm1, %v4798_v34 }
  0x39   : > { %3915 = vmatprep.mubr.msk.f32.mxu0 %vm226_vm1, %v4801_v35 }
  0x3b   : > { %3716 = vmatmul.mubr.msk.f32.gmra.mrb[14].mxu1 %vm226_vm1, %v4812_v36 }
  0x3c   : > { %3916 = vmatmul.mubr.msk.f32.gmra.mrb[14].mxu0 %vm226_vm1, %v4815_v37  ;;  %3718 = vmatprep.mubr.msk.f32.mxu1 %vm226_vm1, %v4818_v38 }
  0x3d   : > { %3944 = vmatprep.mubr.msk.f32.mxu0 %vm226_vm1, %v4665_v9 }
  0x3f   : > { %3719 = vmatmul.mubr.msk.f32.gmra.mrb[16].mxu1 %vm226_vm1, %v4829_v39 }
  0x40   : > { %3945 = vmatmul.mubr.msk.f32.vlgmr.msra.gmra.mrb[0].mxu0 %vm226_vm1, %v4687_v13  ;;  %3721 = vmatprep.mubr.msk.f32.mxu1 %vm226_vm1, %v4832_v40 }
  0x41   : > { %3993 = vmatpush3.msk.msra.mxu0 %vm323_vm0, %v4674_v10  ;;  %3947 = vmatprep.mubr.msk.f32.mxu0 %vm226_vm1, %v4697_v15  ;;  %v5021_v10 = vld [vmem:[%s4643_s11 + $0x159] sm:$0xff] }
  0x42   : > { %4042 = vmatprep.subr.msk.mxu0 %vm323_vm0, %v4837_v41  ;;  %5747 = vst [vmem:[#allocation19_spill] sm:$0xff] %v5021_v10 }
  0x43   : > { %3722 = vmatmul.mubr.msk.f32.gmra.mrb[18].mxu1 %vm226_vm1, %v4848_v42 }
  0x44   : > { %3948 = vmatmul.mubr.msk.f32.gmra.mrb[2].mxu0 %vm226_vm1, %v4715_v17  ;;  %3724 = vmatprep.mubr.msk.f32.mxu1 %vm226_vm1, %v4853_v43 }
  0x45   : > { %3950 = vmatprep.mubr.msk.f32.mxu0 %vm226_vm1, %v4721_v19 }
  0x47   : > { %3725 = vmatmul.mubr.msk.f32.gmra.mrb[20].mxu1 %vm226_vm1, %v4866_v44 }
  0x48   : > { %3951 = vmatmul.mubr.msk.f32.gmra.mrb[4].mxu0 %vm226_vm1, %v4735_v21  ;;  %3727 = vmatprep.mubr.msk.f32.mxu1 %vm226_vm1, %v4869_v45 }
  0x49   : > { %3953 = vmatprep.mubr.msk.f32.mxu0 %vm226_vm1, %v4741_v23 }
  0x4b   : > { %3728 = vmatmul.mubr.msk.f32.gmra.mrb[22].mxu1 %vm226_vm1, %v4880_v46 }
  0x4c   : > { %3954 = vmatmul.mubr.msk.f32.gmra.mrb[6].mxu0 %vm226_vm1, %v4755_v25  ;;  %3730 = vmatprep.mubr.msk.f32.mxu1 %vm226_vm1, %v4883_v47 }
  0x4d   : > { %3956 = vmatprep.mubr.msk.f32.mxu0 %vm226_vm1, %v4761_v27 }
  0x4f   : > { %3731 = vmatmul.mubr.msk.f32.gmra.mrb[24].mxu1 %vm226_vm1, %v4894_v48 }
  0x50   : > { %3957 = vmatmul.mubr.msk.f32.gmra.mrb[8].mxu0 %vm226_vm1, %v4775_v29  ;;  %3733 = vmatprep.mubr.msk.f32.mxu1 %vm226_vm1, %v4897_v49 }
  0x51   : > { %3959 = vmatprep.mubr.msk.f32.mxu0 %vm226_vm1, %v4781_v31 }
  0x53   : > { %3734 = vmatmul.mubr.msk.f32.gmra.mrb[26].mxu1 %vm226_vm1, %v4908_v50 }
  0x54   : > { %3960 = vmatmul.mubr.msk.f32.gmra.mrb[10].mxu0 %vm226_vm1, %v4795_v33  ;;  %3736 = vmatprep.mubr.msk.f32.mxu1 %vm226_vm1, %v4911_v51  ;;  %v5205_v33 = vld [vmem:[%s4643_s11 + $0xf2] sm:$0xff] }
  0x55   : > { %3962 = vmatprep.mubr.msk.f32.mxu0 %vm226_vm1, %v4801_v35  ;;  %v5189_v35 = vld [vmem:[%s4643_s11 + $0xda] sm:$0xff] }
  0x57   : > { %3737 = vmatmul.mubr.msk.f32.gmra.mrb[28].mxu1 %vm226_vm1, %v4922_v52 }
  0x58   : > { %3963 = vmatmul.mubr.msk.f32.gmra.mrb[12].mxu0 %vm226_vm1, %v4815_v37  ;;  %3739 = vmatprep.mubr.msk.f32.mxu1 %vm226_vm1, %v4925_v53  ;;  %v5186_v37 = vld [vmem:[%s4643_s11 + $0xca] sm:$0xff] }
  0x59   : > { %3965 = vmatprep.mubr.msk.f32.mxu0 %vm226_vm1, %v4928_v54  ;;  %v5175_v54 = vld [vmem:[%s4643_s11 + $0xc2] sm:$0xff] }
  0x5b   : > { %3740 = vmatmul.mubr.msk.f32.gmra.mrb[30].mxu1 %vm226_vm1, %v4939_v55 }
  0x5c   : > { %3966 = vmatmul.mubr.msk.f32.gmra.mrb[14].mxu0 %vm226_vm1, %v4942_v56  ;;  %3744 = vmatprep.mubr.msk.f32.mxu1 %vm226_vm1, %v187_v57  ;;  %v5035_v57 = vld [vmem:[%s4643_s11 + $0x171] sm:$0xff] }
  0x5d   : > { %3968 = vmatprep.mubr.msk.f32.mxu0 %vm226_vm1, %v4946_v58  ;;  %5749 = vst [vmem:[#allocation21_spill] sm:$0xff] %v5035_v57  ;;  %v5161_v58 = vld [vmem:[%s4643_s11 + $0xaa] sm:$0xff]  ;;  %v5172_v56 = vld [vmem:[%s4643_s11 + $0xb2] sm:$0xff] }
  0x5f   : > { %3745 = vmatmul.mubr.msk.f32.vlgmr.msra.gmra.mrb[0].mxu1 %vm226_vm1, %v188_v59  ;;  %v5038_v59 = vld [vmem:[%s4643_s11 + $0x181] sm:$0xff] }
  0x60   : > { %3969 = vmatmul.mubr.msk.f32.gmra.mrb[16].mxu0 %vm226_vm1, %v4957_v60  ;;  %3793 = vmatpush3.msk.msra.mxu1 %vm323_vm0, %v4679_v11  ;;  %v5024_v11 = vld [vmem:[%s4643_s11 + $0x169] sm:$0xff]  ;;  %5750 = vst [vmem:[#allocation22_spill] sm:$0xff] %v5038_v59  ;;  %v5158_v60 = vld [vmem:[%s4643_s11 + $0x9a] sm:$0xff] }
  0x61   : > { %3747 = vmatprep.mubr.msk.f32.mxu1 %vm226_vm1, %v4646_v4  ;;  %3971 = vmatprep.mubr.msk.f32.mxu0 %vm226_vm1, %v4960_v61  ;;  %v5007_v4 = vld [vmem:[%s4643_s11 + $0x141] sm:$0xff]  ;;  %5748 = vst [vmem:[#allocation20_spill] sm:$0xff] %v5024_v11  ;;  %v5147_v61 = vld [vmem:[%s4643_s11 + $0x92] sm:$0xff] }
  0x62   : > { %3842 = vmatprep.subr.msk.mxu1 %vm323_vm0, %v4965_v62  ;;  %5745 = vst [vmem:[#allocation17_spill] sm:$0xff] %v5007_v4 }
  0x63   : > { %3748 = vmatmul.mubr.msk.f32.gmra.mrb[2].mxu1 %vm226_vm1, %v4652_v6  ;;  %v5010_v6 = vld [vmem:[%s4643_s11 + $0x151] sm:$0xff] }
  0x64   : > { %3972 = vmatmul.mubr.msk.f32.gmra.mrb[18].mxu0 %vm226_vm1, %v4975_v63  ;;  %3750 = vmatprep.mubr.msk.f32.mxu1 %vm226_vm1, %v4662_v8  ;;  %5746 = vst [vmem:[#allocation18_spill] sm:$0xff] %v5010_v6  ;;  %v5144_v63 = vld [vmem:[%s4643_s11 + $0x82] sm:$0xff] }
  0x65   : > { %3974 = vmatprep.mubr.msk.f32.mxu0 %vm226_vm1, %v4980_v0  ;;  %v5133_v0 = vld [vmem:[%s4643_s11 + $0x7a] sm:$0xff] }
  0x67   : > { %3751 = vmatmul.mubr.msk.f32.gmra.mrb[4].mxu1 %vm226_vm1, %v4684_v12 }
  0x68   : > { %3975 = vmatmul.mubr.msk.f32.gmra.mrb[20].mxu0 %vm226_vm1, %v4993_v2  ;;  %3753 = vmatprep.mubr.msk.f32.mxu1 %vm226_vm1, %v4694_v14  ;;  %v5130_v2 = vld [vmem:[%s4643_s11 + $0x6a] sm:$0xff] }
  0x69   : > { %3977 = vmatprep.mubr.msk.f32.mxu0 %vm226_vm1, %v4996_v3  ;;  %v5119_v3 = vld [vmem:[%s4643_s11 + $0x62] sm:$0xff] }
  0x6b   : > { %3754 = vmatmul.mubr.msk.f32.gmra.mrb[6].mxu1 %vm226_vm1, %v4712_v16 }
  0x6c   : > { %3978 = vmatmul.mubr.msk.f32.gmra.mrb[22].mxu0 %vm226_vm1, %v5007_v4  ;;  %3756 = vmatprep.mubr.msk.f32.mxu1 %vm226_vm1, %v4718_v18  ;;  %v5116_v4 = vld [vmem:[%s4643_s11 + $0x52] sm:$0xff] }
  0x6d   : > { %3980 = vmatprep.mubr.msk.f32.mxu0 %vm226_vm1, %v5010_v6  ;;  %v1984_v6 = vld [vmem:[%s4643_s11 + $0x2] sm:$0xff] }
  0x6f   : > { %3757 = vmatmul.mubr.msk.f32.gmra.mrb[8].mxu1 %vm226_vm1, %v4732_v20 }
  0x70   : > { %3981 = vmatmul.mubr.msk.f32.gmra.mrb[24].mxu0 %vm226_vm1, %v5021_v10  ;;  %3759 = vmatprep.mubr.msk.f32.mxu1 %vm226_vm1, %v4738_v22  ;;  %v5049_v10 = vld [vmem:[%s4643_s11 + $0x189] sm:$0xff] }
  0x71   : > { %3983 = vmatprep.mubr.msk.f32.mxu0 %vm226_vm1, %v5024_v11  ;;  %5751 = vst [vmem:[#allocation23_spill] sm:$0xff] %v5049_v10  ;;  %v1088_v11 = vld [vmem:[%s4643_s11 + $0x199] sm:$0xff] }
  0x73   : > { %3760 = vmatmul.mubr.msk.f32.gmra.mrb[10].mxu1 %vm226_vm1, %v4752_v24 }
  0x74   : > { %3984 = vmatmul.mubr.msk.f32.gmra.mrb[26].mxu0 %vm226_vm1, %v5035_v57  ;;  %3762 = vmatprep.mubr.msk.f32.mxu1 %vm226_vm1, %v4758_v26  ;;  %v1089_v57 = vld [vmem:[%s4643_s11 + $0x1a1] sm:$0xff] }
  0x75   : > { %3986 = vmatprep.mubr.msk.f32.mxu0 %vm226_vm1, %v5038_v59  ;;  %v5069_v59 = vld [vmem:[%s4643_s11 + $0x1a] sm:$0xff] }
  0x77   : > { %3763 = vmatmul.mubr.msk.f32.gmra.mrb[12].mxu1 %vm226_vm1, %v4772_v28 }
  0x78   : > { %3987 = vmatmul.mubr.msk.f32.gmra.mrb[28].mxu0 %vm226_vm1, %v5049_v10  ;;  %3765 = vmatprep.mubr.msk.f32.mxu1 %vm226_vm1, %v4778_v30  ;;  %v1985_v10 = vld [vmem:[%s4643_s11 + $0xa] sm:$0xff] }
  0x79   : > { %3989 = vmatprep.mubr.msk.f32.mxu0 %vm226_vm1, %v1088_v11  ;;  %v5074_v11 = vld [vmem:[%s5695_s1 + $0x20] sm:$0xf] }
  0x7b   : > { %3766 = vmatmul.mubr.msk.f32.gmra.mrb[14].mxu1 %vm226_vm1, %v4792_v32 }
  0x7c   : > { %3990 = vmatmul.mubr.msk.f32.gmra.mrb[30].mxu0 %vm226_vm1, %v1089_v57  ;;  %3768 = vmatprep.mubr.msk.f32.mxu1 %vm226_vm1, %v4798_v34  ;;  %v5089_v57 = vld [vmem:[%s4643_s11 + $0x32] sm:$0xff] }
  0x7d   : > { %3994 = vmatprep.mubr.msk.f32.mxu0 %vm226_vm1, %v1984_v6  ;;  %v5084_v6 = vld [vmem:[%s4643_s11 + $0x22] sm:$0xff] }
  0x7f   : > { %3769 = vmatmul.mubr.msk.f32.gmra.mrb[16].mxu1 %vm226_vm1, %v4812_v36 }
  0x80   : > { %3995 = vmatmul.mubr.msk.f32.vlgmr.msra.gmra.mrb[0].mxu0 %vm226_vm1, %v1985_v10  ;;  %3771 = vmatprep.mubr.msk.f32.mxu1 %vm226_vm1, %v4818_v38  ;;  %v5105_v10 = vld [vmem:[%s4643_s11 + $0x4a] sm:$0xff] }
  0x81   : > { %4043 = vmatpush3.msk.msra.mxu0 %vm323_vm0, %v4837_v41  ;;  %3997 = vmatprep.mubr.msk.f32.mxu0 %vm226_vm1, %v5069_v59  ;;  %v5102_v41 = vld [vmem:[%s4643_s11 + $0x3a] sm:$0xff] }
  0x82   : > { %4092 = vmatprep.subr.msk.mxu0 %vm323_vm0, %v5074_v11 }
  0x83   : > { %3772 = vmatmul.mubr.msk.f32.gmra.mrb[18].mxu1 %vm226_vm1, %v4829_v39 }
  0x84   : > { %3998 = vmatmul.mubr.msk.f32.gmra.mrb[2].mxu0 %vm226_vm1, %v5084_v6  ;;  %3774 = vmatprep.mubr.msk.f32.mxu1 %vm226_vm1, %v4832_v40 }
  0x85   : > { %4000 = vmatprep.mubr.msk.f32.mxu0 %vm226_vm1, %v5089_v57 }
  0x87   : > { %3775 = vmatmul.mubr.msk.f32.gmra.mrb[20].mxu1 %vm226_vm1, %v4848_v42 }
  0x88   : > { %4001 = vmatmul.mubr.msk.f32.gmra.mrb[4].mxu0 %vm226_vm1, %v5102_v41  ;;  %3777 = vmatprep.mubr.msk.f32.mxu1 %vm226_vm1, %v4853_v43 }
  0x89   : > { %4003 = vmatprep.mubr.msk.f32.mxu0 %vm226_vm1, %v5105_v10 }
  0x8b   : > { %3778 = vmatmul.mubr.msk.f32.gmra.mrb[22].mxu1 %vm226_vm1, %v4866_v44 }
  0x8c   : > { %4004 = vmatmul.mubr.msk.f32.gmra.mrb[6].mxu0 %vm226_vm1, %v5116_v4  ;;  %3780 = vmatprep.mubr.msk.f32.mxu1 %vm226_vm1, %v4869_v45 }
  0x8d   : > { %4006 = vmatprep.mubr.msk.f32.mxu0 %vm226_vm1, %v5119_v3 }
  0x8f   : > { %3781 = vmatmul.mubr.msk.f32.gmra.mrb[24].mxu1 %vm226_vm1, %v4880_v46 }
  0x90   : > { %4007 = vmatmul.mubr.msk.f32.gmra.mrb[8].mxu0 %vm226_vm1, %v5130_v2  ;;  %3783 = vmatprep.mubr.msk.f32.mxu1 %vm226_vm1, %v4883_v47 }
  0x91   : > { %4009 = vmatprep.mubr.msk.f32.mxu0 %vm226_vm1, %v5133_v0 }
  0x93   : > { %3784 = vmatmul.mubr.msk.f32.gmra.mrb[26].mxu1 %vm226_vm1, %v4894_v48 }
  0x94   : > { %4010 = vmatmul.mubr.msk.f32.gmra.mrb[10].mxu0 %vm226_vm1, %v5144_v63  ;;  %3786 = vmatprep.mubr.msk.f32.mxu1 %vm226_vm1, %v4897_v49 }
  0x95   : > { %4012 = vmatprep.mubr.msk.f32.mxu0 %vm226_vm1, %v5147_v61 }
  0x97   : > { %3787 = vmatmul.mubr.msk.f32.gmra.mrb[28].mxu1 %vm226_vm1, %v4908_v50 }
  0x98   : > { %4013 = vmatmul.mubr.msk.f32.gmra.mrb[12].mxu0 %vm226_vm1, %v5158_v60  ;;  %3789 = vmatprep.mubr.msk.f32.mxu1 %vm226_vm1, %v4911_v51 }
  0x99   : > { %4015 = vmatprep.mubr.msk.f32.mxu0 %vm226_vm1, %v5161_v58 }
  0x9b   : > { %3790 = vmatmul.mubr.msk.f32.gmra.mrb[30].mxu1 %vm226_vm1, %v4922_v52 }
  0x9c   : > { %4016 = vmatmul.mubr.msk.f32.gmra.mrb[14].mxu0 %vm226_vm1, %v5172_v56  ;;  %3794 = vmatprep.mubr.msk.f32.mxu1 %vm226_vm1, %v4662_v8  ;;  %v5200_v8 = vld [vmem:[%s4643_s11 + $0xe2] sm:$0xff] }
  0x9d   : > { %4018 = vmatprep.mubr.msk.f32.mxu0 %vm226_vm1, %v5175_v54 }
  0x9f   : > { %3795 = vmatmul.mubr.msk.f32.vlgmr.msra.gmra.mrb[0].mxu1 %vm226_vm1, %v4684_v12  ;;  %v5218_v12 = vld [vmem:[%s4643_s11 + $0xfa] sm:$0xff] }
  0xa0   : > { %4019 = vmatmul.mubr.msk.f32.gmra.mrb[16].mxu0 %vm226_vm1, %v5186_v37  ;;  %3843 = vmatpush3.msk.msra.mxu1 %vm323_vm0, %v4965_v62 }
  0xa1   : > { %3797 = vmatprep.mubr.msk.f32.mxu1 %vm226_vm1, %v4694_v14  ;;  %4021 = vmatprep.mubr.msk.f32.mxu0 %vm226_vm1, %v5189_v35  ;;  %v5221_v14 = vld [vmem:[%s4643_s11 + $0x10a] sm:$0xff] }
  0xa2   : > { %4142 = vmatprep.subr.msk.mxu1 %vm323_vm0, %v4622_v1 }
  0xa3   : > { %3798 = vmatmul.mubr.msk.f32.gmra.mrb[2].mxu1 %vm226_vm1, %v4712_v16  ;;  %v5232_v16 = vld [vmem:[%s4643_s11 + $0x112] sm:$0xff] }
  0xa4   : > { %4022 = vmatmul.mubr.msk.f32.gmra.mrb[18].mxu0 %vm226_vm1, %v5200_v8  ;;  %3800 = vmatprep.mubr.msk.f32.mxu1 %vm226_vm1, %v4718_v18  ;;  %v5235_v18 = vld [vmem:[%s4643_s11 + $0x122] sm:$0xff] }
  0xa5   : > { %4024 = vmatprep.mubr.msk.f32.mxu0 %vm226_vm1, %v5205_v33 }
  0xa7   : > { %3801 = vmatmul.mubr.msk.f32.gmra.mrb[4].mxu1 %vm226_vm1, %v4732_v20  ;;  %v5246_v20 = vld [vmem:[%s4643_s11 + $0x12a] sm:$0xff] }
  0xa8   : > { %4025 = vmatmul.mubr.msk.f32.gmra.mrb[20].mxu0 %vm226_vm1, %v5218_v12  ;;  %3803 = vmatprep.mubr.msk.f32.mxu1 %vm226_vm1, %v4738_v22  ;;  %v5249_v22 = vld [vmem:[%s4643_s11 + $0x13a] sm:$0xff] }
  0xa9   : > { %4027 = vmatprep.mubr.msk.f32.mxu0 %vm226_vm1, %v5221_v14 }
  0xab   : > { %3804 = vmatmul.mubr.msk.f32.gmra.mrb[6].mxu1 %vm226_vm1, %v4752_v24  ;;  %v5260_v24 = vld [vmem:[%s4643_s11 + $0x142] sm:$0xff] }
  0xac   : > { %4028 = vmatmul.mubr.msk.f32.gmra.mrb[22].mxu0 %vm226_vm1, %v5232_v16  ;;  %3806 = vmatprep.mubr.msk.f32.mxu1 %vm226_vm1, %v4758_v26  ;;  %v5263_v26 = vld [vmem:[%s4643_s11 + $0x152] sm:$0xff] }
  0xad   : > { %4030 = vmatprep.mubr.msk.f32.mxu0 %vm226_vm1, %v5235_v18 }
  0xaf   : > { %3807 = vmatmul.mubr.msk.f32.gmra.mrb[8].mxu1 %vm226_vm1, %v4772_v28  ;;  %v5274_v28 = vld [vmem:[%s4643_s11 + $0x15a] sm:$0xff] }
  0xb0   : > { %4031 = vmatmul.mubr.msk.f32.gmra.mrb[24].mxu0 %vm226_vm1, %v5246_v20  ;;  %3809 = vmatprep.mubr.msk.f32.mxu1 %vm226_vm1, %v4778_v30  ;;  %v5277_v30 = vld [vmem:[%s4643_s11 + $0x16a] sm:$0xff] }
  0xb1   : > { %4033 = vmatprep.mubr.msk.f32.mxu0 %vm226_vm1, %v5249_v22 }
  0xb3   : > { %3810 = vmatmul.mubr.msk.f32.gmra.mrb[10].mxu1 %vm226_vm1, %v4792_v32  ;;  %v5288_v32 = vld [vmem:[%s4643_s11 + $0x172] sm:$0xff] }
  0xb4   : > { %4034 = vmatmul.mubr.msk.f32.gmra.mrb[26].mxu0 %vm226_vm1, %v5260_v24  ;;  %3812 = vmatprep.mubr.msk.f32.mxu1 %vm226_vm1, %v4798_v34  ;;  %v221_v34 = vld [vmem:[%s4643_s11 + $0x198] sm:$0xff] }
  0xb5   : > { %4036 = vmatprep.mubr.msk.f32.mxu0 %vm226_vm1, %v5263_v26 }
  0xb7   : > { %3813 = vmatmul.mubr.msk.f32.gmra.mrb[12].mxu1 %vm226_vm1, %v4812_v36  ;;  %v222_v36 = vld [vmem:[%s4643_s11 + $0x1a0] sm:$0xff] }
  0xb8   : > { %4037 = vmatmul.mubr.msk.f32.gmra.mrb[28].mxu0 %vm226_vm1, %v5274_v28  ;;  %3815 = vmatprep.mubr.msk.f32.mxu1 %vm226_vm1, %v4818_v38  ;;  %v1054_v38 = vld [vmem:[%s4643_s11 + $0x1] sm:$0xff] }
  0xb9   : > { %4039 = vmatprep.mubr.msk.f32.mxu0 %vm226_vm1, %v5277_v30 }
  0xbb   : > { %3816 = vmatmul.mubr.msk.f32.gmra.mrb[14].mxu1 %vm226_vm1, %v4829_v39  ;;  %v1055_v39 = vld [vmem:[%s4643_s11 + $0x9] sm:$0xff] }
  0xbc   : > { %4040 = vmatmul.mubr.msk.f32.gmra.mrb[30].mxu0 %vm226_vm1, %v5288_v32  ;;  %3818 = vmatprep.mubr.msk.f32.mxu1 %vm226_vm1, %v4832_v40  ;;  %v5764_v40 = vld [vmem:[#allocation17_spill] sm:$0xff] }
  0xbd   : > { %4044 = vmatprep.mubr.msk.f32.mxu0 %vm226_vm1, %v5069_v59 }
  0xbf   : > { %3819 = vmatmul.mubr.msk.f32.gmra.mrb[16].mxu1 %vm226_vm1, %v4848_v42  ;;  %v5765_v42 = vld [vmem:[#allocation18_spill] sm:$0xff] }
  0xc0   : > { %4045 = vmatmul.mubr.msk.f32.vlgmr.msra.gmra.mrb[0].mxu0 %vm226_vm1, %v5084_v6  ;;  %3821 = vmatprep.mubr.msk.f32.mxu1 %vm226_vm1, %v4853_v43  ;;  %v5766_v43 = vld [vmem:[#allocation19_spill] sm:$0xff] }
  0xc1   : > { %4093 = vmatpush3.msk.msra.mxu0 %vm323_vm0, %v5074_v11  ;;  %4047 = vmatprep.mubr.msk.f32.mxu0 %vm226_vm1, %v5089_v57 }
  0xc3   : > { %3822 = vmatmul.mubr.msk.f32.gmra.mrb[18].mxu1 %vm226_vm1, %v4866_v44  ;;  %v5767_v44 = vld [vmem:[#allocation20_spill] sm:$0xff] }
  0xc4   : > { %4048 = vmatmul.mubr.msk.f32.gmra.mrb[2].mxu0 %vm226_vm1, %v5102_v41  ;;  %3824 = vmatprep.mubr.msk.f32.mxu1 %vm226_vm1, %v4869_v45  ;;  %v5768_v45 = vld [vmem:[#allocation21_spill] sm:$0xff] }
  0xc5   : > { %4050 = vmatprep.mubr.msk.f32.mxu0 %vm226_vm1, %v5105_v10 }
  0xc7   : > { %3825 = vmatmul.mubr.msk.f32.gmra.mrb[20].mxu1 %vm226_vm1, %v4880_v46  ;;  %v5770_v46 = vld [vmem:[#allocation23_spill] sm:$0xff] }
  0xc8   : > { %4051 = vmatmul.mubr.msk.f32.gmra.mrb[4].mxu0 %vm226_vm1, %v5116_v4  ;;  %3827 = vmatprep.mubr.msk.f32.mxu1 %vm226_vm1, %v4883_v47 }
  0xc9   : > { %4053 = vmatprep.mubr.msk.f32.mxu0 %vm226_vm1, %v5119_v3 }
  0xcb   : > { %3828 = vmatmul.mubr.msk.f32.gmra.mrb[22].mxu1 %vm226_vm1, %v4894_v48 }
  0xcc   : > { %4054 = vmatmul.mubr.msk.f32.gmra.mrb[6].mxu0 %vm226_vm1, %v5130_v2  ;;  %3830 = vmatprep.mubr.msk.f32.mxu1 %vm226_vm1, %v4897_v49 }
  0xcd   : > { %4056 = vmatprep.mubr.msk.f32.mxu0 %vm226_vm1, %v5133_v0 }
  0xcf   : > { %3831 = vmatmul.mubr.msk.f32.gmra.mrb[24].mxu1 %vm226_vm1, %v4908_v50 }
  0xd0   : > { %4057 = vmatmul.mubr.msk.f32.gmra.mrb[8].mxu0 %vm226_vm1, %v5144_v63  ;;  %3833 = vmatprep.mubr.msk.f32.mxu1 %vm226_vm1, %v4911_v51 }
  0xd1   : > { %4059 = vmatprep.mubr.msk.f32.mxu0 %vm226_vm1, %v5147_v61 }
  0xd3   : > { %3834 = vmatmul.mubr.msk.f32.gmra.mrb[26].mxu1 %vm226_vm1, %v4922_v52 }
  0xd4   : > { %4060 = vmatmul.mubr.msk.f32.gmra.mrb[10].mxu0 %vm226_vm1, %v5158_v60  ;;  %3836 = vmatprep.mubr.msk.f32.mxu1 %vm226_vm1, %v4925_v53 }
  0xd5   : > { %4062 = vmatprep.mubr.msk.f32.mxu0 %vm226_vm1, %v5161_v58 }
  0xd7   : > { %3837 = vmatmul.mubr.msk.f32.gmra.mrb[28].mxu1 %vm226_vm1, %v4939_v55 }
  0xd8   : > { %4063 = vmatmul.mubr.msk.f32.gmra.mrb[12].mxu0 %vm226_vm1, %v5172_v56  ;;  %3839 = vmatprep.mubr.msk.f32.mxu1 %vm226_vm1, %v221_v34 }
  0xd9   : > { %4065 = vmatprep.mubr.msk.f32.mxu0 %vm226_vm1, %v5175_v54 }
  0xdb   : > { %3840 = vmatmul.mubr.msk.f32.gmra.mrb[30].mxu1 %vm226_vm1, %v222_v36 }
  0xdc   : > { %4066 = vmatmul.mubr.msk.f32.gmra.mrb[14].mxu0 %vm226_vm1, %v5186_v37  ;;  %3844 = vmatprep.mubr.msk.f32.mxu1 %vm226_vm1, %v1054_v38 }
  0xdd   : > { %4068 = vmatprep.mubr.msk.f32.mxu0 %vm226_vm1, %v5189_v35 }
  0xdf   : > { %3845 = vmatmul.mubr.msk.f32.vlgmr.msra.gmra.mrb[0].mxu1 %vm226_vm1, %v1055_v39 }
  0xe0   : > { %4069 = vmatmul.mubr.msk.f32.gmra.mrb[16].mxu0 %vm226_vm1, %v5200_v8  ;;  %4143 = vmatpush3.msk.msra.mxu1 %vm323_vm0, %v4622_v1  ;;  %v5415_v1 = vld [vmem:[%s4643_s11 + $0x182] sm:$0xff] }
  0xe1   : > { %3847 = vmatprep.mubr.msk.f32.mxu1 %vm226_vm1, %v4649_v5  ;;  %4071 = vmatprep.mubr.msk.f32.mxu0 %vm226_vm1, %v5205_v33  ;;  %v5426_v5 = vld [vmem:[%s4643_s11 + $0x18a] sm:$0xff] }
  0xe3   : > { %3848 = vmatmul.mubr.msk.f32.gmra.mrb[2].mxu1 %vm226_vm1, %v4659_v7  ;;  %v5752_v7 = vld [vmem:[#allocation5_spill] sm:$0xff] }
  0xe4   : > { %4072 = vmatmul.mubr.msk.f32.gmra.mrb[18].mxu0 %vm226_vm1, %v5218_v12  ;;  %3850 = vmatprep.mubr.msk.f32.mxu1 %vm226_vm1, %v4665_v9  ;;  %v5753_v9 = vld [vmem:[#allocation6_spill] sm:$0xff] }
  0xe5   : > { %4074 = vmatprep.mubr.msk.f32.mxu0 %vm226_vm1, %v5221_v14 }
  0xe7   : > { %3851 = vmatmul.mubr.msk.f32.gmra.mrb[4].mxu1 %vm226_vm1, %v4687_v13  ;;  %v5754_v13 = vld [vmem:[#allocation7_spill] sm:$0xff] }
  0xe8   : > { %4075 = vmatmul.mubr.msk.f32.gmra.mrb[20].mxu0 %vm226_vm1, %v5232_v16  ;;  %3853 = vmatprep.mubr.msk.f32.mxu1 %vm226_vm1, %v4697_v15  ;;  %v5755_v15 = vld [vmem:[#allocation8_spill] sm:$0xff] }
  0xe9   : > { %4077 = vmatprep.mubr.msk.f32.mxu0 %vm226_vm1, %v5235_v18 }
  0xeb   : > { %3854 = vmatmul.mubr.msk.f32.gmra.mrb[6].mxu1 %vm226_vm1, %v4715_v17  ;;  %v5756_v17 = vld [vmem:[#allocation9_spill] sm:$0xff] }
  0xec   : > { %4078 = vmatmul.mubr.msk.f32.gmra.mrb[22].mxu0 %vm226_vm1, %v5246_v20  ;;  %3856 = vmatprep.mubr.msk.f32.mxu1 %vm226_vm1, %v4721_v19  ;;  %v5757_v19 = vld [vmem:[#allocation10_spill] sm:$0xff] }
  0xed   : > { %4080 = vmatprep.mubr.msk.f32.mxu0 %vm226_vm1, %v5249_v22 }
  0xef   : > { %3857 = vmatmul.mubr.msk.f32.gmra.mrb[8].mxu1 %vm226_vm1, %v4735_v21  ;;  %v5758_v21 = vld [vmem:[#allocation11_spill] sm:$0xff] }
  0xf0   : > { %4081 = vmatmul.mubr.msk.f32.gmra.mrb[24].mxu0 %vm226_vm1, %v5260_v24  ;;  %3859 = vmatprep.mubr.msk.f32.mxu1 %vm226_vm1, %v4741_v23  ;;  %v5759_v23 = vld [vmem:[#allocation12_spill] sm:$0xff] }
  0xf1   : > { %4083 = vmatprep.mubr.msk.f32.mxu0 %vm226_vm1, %v5263_v26 }
  0xf3   : > { %3860 = vmatmul.mubr.msk.f32.gmra.mrb[10].mxu1 %vm226_vm1, %v4755_v25  ;;  %v5760_v25 = vld [vmem:[#allocation13_spill] sm:$0xff] }
  0xf4   : > { %4084 = vmatmul.mubr.msk.f32.gmra.mrb[26].mxu0 %vm226_vm1, %v5274_v28  ;;  %3862 = vmatprep.mubr.msk.f32.mxu1 %vm226_vm1, %v4761_v27  ;;  %v5761_v27 = vld [vmem:[#allocation14_spill] sm:$0xff] }
  0xf5   : > { %4086 = vmatprep.mubr.msk.f32.mxu0 %vm226_vm1, %v5277_v30 }
  0xf7   : > { %3863 = vmatmul.mubr.msk.f32.gmra.mrb[12].mxu1 %vm226_vm1, %v4775_v29  ;;  %v5762_v29 = vld [vmem:[#allocation15_spill] sm:$0xff] }
  0xf8   : > { %4087 = vmatmul.mubr.msk.f32.gmra.mrb[28].mxu0 %vm226_vm1, %v5288_v32  ;;  %3865 = vmatprep.mubr.msk.f32.mxu1 %vm226_vm1, %v4781_v31  ;;  %v5763_v31 = vld [vmem:[#allocation16_spill] sm:$0xff] }
  0xf9   : > { %4089 = vmatprep.mubr.msk.f32.mxu0 %vm226_vm1, %v5415_v1 }
  0xfb   : > { %3866 = vmatmul.mubr.msk.f32.gmra.mrb[14].mxu1 %vm226_vm1, %v5752_v7 }
  0xfc   : > { %4090 = vmatmul.mubr.msk.f32.gmra.mrb[30].mxu0 %vm226_vm1, %v5426_v5  ;;  %3868 = vmatprep.mubr.msk.f32.mxu1 %vm226_vm1, %v5753_v9 }
  0xfd   : > { %4094 = vmatprep.mubr.msk.f32.mxu0 %vm226_vm1, %v5089_v57 }
  0xff   : > { %3869 = vmatmul.mubr.msk.f32.gmra.mrb[16].mxu1 %vm226_vm1, %v5754_v13 }
 0x100   : > { %4095 = vmatmul.mubr.msk.f32.vlgmr.msra.gmra.mrb[0].mxu0 %vm226_vm1, %v5102_v41  ;;  %3871 = vmatprep.mubr.msk.f32.mxu1 %vm226_vm1, %v5755_v15 }
 0x101   : > { %4097 = vmatprep.mubr.msk.f32.mxu0 %vm226_vm1, %v5105_v10 }
 0x103   : > { %3872 = vmatmul.mubr.msk.f32.gmra.mrb[18].mxu1 %vm226_vm1, %v5756_v17 }
 0x104   : > { %4098 = vmatmul.mubr.msk.f32.gmra.mrb[2].mxu0 %vm226_vm1, %v5116_v4  ;;  %3874 = vmatprep.mubr.msk.f32.mxu1 %vm226_vm1, %v5757_v19 }
 0x105   : > { %4100 = vmatprep.mubr.msk.f32.mxu0 %vm226_vm1, %v5119_v3  ;;  %v5568_v3 = vld [vmem:[%s5696_s2] ss:$0 sm:$0xff] }
 0x107   : > { %3875 = vmatmul.mubr.msk.f32.gmra.mrb[20].mxu1 %vm226_vm1, %v5758_v21 }
 0x108   : > { %4101 = vmatmul.mubr.msk.f32.gmra.mrb[4].mxu0 %vm226_vm1, %v5130_v2  ;;  %3877 = vmatprep.mubr.msk.f32.mxu1 %vm226_vm1, %v5759_v23 }
 0x109   : > { %4103 = vmatprep.mubr.msk.f32.mxu0 %vm226_vm1, %v5133_v0 }
 0x10b   : > { %3878 = vmatmul.mubr.msk.f32.gmra.mrb[22].mxu1 %vm226_vm1, %v5760_v25 }
 0x10c   : > { %4104 = vmatmul.mubr.msk.f32.gmra.mrb[6].mxu0 %vm226_vm1, %v5144_v63  ;;  %3880 = vmatprep.mubr.msk.f32.mxu1 %vm226_vm1, %v5761_v27 }
 0x10d   : > { %4106 = vmatprep.mubr.msk.f32.mxu0 %vm226_vm1, %v5147_v61 }
 0x10f   : > { %3881 = vmatmul.mubr.msk.f32.gmra.mrb[24].mxu1 %vm226_vm1, %v5762_v29 }
 0x110   : > { %4107 = vmatmul.mubr.msk.f32.gmra.mrb[8].mxu0 %vm226_vm1, %v5158_v60  ;;  %3883 = vmatprep.mubr.msk.f32.mxu1 %vm226_vm1, %v5763_v31 }
 0x111   : > { %4109 = vmatprep.mubr.msk.f32.mxu0 %vm226_vm1, %v5161_v58 }
 0x113   : > { %3884 = vmatmul.mubr.msk.f32.gmra.mrb[26].mxu1 %vm226_vm1, %v5764_v40 }
 0x114   : > { %4110 = vmatmul.mubr.msk.f32.gmra.mrb[10].mxu0 %vm226_vm1, %v5172_v56  ;;  %3886 = vmatprep.mubr.msk.f32.mxu1 %vm226_vm1, %v5765_v42 }
 0x115   : > { %4112 = vmatprep.mubr.msk.f32.mxu0 %vm226_vm1, %v5175_v54 }
 0x117   : > { %3887 = vmatmul.mubr.msk.f32.gmra.mrb[28].mxu1 %vm226_vm1, %v5766_v43 }
 0x118   : > { %4113 = vmatmul.mubr.msk.f32.gmra.mrb[12].mxu0 %vm226_vm1, %v5186_v37  ;;  %3889 = vmatprep.mubr.msk.f32.mxu1 %vm226_vm1, %v5767_v44  ;;  %v2019_v37 = vld [vmem:[%s4643_s11 + $0x1a2] sm:$0xff] }
 0x119   : > { %4115 = vmatprep.mubr.msk.f32.mxu0 %vm226_vm1, %v5189_v35  ;;  %v5769_v35 = vld [vmem:[#allocation22_spill] sm:$0xff] }
 0x11b   : > { %3890 = vmatmul.mubr.msk.f32.gmra.mrb[30].mxu1 %vm226_vm1, %v5768_v45 }
 0x11c   : > { %4116 = vmatmul.mubr.msk.f32.gmra.mrb[14].mxu0 %vm226_vm1, %v5200_v8  ;;  %3918 = vmatprep.mubr.msk.f32.mxu1 %vm226_vm1, %v5755_v15 }
 0x11d   : > { %4118 = vmatprep.mubr.msk.f32.mxu0 %vm226_vm1, %v5205_v33  ;;  %v2018_v33 = vld [vmem:[%s4643_s11 + $0x19a] sm:$0xff]  ;;  %s3001_s11 = sshll.u32 %s5572_s9, 4  ;;  %s5641_s11 = int_to_ptr.vmem [resolvable:$true] %s3001_s11 }
 0x11e   : > { %s4458_s23 = scalar_lea.vmem %s5641_s11, 4096  ;;  %p4465_p1 = scmp.lt.s32.totalorder %s5641_s11, %s4463_s27 }
 0x11f   : > { %3919 = vmatmul.mubr.msk.f32.vlgmr.msra.gmra.mrb[16].mxu1 %vm226_vm1, %v5756_v17  ;;  %p4459_p12 = scmp.ne.s32.totalorder %s5641_s11, %s4458_s23  ;;  %p4466_p2 = scmp.lt.s32.totalorder %s4464_s28, %s4458_s23 }
 0x120   : > { %4119 = vmatmul.mubr.msk.f32.gmra.mrb[16].mxu0 %vm226_vm1, %v5218_v12  ;;  %3921 = vmatprep.mubr.msk.f32.mxu1 %vm226_vm1, %v5757_v19 }
 0x121   : > { %4121 = vmatprep.mubr.msk.f32.mxu0 %vm226_vm1, %v5221_v14  ;;  %p4460_p13 = pnand %p4459_p12, %p4601_p4  ;;  %p4467_p3 = por %p4466_p2, %p4465_p1 }
 0x123   : > { %3922 = vmatmul.mubr.msk.f32.gmra.mrb[18].mxu1 %vm226_vm1, %v5758_v21  ;;  %p4461_p0 = pneg %p4460_p13 }
 0x124   : > { %4122 = vmatmul.mubr.msk.f32.gmra.mrb[18].mxu0 %vm226_vm1, %v5232_v16  ;;  %3924 = vmatprep.mubr.msk.f32.mxu1 %vm226_vm1, %v5759_v23 }
 0x125   : > { %4124 = vmatprep.mubr.msk.f32.mxu0 %vm226_vm1, %v5235_v18  ;;  %p4468_p5 = pnand %p4467_p3, %p4461_p0 }
 0x127   : > { %3925 = vmatmul.mubr.msk.f32.gmra.mrb[20].mxu1 %vm226_vm1, %v5760_v25 }
 0x128   : > { %4125 = vmatmul.mubr.msk.f32.gmra.mrb[20].mxu0 %vm226_vm1, %v5246_v20  ;;  %3927 = vmatprep.mubr.msk.f32.mxu1 %vm226_vm1, %v5761_v27 }
 0x129   : > { %4127 = vmatprep.mubr.msk.f32.mxu0 %vm226_vm1, %v5249_v22 }
 0x12b   : > { %3928 = vmatmul.mubr.msk.f32.gmra.mrb[22].mxu1 %vm226_vm1, %v5762_v29 }
 0x12c   : > { %4128 = vmatmul.mubr.msk.f32.gmra.mrb[22].mxu0 %vm226_vm1, %v5260_v24  ;;  %3930 = vmatprep.mubr.msk.f32.mxu1 %vm226_vm1, %v5763_v31 }
 0x12d   : > { %4130 = vmatprep.mubr.msk.f32.mxu0 %vm226_vm1, %v5263_v26 }
 0x12f   : > { %3931 = vmatmul.mubr.msk.f32.gmra.mrb[24].mxu1 %vm226_vm1, %v5764_v40 }
 0x130   : > { %4131 = vmatmul.mubr.msk.f32.gmra.mrb[24].mxu0 %vm226_vm1, %v5274_v28  ;;  %3933 = vmatprep.mubr.msk.f32.mxu1 %vm226_vm1, %v5765_v42 }
 0x131   : > { %4133 = vmatprep.mubr.msk.f32.mxu0 %vm226_vm1, %v5277_v30 }
 0x133   : > { %3934 = vmatmul.mubr.msk.f32.gmra.mrb[26].mxu1 %vm226_vm1, %v5766_v43 }
 0x134   : > { %4134 = vmatmul.mubr.msk.f32.gmra.mrb[26].mxu0 %vm226_vm1, %v5288_v32  ;;  %3936 = vmatprep.mubr.msk.f32.mxu1 %vm226_vm1, %v5767_v44 }
 0x135   : > { %4136 = vmatprep.mubr.msk.f32.mxu0 %vm226_vm1, %v5415_v1 }
 0x137   : > { %3937 = vmatmul.mubr.msk.f32.gmra.mrb[28].mxu1 %vm226_vm1, %v5768_v45 }
 0x138   : > { %4137 = vmatmul.mubr.msk.f32.gmra.mrb[28].mxu0 %vm226_vm1, %v5426_v5  ;;  %3939 = vmatprep.mubr.msk.f32.mxu1 %vm226_vm1, %v5769_v35 }
 0x139   : > { %4139 = vmatprep.mubr.msk.f32.mxu0 %vm226_vm1, %v2018_v33 }
 0x13b   : > { %3940 = vmatmul.mubr.msk.f32.gmra.mrb[30].mxu1 %vm226_vm1, %v5770_v46 }
 0x13c   : > { %4140 = vmatmul.mubr.msk.f32.gmra.mrb[30].mxu0 %vm226_vm1, %v2019_v37 }
 0x1b2   : > { %v3846_v47 = vpop.f32.mrb[0].mxu1 }
 0x1b3   : > { %v1257_v48 = vpop.f32.mrb[1].mxu1 }
 0x1b6   : > { %v3849_v49 = vpop.f32.mrb[2].mxu1 }
 0x1b7   : > { %v1267_v50 = vpop.f32.mrb[3].mxu1 }
 0x1ba   : > { %v3852_v51 = vpop.f32.mrb[4].mxu1 }
 0x1bb   : > { %v1277_v52 = vpop.f32.mrb[5].mxu1 }
 0x1be   : > { %v3855_v53 = vpop.f32.mrb[6].mxu1 }
 0x1bf   : > { %v1287_v54 = vpop.f32.mrb[7].mxu1 }
 0x1c2   : > { %v3858_v55 = vpop.f32.mrb[8].mxu1 }
 0x1c3   : > { %v1297_v56 = vpop.f32.mrb[9].mxu1 }
 0x1c6   : > { %v3861_v58 = vpop.f32.mrb[10].mxu1 }
 0x1c7   : > { %v1307_v60 = vpop.f32.mrb[11].mxu1 }
 0x1ca   : > { %v3864_v61 = vpop.f32.mrb[12].mxu1 }
 0x1cb   : > { %v1317_v62 = vpop.f32.mrb[13].mxu1 }
 0x1ce   : > { %v3867_v63 = vpop.f32.mrb[14].mxu1 }
 0x1cf   : > { %v5561_v0 = vpop.f32.mrb[15].mxu1 }
 0x1d3   : > { %v4096_v2 = vpop.f32.mrb[0].mxu0 }
 0x1d4   : > { %v4144_v4 = vadd.f32 %v4096_v2, %v3846_v47  ;;  %v2723_v59 = vpop.f32.mrb[1].mxu0 }
 0x1d5   : > { %v4145_v11 = vadd.f32 %v2723_v59, %v1257_v48 }
 0x1d6   : > { %v2922_v6 = vadd.f32 %v4144_v4, %v5568_v3 }
 0x1d7   : > { %v2921_v57 = vadd.f32 %v4145_v11, %v5568_v3  ;;  %v4099_v41 = vpop.f32.mrb[2].mxu0 }
 0x1d8   : > { %2954 = vst [vmem:[%s5572_s9 + $0x8] sm:$0xff] %v2922_v6  ;;  %v4146_v10 = vadd.f32 %v4099_v41, %v3849_v49  ;;  %v2733_v8 = vpop.f32.mrb[3].mxu0 }
 0x1d9   : > { %2953 = vst [vmem:[%s5572_s9] sm:$0xff] %v2921_v57  ;;  %v4147_v12 = vadd.f32 %v2733_v8, %v1267_v50 }
 0x1da   : > { %v2924_v14 = vadd.f32 %v4146_v10, %v5568_v3 }
 0x1db   : > { %v2923_v16 = vadd.f32 %v4147_v12, %v5568_v3  ;;  %v4102_v18 = vpop.f32.mrb[4].mxu0 }
 0x1dc   : > { %2956 = vst [vmem:[%s5572_s9 + $0x18] sm:$0xff] %v2924_v14  ;;  %v4148_v20 = vadd.f32 %v4102_v18, %v3852_v51  ;;  %v2743_v22 = vpop.f32.mrb[5].mxu0 }
 0x1dd   : > { %2955 = vst [vmem:[%s5572_s9 + $0x10] sm:$0xff] %v2923_v16  ;;  %v4149_v24 = vadd.f32 %v2743_v22, %v1277_v52 }
 0x1de   : > { %v2926_v26 = vadd.f32 %v4148_v20, %v5568_v3 }
 0x1df   : > { %v2925_v28 = vadd.f32 %v4149_v24, %v5568_v3  ;;  %v4105_v30 = vpop.f32.mrb[6].mxu0 }
 0x1e0   : > { %2958 = vst [vmem:[%s5572_s9 + $0x28] sm:$0xff] %v2926_v26  ;;  %v4150_v32 = vadd.f32 %v4105_v30, %v3855_v53  ;;  %v2753_v34 = vpop.f32.mrb[7].mxu0 }
 0x1e1   : > { %2957 = vst [vmem:[%s5572_s9 + $0x20] sm:$0xff] %v2925_v28  ;;  %v4151_v36 = vadd.f32 %v2753_v34, %v1287_v54 }
 0x1e2   : > { %v2928_v38 = vadd.f32 %v4150_v32, %v5568_v3 }
 0x1e3   : > { %v2927_v39 = vadd.f32 %v4151_v36, %v5568_v3  ;;  %v4108_v1 = vpop.f32.mrb[8].mxu0 }
 0x1e4   : > { %2960 = vst [vmem:[%s5572_s9 + $0x38] sm:$0xff] %v2928_v38  ;;  %v4152_v5 = vadd.f32 %v4108_v1, %v3858_v55  ;;  %v2763_v7 = vpop.f32.mrb[9].mxu0 }
 0x1e5   : > { %2959 = vst [vmem:[%s5572_s9 + $0x30] sm:$0xff] %v2927_v39  ;;  %v4153_v9 = vadd.f32 %v2763_v7, %v1297_v56 }
 0x1e6   : > { %v2930_v13 = vadd.f32 %v4152_v5, %v5568_v3 }
 0x1e7   : > { %v2929_v15 = vadd.f32 %v4153_v9, %v5568_v3  ;;  %v4111_v17 = vpop.f32.mrb[10].mxu0 }
 0x1e8   : > { %2962 = vst [vmem:[%s5572_s9 + $0x48] sm:$0xff] %v2930_v13  ;;  %v4154_v19 = vadd.f32 %v4111_v17, %v3861_v58  ;;  %v2773_v21 = vpop.f32.mrb[11].mxu0 }
 0x1e9   : > { %2961 = vst [vmem:[%s5572_s9 + $0x40] sm:$0xff] %v2929_v15  ;;  %v4155_v23 = vadd.f32 %v2773_v21, %v1307_v60 }
 0x1ea   : > { %v2932_v25 = vadd.f32 %v4154_v19, %v5568_v3 }
 0x1eb   : > { %v2931_v27 = vadd.f32 %v4155_v23, %v5568_v3  ;;  %v4114_v29 = vpop.f32.mrb[12].mxu0 }
 0x1ec   : > { %2964 = vst [vmem:[%s5572_s9 + $0x58] sm:$0xff] %v2932_v25  ;;  %v4156_v31 = vadd.f32 %v4114_v29, %v3864_v61  ;;  %v2783_v40 = vpop.f32.mrb[13].mxu0 }
 0x1ed   : > { %2963 = vst [vmem:[%s5572_s9 + $0x50] sm:$0xff] %v2931_v27  ;;  %v4157_v42 = vadd.f32 %v2783_v40, %v1317_v62 }
 0x1ee   : > { %v2934_v43 = vadd.f32 %v4156_v31, %v5568_v3 }
 0x1ef   : > { %v2933_v44 = vadd.f32 %v4157_v42, %v5568_v3  ;;  %v4117_v45 = vpop.f32.mrb[14].mxu0 }
 0x1f0   : > { %2966 = vst [vmem:[%s5572_s9 + $0x68] sm:$0xff] %v2934_v43  ;;  %v4158_v33 = vadd.f32 %v4117_v45, %v3867_v63  ;;  %v2793_v35 = vpop.f32.mrb[15].mxu0 }
 0x1f1   : > { %2965 = vst [vmem:[%s5572_s9 + $0x60] sm:$0xff] %v2933_v44  ;;  %v4159_v37 = vadd.f32 %v2793_v35, %v5561_v0 }
 0x1f2   : > { %v2936_v46 = vadd.f32 %v4158_v33, %v5568_v3  ;;  %v3920_v48 = vpop.f32.mrb[16].mxu1 }
 0x1f3   : > { %v2935_v47 = vadd.f32 %v4159_v37, %v5568_v3  ;;  %v4120_v49 = vpop.f32.mrb[16].mxu0  ;;  %v1605_v51 = vpop.f32.mrb[17].mxu1 }
 0x1f4   : > { %2968 = vst [vmem:[%s5572_s9 + $0x78] sm:$0xff] %v2936_v46  ;;  %v4160_v50 = vadd.f32 %v4120_v49, %v3920_v48  ;;  %v2803_v52 = vpop.f32.mrb[17].mxu0 }
 0x1f5   : > { %2967 = vst [vmem:[%s5572_s9 + $0x70] sm:$0xff] %v2935_v47  ;;  %v4161_v53 = vadd.f32 %v2803_v52, %v1605_v51 }
 0x1f6   : > { %v2938_v54 = vadd.f32 %v4160_v50, %v5568_v3  ;;  %v3923_v56 = vpop.f32.mrb[18].mxu1 }
 0x1f7   : > { %v2937_v55 = vadd.f32 %v4161_v53, %v5568_v3  ;;  %v4123_v58 = vpop.f32.mrb[18].mxu0  ;;  %v1615_v61 = vpop.f32.mrb[19].mxu1 }
 0x1f8   : > { %2970 = vst [vmem:[%s5572_s9 + $0x88] sm:$0xff] %v2938_v54  ;;  %v4162_v60 = vadd.f32 %v4123_v58, %v3923_v56  ;;  %v2813_v62 = vpop.f32.mrb[19].mxu0 }
 0x1f9   : > { %2969 = vst [vmem:[%s5572_s9 + $0x80] sm:$0xff] %v2937_v55  ;;  %v4163_v63 = vadd.f32 %v2813_v62, %v1615_v61 }
 0x1fa   : > { %v2940_v0 = vadd.f32 %v4162_v60, %v5568_v3  ;;  %v3926_v4 = vpop.f32.mrb[20].mxu1 }
 0x1fb   : > { %v2939_v2 = vadd.f32 %v4163_v63, %v5568_v3  ;;  %v4126_v59 = vpop.f32.mrb[20].mxu0  ;;  %v1625_v6 = vpop.f32.mrb[21].mxu1 }
 0x1fc   : > { %2972 = vst [vmem:[%s5572_s9 + $0x98] sm:$0xff] %v2940_v0  ;;  %v4164_v11 = vadd.f32 %v4126_v59, %v3926_v4  ;;  %v2823_v57 = vpop.f32.mrb[21].mxu0 }
 0x1fd   : > { %2971 = vst [vmem:[%s5572_s9 + $0x90] sm:$0xff] %v2939_v2  ;;  %v4165_v41 = vadd.f32 %v2823_v57, %v1625_v6 }
 0x1fe   : > { %v2942_v10 = vadd.f32 %v4164_v11, %v5568_v3  ;;  %v3929_v12 = vpop.f32.mrb[22].mxu1 }
 0x1ff   : > { %v2941_v8 = vadd.f32 %v4165_v41, %v5568_v3  ;;  %v4129_v14 = vpop.f32.mrb[22].mxu0  ;;  %v1635_v18 = vpop.f32.mrb[23].mxu1 }
 0x200   : > { %2974 = vst [vmem:[%s5572_s9 + $0xa8] sm:$0xff] %v2942_v10  ;;  %v4166_v16 = vadd.f32 %v4129_v14, %v3929_v12  ;;  %v2833_v20 = vpop.f32.mrb[23].mxu0 }
 0x201   : > { %2973 = vst [vmem:[%s5572_s9 + $0xa0] sm:$0xff] %v2941_v8  ;;  %v4167_v22 = vadd.f32 %v2833_v20, %v1635_v18 }
 0x202   : > { %v2944_v24 = vadd.f32 %v4166_v16, %v5568_v3  ;;  %v3932_v28 = vpop.f32.mrb[24].mxu1 }
 0x203   : > { %v2943_v26 = vadd.f32 %v4167_v22, %v5568_v3  ;;  %v4132_v30 = vpop.f32.mrb[24].mxu0  ;;  %v1645_v34 = vpop.f32.mrb[25].mxu1 }
 0x204   : > { %2976 = vst [vmem:[%s5572_s9 + $0xb8] sm:$0xff] %v2944_v24  ;;  %v4168_v32 = vadd.f32 %v4132_v30, %v3932_v28  ;;  %v2843_v36 = vpop.f32.mrb[25].mxu0 }
 0x205   : > { %2975 = vst [vmem:[%s5572_s9 + $0xb0] sm:$0xff] %v2943_v26  ;;  %v4169_v38 = vadd.f32 %v2843_v36, %v1645_v34 }
 0x206   : > { %v2946_v39 = vadd.f32 %v4168_v32, %v5568_v3  ;;  %v3935_v5 = vpop.f32.mrb[26].mxu1 }
 0x207   : > { %v2945_v1 = vadd.f32 %v4169_v38, %v5568_v3  ;;  %v4135_v7 = vpop.f32.mrb[26].mxu0  ;;  %v1655_v13 = vpop.f32.mrb[27].mxu1 }
 0x208   : > { %2978 = vst [vmem:[%s5572_s9 + $0xc8] sm:$0xff] %v2946_v39  ;;  %v4170_v9 = vadd.f32 %v4135_v7, %v3935_v5  ;;  %v2853_v15 = vpop.f32.mrb[27].mxu0 }
 0x209   : > { %2977 = vst [vmem:[%s5572_s9 + $0xc0] sm:$0xff] %v2945_v1  ;;  %v4171_v17 = vadd.f32 %v2853_v15, %v1655_v13 }
 0x20a   : > { %v2948_v19 = vadd.f32 %v4170_v9, %v5568_v3  ;;  %v3938_v23 = vpop.f32.mrb[28].mxu1 }
 0x20b   : > { %v2947_v21 = vadd.f32 %v4171_v17, %v5568_v3  ;;  %v4138_v25 = vpop.f32.mrb[28].mxu0  ;;  %v1665_v29 = vpop.f32.mrb[29].mxu1 }
 0x20c   : > { %2980 = vst [vmem:[%s5572_s9 + $0xd8] sm:$0xff] %v2948_v19  ;;  %v4172_v27 = vadd.f32 %v4138_v25, %v3938_v23  ;;  %v2863_v31 = vpop.f32.mrb[29].mxu0 }
 0x20d   : > { %2979 = vst [vmem:[%s5572_s9 + $0xd0] sm:$0xff] %v2947_v21  ;;  %v4173_v40 = vadd.f32 %v2863_v31, %v1665_v29 }
 0x20e   : > { %v2950_v42 = vadd.f32 %v4172_v27, %v5568_v3  ;;  %v3941_v44 = vpop.f32.mrb[30].mxu1 }
 0x20f   : > { %v2949_v43 = vadd.f32 %v4173_v40, %v5568_v3  ;;  %v4141_v45 = vpop.f32.mrb[30].mxu0  ;;  %v1675_v35 = vpop.f32.mrb[31].mxu1 }
 0x210   : > { %2982 = vst [vmem:[%s5572_s9 + $0xe8] sm:$0xff] %v2950_v42  ;;  %v4174_v33 = vadd.f32 %v4141_v45, %v3941_v44  ;;  %v2873_v37 = vpop.f32.mrb[31].mxu0 }
 0x211   : > { %2981 = vst [vmem:[%s5572_s9 + $0xe0] sm:$0xff] %v2949_v43  ;;  %v4175_v46 = vadd.f32 %v2873_v37, %v1675_v35 }
 0x212   : > { %v2952_v47 = vadd.f32 %v4174_v33, %v5568_v3 }
 0x213   : > { %v2951_v48 = vadd.f32 %v4175_v46, %v5568_v3 }
 0x214   : > { %2984 = vst [vmem:[%s5572_s9 + $0xf8] sm:$0xff] %v2952_v47 }
 0x215   : > { %2983 = vst [vmem:[%s5572_s9 + $0xf0] sm:$0xff] %v2951_v48 }
 0x216   : > { %4471 = shalt.err (!%p4468_p5)
}
 0x217   : > { %s4472_s29 = scalar_lea.hbm %s5639_s21, 4096  ;;  %s4476_s5 = scalar_lea.hbm %s5697_s3, 8192 }
 0x218   : > { %p4473_p6 = scmp.ne.s32.totalorder %s5639_s21, %s4472_s29  ;;  %p4477_p10 = scmp.lt.u32.totalorder %s5639_s21, %s5697_s3 }
 0x219   : > { %p4478_p11 = scmp.lt.u32.totalorder %s4476_s5, %s4472_s29  ;;  %p4480_p13 = scmp.lt.u32.totalorder %s4472_s29, %s5639_s21 }
 0x21a   : > { %p4474_p7 = pnand %p4473_p6, %p4601_p4 }
 0x21b   : > { %p4479_p12 = por %p4478_p11, %p4477_p10 }
 0x21c   : > { %p4475_p9 = pneg %p4474_p7 }
 0x21d   : > { %p4481_p0 = por %p4480_p13, %p4479_p12 }
 0x21f   : > { %p4482_p1 = pnand %p4481_p0, %p4475_p9 }
 0x221   : > { %4485 = shalt.err (!%p4482_p1)
}
 0x222   : > { %s4539_s8 = smov 128   ;;  %s4540_s9 = smov 8  }
 0x223   : > { %4401 = dma.vmem_to_hbm [thread:$0]  (%p4601_p4), %s5641_s11, 4096, %s5639_s21, %s5648_s15, %s4539_s8, %s4539_s8, %s4540_s9  }
 0x224 PF: > { %p4407_p2 = scmp.ge.s32.totalorder %s4536_s17, 2  ;;  %s3016_s10 = sand.u32 1, %s4516_s12  }
 0x225   : > { %s3017_s18 = scalar_lea.sflag [#allocation3], %s3016_s10 }
 0x226   : > { %p4404_p3 = pnand %p4407_p2, %p4608_p8 }
 0x228   : > { %4511 = dma.done.wait (!%p4404_p3), %s3017_s18, 4096  }
 0x229   : > { %4513 = vsyncadd (!%p4404_p3), %s3017_s18, 4294963200  ;;  %s16_s17 = sadd.s32 1, %s4536_s17   ;;  %s5771_s12 = smov %s4520_s13 }
 0x22a   : > { %p13_p5 = scmp.ge.s32.totalorder %s16_s17, 4   ;;  %s5772_s13 = smov %s4524_s14 }
 0x22b   : > { %s5773_s14 = smov %s4614_s25  ;;  %s5774_s15 = smov %s4532_s16 }
 0x22c   : > { %s5775_s16 = smov %s5777_s20  ;;  %15 = sbr.rel (!%p13_p5) target bundleno = 4 (0x4), region = 76 }
 0x233   :  { %3022 = vsyncpa [#allocation3], 1 }
 0x234   :  { %3024 = vsyncpa [#allocation3 + $0x1], 1 }

</bundles_post_ra>
